<compile_context>
chip_gen: v7x
topology: tpu7x:2x2x1
jax: 0.10.0
libtpu: 0.0.40
codegen_flags: <defaults>
</compile_context>

<pallas_src>
import functools

import jax
import jax.numpy as jnp
import numpy as np
from jax.experimental import pallas as pl
from jax.experimental.pallas import tpu as pltpu

PAD = 0
LN_EPS = 1e-5


# --------------------------------------------------------------------------
# Compiler params (generation-aware VMEM limit)
# --------------------------------------------------------------------------


@functools.lru_cache(maxsize=None)
def _vmem_limit_bytes():
    kind = ""
    try:
        kind = jax.devices()[0].device_kind.lower()
    except Exception:
        pass
    if "v7" in kind or "7x" in kind:
        return 48 * 1024 * 1024     # v7x: 64 MiB physical -> leave compiler-scratch headroom
    if "v6" in kind or "v5" in kind:
        return 96 * 1024 * 1024     # v5e/v6e: 128 MiB physical -> allow big tiles / deeper buffering
    return 32 * 1024 * 1024         # unknown / older generations: conservative, proven default


def _compiler_params():
    return pltpu.CompilerParams(
        dimension_semantics=("parallel",),
        vmem_limit_bytes=_vmem_limit_bytes(),
    )


def _const_spec(a):
    nd = a.ndim
    return pl.BlockSpec(a.shape, lambda b: (0,) * nd)


def _pick_q_chunk(L):
    # Cap the per-head score block at [q_chunk, L]; full L when small (toy configs).
    for c in (512, 256):
        if L > c and L % c == 0:
            return c
    return L


# --------------------------------------------------------------------------
# In-kernel helpers
# --------------------------------------------------------------------------


def _layernorm(y, g, b, eps):
    mean = jnp.mean(y, axis=-1, keepdims=True)
    var = jnp.mean(jnp.square(y - mean), axis=-1, keepdims=True)
    return (y - mean) * jax.lax.rsqrt(var + eps) * g + b


def _conv_same_acc(x_f32, w_taps_ref, bias_f32, kernel_size, pad):
    """'same' 1D conv over rows of x_f32 [L, Cin] via per-tap MXU accumulation.

    Each shifted view is built in-VMEM with pltpu.roll (XLU) + edge masking (hoisted row iota),
    then accumulated with one matmul per tap against the tap-major [K, Cin, Cout] weight ref.
    """
    L = x_f32.shape[0]
    rows = None
    if kernel_size > 1:
        rows = jax.lax.broadcasted_iota(jnp.int32, (L, 1), 0)   # hoisted; reused by every tap
    acc = None
    for t in range(kernel_size):
        off = t - pad
        if off == 0:
            tap = x_f32
        else:
            rolled = pltpu.roll(x_f32, shift=(-off) % L, axis=0)
            valid = (rows + off >= 0) & (rows + off < L)
            tap = jnp.where(valid, rolled, 0.0)
        contrib = jnp.dot(tap.astype(jnp.bfloat16), w_taps_ref[t],
                          preferred_element_type=jnp.float32)
        acc = contrib if acc is None else acc + contrib
    return acc + bias_f32


# --------------------------------------------------------------------------
# Fused Pallas kernels
# --------------------------------------------------------------------------


def _fft_layer_kernel(x_ref, npr_ref, npc_ref,
                      wq_ref, bq_ref, wk_ref, bk_ref, wv_ref, bv_ref,
                      wfc_ref, bfc_ref, ga_ref, ba_ref,
                      w1_ref, b1_ref, w2_ref, b2_ref, gf_ref, bf_ref,
                      o_ref, *, n_head, inv_temp, k1, p1, k2, p2, eps, q_chunk):
    """One full FFT block: MHA (+FC+residual LN+mask) fused with the conv FFN (+residual LN+mask)."""
    x = x_ref[0]                                   # [L, D] bf16
    x_f32 = x.astype(jnp.float32)
    L = x.shape[0]
    npad_row = npr_ref[0]                          # (1, L) f32, 1.0 where token/key is valid
    npad_col = npc_ref[0]                          # (L, 1) f32

    # ---- multi-head self-attention; output FC applied per head and MXU-accumulated ----
    attn_fc = None
    for h in range(n_head):
        qh = jnp.dot(x, wq_ref[h], preferred_element_type=jnp.float32) + bq_ref[h]
        kh = jnp.dot(x, wk_ref[h], preferred_element_type=jnp.float32) + bk_ref[h]
        vh = jnp.dot(x, wv_ref[h], preferred_element_type=jnp.float32) + bv_ref[h]
        kh_t = kh.T
        chunks = []
        for c0 in range(0, L, q_chunk):            # query-block tiling: scores peak at [q_chunk, L]
            s = jnp.dot(qh[c0:c0 + q_chunk], kh_t,
                        preferred_element_type=jnp.float32) * inv_temp
            s = jnp.where(npad_row > 0.0, s, -1e9)                 # key-pad mask rebuilt in-kernel
            s = s - jnp.max(s, axis=-1, keepdims=True)
            p = jnp.exp(s)
            p = p * pl.reciprocal(jnp.sum(p, axis=-1, keepdims=True), approx=True)
            chunks.append(jnp.dot(p, vh, preferred_element_type=jnp.float32))
        head = chunks[0] if len(chunks) == 1 else jnp.concatenate(chunks, axis=0)
        contrib = jnp.dot(head.astype(jnp.bfloat16), wfc_ref[h],
                          preferred_element_type=jnp.float32)
        attn_fc = contrib if attn_fc is None else attn_fc + contrib

    y = _layernorm(attn_fc + bfc_ref[...] + x_f32, ga_ref[...], ba_ref[...], eps)
    y = y * npad_col                               # FFTBlock masks after the attention sub-block

    # ---- position-wise FFN: conv(k1) 'same' -> ReLU -> conv(k2) -> residual LN -> mask ----
    h1 = jnp.maximum(_conv_same_acc(y, w1_ref, b1_ref[...], k1, p1), 0.0)
    h2 = _conv_same_acc(h1, w2_ref, b2_ref[...], k2, p2)
    z = _layernorm(h2 + y, gf_ref[...], bf_ref[...], eps)
    o_ref[0] = (z * npad_col).astype(o_ref.dtype)


def _predictor_kernel(x_ref, w1_ref, b1_ref, g1_ref, be1_ref,
                      w2_ref, b2_ref, g2_ref, be2_ref, wl_ref, bl_ref, o_ref,
                      *, kernel_size, pad, eps):
    """Fused duration / pitch / energy predictor: conv->LN->ReLU x2 -> linear -> ReLU."""
    x_f32 = x_ref[0].astype(jnp.float32)           # [L, D]
    h = _conv_same_acc(x_f32, w1_ref, b1_ref[...], kernel_size, pad)
    h = _layernorm(h, g1_ref[...], be1_ref[...], eps)
    h = jnp.maximum(h, 0.0)
    h = _conv_same_acc(h, w2_ref, b2_ref[...], kernel_size, pad)
    h = _layernorm(h, g2_ref[...], be2_ref[...], eps)
    h = jnp.maximum(h, 0.0)
    out = jnp.sum(h * wl_ref[...], axis=-1, keepdims=True) + bl_ref[...]   # [L, 1]
    o_ref[0] = jnp.maximum(out, 0.0)


def _mel_kernel(x_ref, w_ref, b_ref, keep_ref, o_ref):
    """Fused mask_tensor + mel_linear (output lane-padded to a multiple of 128)."""
    xm = x_ref[0].astype(jnp.float32) * keep_ref[0]      # mask BEFORE the linear (PyTorch order)
    y = jnp.dot(xm.astype(jnp.bfloat16), w_ref[...], preferred_element_type=jnp.float32)
    o_ref[0] = (y + b_ref[...]).astype(o_ref.dtype)


# --------------------------------------------------------------------------
# pallas_call wrappers
# --------------------------------------------------------------------------


def fused_fft_layer(lp, x, npad_row, npad_col, cfg):
    B, L, D = x.shape
    k1, k2 = cfg["fft_kernel"]
    p1, p2 = cfg["fft_padding"]
    assert L + 2 * p1 - k1 + 1 == L and L + 2 * p2 - k2 + 1 == L, "only 'same' convs supported"
    assert max(p1, p2) < L
    kernel = functools.partial(
        _fft_layer_kernel, n_head=cfg["n_head"],
        inv_temp=float(1.0 / np.sqrt(cfg["d_k"])),
        k1=k1, p1=p1, k2=k2, p2=p2, eps=LN_EPS, q_chunk=_pick_q_chunk(L))

    weights = [lp["wq"], lp["bq"], lp["wk"], lp["bk"], lp["wv"], lp["bv"],
               lp["wfc"], lp["bfc"], lp["ln_attn_g"], lp["ln_attn_b"],
               lp["w1"], lp["b1"], lp["w2"], lp["b2"],
               lp["ln_ffn_g"], lp["ln_ffn_b"]]
    return pl.pallas_call(
        kernel,
        out_shape=jax.ShapeDtypeStruct((B, L, D), jnp.bfloat16),
        grid=(B,),
        in_specs=[pl.BlockSpec((1, L, D), lambda b: (b, 0, 0)),
                  pl.BlockSpec((1, 1, L), lambda b: (b, 0, 0)),
                  pl.BlockSpec((1, L, 1), lambda b: (b, 0, 0))]
                 + [_const_spec(w) for w in weights],
        out_specs=pl.BlockSpec((1, L, D), lambda b: (b, 0, 0)),
        compiler_params=_compiler_params(),
    )(x, npad_row, npad_col, *weights)


def predictor_forward(pp, x, kernel_size):
    B, L, D = x.shape
    pad = (kernel_size - 1) // 2
    assert pp["w1"].shape[0] == kernel_size and pad < L
    kernel = functools.partial(_predictor_kernel, kernel_size=kernel_size, pad=pad, eps=LN_EPS)
    weights = [pp["w1"], pp["b1"], pp["ln1_g"], pp["ln1_b"],
               pp["w2"], pp["b2"], pp["ln2_g"], pp["ln2_b"], pp["wl"], pp["bl"]]
    out = pl.pallas_call(
        kernel,
        out_shape=jax.ShapeDtypeStruct((B, L, 1), jnp.float32),
        grid=(B,),
        in_specs=[pl.BlockSpec((1, L, D), lambda b: (b, 0, 0))]
                 + [_const_spec(w) for w in weights],
        out_specs=pl.BlockSpec((1, L, 1), lambda b: (b, 0, 0)),
        compiler_params=_compiler_params(),
    )(x, *weights)
    return out[..., 0]      # [B, L]  (matches .squeeze(-1) of the PyTorch training path)


def mel_projection(pmel, x, mel_pos, mel_max_length, num_mels):
    B, T, D = x.shape
    n_pad = pmel["w"].shape[1]
    lengths = jnp.max(mel_pos, axis=-1)
    keep = (jnp.arange(mel_max_length)[None, :] < lengths[:, None])
    keep = keep.astype(jnp.float32)[..., None]                      # [B, T, 1]
    out = pl.pallas_call(
        _mel_kernel,
        out_shape=jax.ShapeDtypeStruct((B, T, n_pad), jnp.float32),
        grid=(B,),
        in_specs=[
            pl.BlockSpec((1, T, D), lambda b: (b, 0, 0)),
            _const_spec(pmel["w"]),
            _const_spec(pmel["b"]),
            pl.BlockSpec((1, T, 1), lambda b: (b, 0, 0)),
        ],
        out_specs=pl.BlockSpec((1, T, n_pad), lambda b: (b, 0, 0)),
        compiler_params=_compiler_params(),
    )(x, pmel["w"], pmel["b"], keep)
    return out[:, :, :num_mels]


# --------------------------------------------------------------------------
# Parameter init (PyTorch layout) + one-time kernel-ready preparation
# --------------------------------------------------------------------------


def _dense_init(key, shape, scale=0.1):
    return scale * jax.random.normal(key, shape, dtype=jnp.float32)


def init_linear(key, din, dout):
    k1, k2 = jax.random.split(key)
    return {"w": _dense_init(k1, (din, dout)), "b": _dense_init(k2, (dout,))}


def init_conv1d(key, cin, cout, k):
    k1, k2 = jax.random.split(key)
    return {"w": _dense_init(k1, (cout, cin, k)), "b": _dense_init(k2, (cout,))}


def init_layernorm(d):
    return {"g": jnp.ones((d,), jnp.float32), "b": jnp.zeros((d,), jnp.float32)}


def init_embedding(key, n, d, padding_idx=None):
    t = _dense_init(key, (n, d))
    if padding_idx is not None:
        t = t.at[padding_idx].set(0.0)
    return t


def init_fft_layer(key, d_model, d_inner, n_head, d_k, d_v, fft_kernel):
    ks = jax.random.split(key, 6)
    return {
        "w_qs": init_linear(ks[0], d_model, n_head * d_k),
        "w_ks": init_linear(ks[1], d_model, n_head * d_k),
        "w_vs": init_linear(ks[2], d_model, n_head * d_v),
        "fc": init_linear(ks[3], n_head * d_v, d_model),
        "ln_attn": init_layernorm(d_model),
        "conv1": init_conv1d(ks[4], d_model, d_inner, fft_kernel[0]),
        "conv2": init_conv1d(ks[5], d_inner, d_model, fft_kernel[1]),
        "ln_ffn": init_layernorm(d_model),
    }


def init_predictor(key, din, filt, k):
    ks = jax.random.split(key, 3)
    return {
        "conv1": init_conv1d(ks[0], din, filt, k),
        "ln1": init_layernorm(filt),
        "conv2": init_conv1d(ks[1], filt, filt, k),
        "ln2": init_layernorm(filt),
        "linear": init_linear(ks[2], filt, 1),
    }


def init_fastspeech(key, mc, melc):
    ks = jax.random.split(key, 12)
    enc_d, dec_d = mc["encoder_dim"], mc["decoder_dim"]
    return {
        "encoder": {
            "src_word_emb": init_embedding(ks[0], mc["vocab_size"], enc_d, padding_idx=PAD),
            "position_enc": init_embedding(ks[1], mc["max_seq_len"] + 1, enc_d, padding_idx=PAD),
            "layers": [
                init_fft_layer(k, enc_d, mc["encoder_conv1d_filter_size"],
                               mc["encoder_head"], enc_d // mc["encoder_head"],
                               enc_d // mc["encoder_head"], mc["fft_conv1d_kernel"])
                for k in jax.random.split(ks[2], mc["encoder_n_layer"])
            ],
        },
        "length_regulator": {
            "duration_predictor": init_predictor(
                ks[3], enc_d, mc["duration_predictor_filter_size"],
                mc["duration_predictor_kernel_size"]),
        },
        "pitch_regulator": {
            "predictor": init_predictor(
                ks[4], enc_d, mc["duration_predictor_filter_size"],
                mc["duration_predictor_kernel_size"]),
            "embedding": init_embedding(ks[5], mc["variance_n_bins"], enc_d),
        },
        "energy_regulator": {
            "predictor": init_predictor(
                ks[6], enc_d, mc["duration_predictor_filter_size"],
                mc["duration_predictor_kernel_size"]),
            "embedding": init_embedding(ks[7], mc["variance_n_bins"], enc_d),
        },
        "decoder": {
            "position_enc": init_embedding(ks[8], mc["max_seq_len"] + 1, dec_d, padding_idx=PAD),
            "layers": [
                init_fft_layer(k, dec_d, mc["decoder_conv1d_filter_size"],
                               mc["decoder_head"], dec_d // mc["decoder_head"],
                               dec_d // mc["decoder_head"], mc["fft_conv1d_kernel"])
                for k in jax.random.split(ks[9], mc["decoder_n_layer"])
            ],
        },
        "mel_linear": init_linear(ks[10], dec_d, melc["num_mels"]),
        "pitch_bins": jnp.linspace(mc["pitch_min"], mc["pitch_max"], mc["variance_n_bins"] - 1),
        "energy_bins": jnp.linspace(mc["energy_min"], mc["energy_max"], mc["variance_n_bins"] - 1),
    }


def _conv_w_taps(w):
    # [Cout, Cin, K] (PyTorch) -> tap-major [K, Cin, Cout] bf16 for static in-kernel indexing.
    return jnp.transpose(w, (2, 1, 0)).astype(jnp.bfloat16)


def _prep_fft_layer(lp, n_head, d_k, d_v):
    D = lp["w_qs"]["w"].shape[0]

    def split_heads(w, b, dh):
        wh = w.reshape(D, n_head, dh).transpose(1, 0, 2).astype(jnp.bfloat16)   # [H, D, dh]
        bh = b.reshape(n_head, 1, dh)                                            # [H, 1, dh] f32
        return wh, bh

    wq, bq = split_heads(lp["w_qs"]["w"], lp["w_qs"]["b"], d_k)
    wk, bk = split_heads(lp["w_ks"]["w"], lp["w_ks"]["b"], d_k)
    wv, bv = split_heads(lp["w_vs"]["w"], lp["w_vs"]["b"], d_v)
    return {
        "wq": wq, "bq": bq, "wk": wk, "bk": bk, "wv": wv, "bv": bv,
        "wfc": lp["fc"]["w"].reshape(n_head, d_v, D).astype(jnp.bfloat16),       # head-major FC
        "bfc": lp["fc"]["b"].reshape(1, -1),
        "ln_attn_g": lp["ln_attn"]["g"].reshape(1, -1),
        "ln_attn_b": lp["ln_attn"]["b"].reshape(1, -1),
        "w1": _conv_w_taps(lp["conv1"]["w"]),
        "b1": lp["conv1"]["b"].reshape(1, -1),
        "w2": _conv_w_taps(lp["conv2"]["w"]),
        "b2": lp["conv2"]["b"].reshape(1, -1),
        "ln_ffn_g": lp["ln_ffn"]["g"].reshape(1, -1),
        "ln_ffn_b": lp["ln_ffn"]["b"].reshape(1, -1),
    }


def _prep_predictor(pp):
    return {
        "w1": _conv_w_taps(pp["conv1"]["w"]),
        "b1": pp["conv1"]["b"].reshape(1, -1),
        "ln1_g": pp["ln1"]["g"].reshape(1, -1),
        "ln1_b": pp["ln1"]["b"].reshape(1, -1),
        "w2": _conv_w_taps(pp["conv2"]["w"]),
        "b2": pp["conv2"]["b"].reshape(1, -1),
        "ln2_g": pp["ln2"]["g"].reshape(1, -1),
        "ln2_b": pp["ln2"]["b"].reshape(1, -1),
        "wl": pp["linear"]["w"].reshape(1, -1),   # [filt, 1] -> [1, filt]
        "bl": pp["linear"]["b"].reshape(1, 1),
    }


def prepare_params(raw, mc, melc):
    """One-time: head-major Q/K/V/FC, tap-major conv weights, bf16 matmul weights, 128-lane mel head."""
    enc_h, enc_d = mc["encoder_head"], mc["encoder_dim"]
    dec_h, dec_d = mc["decoder_head"], mc["decoder_dim"]
    num_mels = melc["num_mels"]
    n_pad = ((num_mels + 127) // 128) * 128
    mw, mb = raw["mel_linear"]["w"], raw["mel_linear"]["b"]
    return {
        "encoder": {
            "src_word_emb": raw["encoder"]["src_word_emb"].astype(jnp.bfloat16),
            "position_enc": raw["encoder"]["position_enc"].astype(jnp.bfloat16),
            "layers": [_prep_fft_layer(lp, enc_h, enc_d // enc_h, enc_d // enc_h)
                       for lp in raw["encoder"]["layers"]],
        },
        "length_regulator": {
            "duration_predictor": _prep_predictor(raw["length_regulator"]["duration_predictor"]),
        },
        "pitch_regulator": {
            "predictor": _prep_predictor(raw["pitch_regulator"]["predictor"]),
            "embedding": raw["pitch_regulator"]["embedding"].astype(jnp.bfloat16),
        },
        "energy_regulator": {
            "predictor": _prep_predictor(raw["energy_regulator"]["predictor"]),
            "embedding": raw["energy_regulator"]["embedding"].astype(jnp.bfloat16),
        },
        "decoder": {
            "position_enc": raw["decoder"]["position_enc"].astype(jnp.bfloat16),
            "layers": [_prep_fft_layer(lp, dec_h, dec_d // dec_h, dec_d // dec_h)
                       for lp in raw["decoder"]["layers"]],
        },
        "mel_linear": {
            "w": jnp.pad(mw, ((0, 0), (0, n_pad - num_mels))).astype(jnp.bfloat16),
            "b": jnp.pad(mb, (0, n_pad - num_mels)).reshape(1, -1),
        },
        "pitch_bins": raw["pitch_bins"],
        "energy_bins": raw["energy_bins"],
    }


# --------------------------------------------------------------------------
# Forward pass (plain-JAX glue around the fused Pallas kernels)
# --------------------------------------------------------------------------


def encoder_forward(p, src_seq, src_pos, cfg):
    npad = (src_seq != PAD).astype(jnp.float32)                    # [B, L]
    npad_row, npad_col = npad[:, None, :], npad[:, :, None]
    x = p["src_word_emb"][src_seq] + p["position_enc"][src_pos]    # bf16
    for lp in p["layers"]:
        x = fused_fft_layer(lp, x, npad_row, npad_col, cfg)
    return x, npad_col


def length_regulator_forward(p, x, target, mel_max_length, dp_kernel):
    dur_pred = predictor_forward(p["duration_predictor"], x, dp_kernel)     # [B, L]
    # repeat_interleave expressed as a cumulative-duration gather (no [B, T, L] alignment matmul)
    cum = jnp.cumsum(target, axis=1)                                        # [B, L]
    t = jnp.arange(mel_max_length)                                          # [T]
    idx = jnp.sum((cum[:, None, :] <= t[None, :, None]).astype(jnp.int32), axis=-1)  # [B, T]
    total = cum[:, -1]
    valid = t[None, :] < total[:, None]
    gidx = jnp.minimum(idx, x.shape[1] - 1)
    out = jax.vmap(lambda xb, ib: xb[ib])(x, gidx)                          # [B, T, D]
    out = jnp.where(valid[..., None], out, jnp.zeros((), out.dtype))
    return out, dur_pred


def variance_regulator_forward(p, x, target, bins, dp_kernel):
    prediction = predictor_forward(p["predictor"], x, dp_kernel)            # [B, T]
    bucket = jnp.searchsorted(bins, target, side="left")                    # torch.bucketize(right=False)
    embedding = p["embedding"][bucket]
    return x + embedding, prediction


def decoder_forward(p, x, mel_pos, cfg):
    npad = (mel_pos != PAD).astype(jnp.float32)
    npad_row, npad_col = npad[:, None, :], npad[:, :, None]
    out = x + p["position_enc"][mel_pos]
    for lp in p["layers"]:
        out = fused_fft_layer(lp, out, npad_row, npad_col, cfg)
    return out


def fastspeech_forward(params, cfg, src_seq, src_pos, mel_pos, mel_max_length,
                       length_target, pitch_target, energy_target,
                       alpha=1.0, beta=1.0, gamma=1.0):
    # training-branch semantics of FastSpeech.forward (targets provided; alpha/beta/gamma unused there)
    x, _non_pad_mask = encoder_forward(params["encoder"], src_seq, src_pos, cfg["enc"])
    output, dur_pred = length_regulator_forward(
        params["length_regulator"], x, length_target, mel_max_length, cfg["dp_kernel"])
    output, pitch_pred = variance_regulator_forward(
        params["pitch_regulator"], output, pitch_target, params["pitch_bins"], cfg["dp_kernel"])
    output, energy_pred = variance_regulator_forward(
        params["energy_regulator"], output, energy_target, params["energy_bins"], cfg["dp_kernel"])
    output = decoder_forward(params["decoder"], output, mel_pos, cfg["dec"])
    mel = mel_projection(params["mel_linear"], output, mel_pos, mel_max_length, cfg["num_mels"])
    return mel, dur_pred, pitch_pred, energy_pred


# --------------------------------------------------------------------------
# Main
# --------------------------------------------------------------------------

if __name__ == "__main__":
    model_config = {
        "vocab_size": 20,
        "max_seq_len": 32,
        "encoder_dim": 32,
        "encoder_n_layer": 1,
        "encoder_head": 2,
        "encoder_conv1d_filter_size": 64,
        "decoder_dim": 32,
        "decoder_n_layer": 1,
        "decoder_head": 2,
        "decoder_conv1d_filter_size": 64,
        "fft_conv1d_kernel": (9, 1),
        "fft_conv1d_padding": (4, 0),
        "duration_predictor_filter_size": 32,
        "duration_predictor_kernel_size": 3,
        "variance_n_bins": 32,
        "pitch_min": 0.0, "pitch_max": 10.0,
        "energy_min": 0.0, "energy_max": 10.0,
    }
    mel_config = {"num_mels": 80}

    cfg = {
        "enc": {
            "n_head": model_config["encoder_head"],
            "d_k": model_config["encoder_dim"] // model_config["encoder_head"],
            "d_v": model_config["encoder_dim"] // model_config["encoder_head"],
            "fft_kernel": model_config["fft_conv1d_kernel"],
            "fft_padding": model_config["fft_conv1d_padding"],
        },
        "dec": {
            "n_head": model_config["decoder_head"],
            "d_k": model_config["decoder_dim"] // model_config["decoder_head"],
            "d_v": model_config["decoder_dim"] // model_config["decoder_head"],
            "fft_kernel": model_config["fft_conv1d_kernel"],
            "fft_padding": model_config["fft_conv1d_padding"],
        },
        "dp_kernel": model_config["duration_predictor_kernel_size"],
        "num_mels": mel_config["num_mels"],
    }

    key = jax.random.PRNGKey(0)
    k_params, k_seq, k_pitch, k_energy = jax.random.split(key, 4)
    raw_params = init_fastspeech(k_params, model_config, mel_config)
    params = prepare_params(raw_params, model_config, mel_config)   # one-time kernel-ready weights

    B, L, T = 2, 8, 16
    mel_max_length = T
    src_lens = np.array([8, 6])

    tokens = np.asarray(jax.random.randint(k_seq, (B, L), 1, model_config["vocab_size"]))
    src_seq = np.zeros((B, L), dtype=np.int32)
    src_pos = np.zeros((B, L), dtype=np.int32)
    for b in range(B):
        src_seq[b, :src_lens[b]] = tokens[b, :src_lens[b]]
        src_pos[b, :src_lens[b]] = np.arange(1, src_lens[b] + 1)

    length_target = np.zeros((B, L), dtype=np.int32)
    length_target[0, :8] = 2                     # sums to 16
    length_target[1, :6] = 2                     # sums to 12
    mel_lens = length_target.sum(axis=1)

    mel_pos = np.zeros((B, T), dtype=np.int32)
    for b in range(B):
        mel_pos[b, :mel_lens[b]] = np.arange(1, mel_lens[b] + 1)

    pitch_target = jax.random.uniform(k_pitch, (B, T), minval=0.0, maxval=10.0)
    energy_target = jax.random.uniform(k_energy, (B, T), minval=0.0, maxval=10.0)

    fwd = jax.jit(lambda a, b_, c, d, e, f: fastspeech_forward(
        params, cfg, a, b_, c, mel_max_length, d, e, f))

    mel, dur_pred, pitch_pred, energy_pred = fwd(
        jnp.asarray(src_seq), jnp.asarray(src_pos), jnp.asarray(mel_pos),
        jnp.asarray(length_target), pitch_target, energy_target)

    jax.block_until_ready((mel, dur_pred, pitch_pred, energy_pred))
    assert mel.shape == (B, T, mel_config["num_mels"])
    assert dur_pred.shape == (B, L)
    assert pitch_pred.shape == (B, T)
    assert energy_pred.shape == (B, T)
    print("KERNEL_OK")
</pallas_src>

<mosaic_0001>
module attributes {stable_mosaic.version = 11 : i64} {
  func.func @_fft_layer_kernel(%arg0: i32, %arg1: memref<1x8x32xbf16, #tpu.memory_space<vmem>>, %arg2: memref<1x1x8xf32, #tpu.memory_space<vmem>>, %arg3: memref<1x8x1xf32, #tpu.memory_space<vmem>>, %arg4: memref<2x32x16xbf16, #tpu.memory_space<vmem>>, %arg5: memref<2x1x16xf32, #tpu.memory_space<vmem>>, %arg6: memref<2x32x16xbf16, #tpu.memory_space<vmem>>, %arg7: memref<2x1x16xf32, #tpu.memory_space<vmem>>, %arg8: memref<2x32x16xbf16, #tpu.memory_space<vmem>>, %arg9: memref<2x1x16xf32, #tpu.memory_space<vmem>>, %arg10: memref<2x16x32xbf16, #tpu.memory_space<vmem>>, %arg11: memref<1x32xf32, #tpu.memory_space<vmem>>, %arg12: memref<1x32xf32, #tpu.memory_space<vmem>>, %arg13: memref<1x32xf32, #tpu.memory_space<vmem>>, %arg14: memref<9x32x64xbf16, #tpu.memory_space<vmem>>, %arg15: memref<1x64xf32, #tpu.memory_space<vmem>>, %arg16: memref<1x64x32xbf16, #tpu.memory_space<vmem>>, %arg17: memref<1x32xf32, #tpu.memory_space<vmem>>, %arg18: memref<1x32xf32, #tpu.memory_space<vmem>>, %arg19: memref<1x32xf32, #tpu.memory_space<vmem>>, %arg20: memref<1x8x32xbf16, #tpu.memory_space<vmem>>) attributes {dimension_semantics = [#tpu.dimension_semantics<parallel>], iteration_bounds = array<i64: 2>, scalar_prefetch = 0 : i64, scratch_operands = 0 : i64, tpu.core_type = #tpu.core_type<tc>, window_params = [{transform_indices = @transform_0, window_bounds = array<i64: 1, 8, 32>}, {transform_indices = @transform_1, window_bounds = array<i64: 1, 1, 8>}, {transform_indices = @transform_2, window_bounds = array<i64: 1, 8, 1>}, {pipeline_mode = #tpu.pipeline_mode<synchronous>, transform_indices = @transform_3, window_bounds = array<i64: 2, 32, 16>}, {pipeline_mode = #tpu.pipeline_mode<synchronous>, transform_indices = @transform_4, window_bounds = array<i64: 2, 1, 16>}, {pipeline_mode = #tpu.pipeline_mode<synchronous>, transform_indices = @transform_5, window_bounds = array<i64: 2, 32, 16>}, {pipeline_mode = #tpu.pipeline_mode<synchronous>, transform_indices = @transform_6, window_bounds = array<i64: 2, 1, 16>}, {pipeline_mode = #tpu.pipeline_mode<synchronous>, transform_indices = @transform_7, window_bounds = array<i64: 2, 32, 16>}, {pipeline_mode = #tpu.pipeline_mode<synchronous>, transform_indices = @transform_8, window_bounds = array<i64: 2, 1, 16>}, {pipeline_mode = #tpu.pipeline_mode<synchronous>, transform_indices = @transform_9, window_bounds = array<i64: 2, 16, 32>}, {pipeline_mode = #tpu.pipeline_mode<synchronous>, transform_indices = @transform_10, window_bounds = array<i64: 1, 32>}, {pipeline_mode = #tpu.pipeline_mode<synchronous>, transform_indices = @transform_11, window_bounds = array<i64: 1, 32>}, {pipeline_mode = #tpu.pipeline_mode<synchronous>, transform_indices = @transform_12, window_bounds = array<i64: 1, 32>}, {pipeline_mode = #tpu.pipeline_mode<synchronous>, transform_indices = @transform_13, window_bounds = array<i64: 9, 32, 64>}, {pipeline_mode = #tpu.pipeline_mode<synchronous>, transform_indices = @transform_14, window_bounds = array<i64: 1, 64>}, {pipeline_mode = #tpu.pipeline_mode<synchronous>, transform_indices = @transform_15, window_bounds = array<i64: 1, 64, 32>}, {pipeline_mode = #tpu.pipeline_mode<synchronous>, transform_indices = @transform_16, window_bounds = array<i64: 1, 32>}, {pipeline_mode = #tpu.pipeline_mode<synchronous>, transform_indices = @transform_17, window_bounds = array<i64: 1, 32>}, {pipeline_mode = #tpu.pipeline_mode<synchronous>, transform_indices = @transform_18, window_bounds = array<i64: 1, 32>}, {transform_indices = @transform_19, window_bounds = array<i64: 1, 8, 32>}]} {
    %c0 = arith.constant 0 : index
    %c0_0 = arith.constant 0 : index
    %c0_1 = arith.constant 0 : index
    %0 = vector.load %arg1[%c0, %c0_0, %c0_1] : memref<1x8x32xbf16, #tpu.memory_space<vmem>>, vector<1x8x32xbf16>
    %1 = vector.shape_cast %0 : vector<1x8x32xbf16> to vector<8x32xbf16>
    %2 = arith.extf %1 : vector<8x32xbf16> to vector<8x32xf32>
    %c0_2 = arith.constant 0 : index
    %c0_3 = arith.constant 0 : index
    %c0_4 = arith.constant 0 : index
    %3 = vector.load %arg2[%c0_2, %c0_3, %c0_4] : memref<1x1x8xf32, #tpu.memory_space<vmem>>, vector<1x1x8xf32>
    %4 = vector.shape_cast %3 : vector<1x1x8xf32> to vector<1x8xf32>
    %c0_5 = arith.constant 0 : index
    %c0_6 = arith.constant 0 : index
    %c0_7 = arith.constant 0 : index
    %5 = vector.load %arg3[%c0_5, %c0_6, %c0_7] : memref<1x8x1xf32, #tpu.memory_space<vmem>>, vector<1x8x1xf32>
    %6 = vector.shape_cast %5 : vector<1x8x1xf32> to vector<8x1xf32>
    %c0_8 = arith.constant 0 : index
    %c0_9 = arith.constant 0 : index
    %c0_10 = arith.constant 0 : index
    %7 = vector.load %arg4[%c0_8, %c0_9, %c0_10] : memref<2x32x16xbf16, #tpu.memory_space<vmem>>, vector<1x32x16xbf16>
    %8 = vector.shape_cast %7 : vector<1x32x16xbf16> to vector<32x16xbf16>
    %cst = arith.constant dense<0.000000e+00> : vector<8x16xf32>
    %9 = tpu.matmul %1, %8, %cst {dimension_numbers = #tpu.dot_dimension_numbers<[1], [0], [0], [1], [0, 0, 1, 1], [], []>} : vector<8x32xbf16>, vector<32x16xbf16>, vector<8x16xf32> -> vector<8x16xf32>
    %c0_11 = arith.constant 0 : index
    %c0_12 = arith.constant 0 : index
    %c0_13 = arith.constant 0 : index
    %10 = vector.load %arg5[%c0_11, %c0_12, %c0_13] : memref<2x1x16xf32, #tpu.memory_space<vmem>>, vector<1x1x16xf32>
    %11 = vector.shape_cast %10 : vector<1x1x16xf32> to vector<1x16xf32>
    %12 = vector.broadcast %11 : vector<1x16xf32> to vector<8x16xf32>
    %13 = arith.addf %9, %12 : vector<8x16xf32>
    %c0_14 = arith.constant 0 : index
    %c0_15 = arith.constant 0 : index
    %c0_16 = arith.constant 0 : index
    %14 = vector.load %arg6[%c0_14, %c0_15, %c0_16] : memref<2x32x16xbf16, #tpu.memory_space<vmem>>, vector<1x32x16xbf16>
    %15 = vector.shape_cast %14 : vector<1x32x16xbf16> to vector<32x16xbf16>
    %cst_17 = arith.constant dense<0.000000e+00> : vector<8x16xf32>
    %16 = tpu.matmul %1, %15, %cst_17 {dimension_numbers = #tpu.dot_dimension_numbers<[1], [0], [0], [1], [0, 0, 1, 1], [], []>} : vector<8x32xbf16>, vector<32x16xbf16>, vector<8x16xf32> -> vector<8x16xf32>
    %c0_18 = arith.constant 0 : index
    %c0_19 = arith.constant 0 : index
    %c0_20 = arith.constant 0 : index
    %17 = vector.load %arg7[%c0_18, %c0_19, %c0_20] : memref<2x1x16xf32, #tpu.memory_space<vmem>>, vector<1x1x16xf32>
    %18 = vector.shape_cast %17 : vector<1x1x16xf32> to vector<1x16xf32>
    %19 = vector.broadcast %18 : vector<1x16xf32> to vector<8x16xf32>
    %20 = arith.addf %16, %19 : vector<8x16xf32>
    %c0_21 = arith.constant 0 : index
    %c0_22 = arith.constant 0 : index
    %c0_23 = arith.constant 0 : index
    %21 = vector.load %arg8[%c0_21, %c0_22, %c0_23] : memref<2x32x16xbf16, #tpu.memory_space<vmem>>, vector<1x32x16xbf16>
    %22 = vector.shape_cast %21 : vector<1x32x16xbf16> to vector<32x16xbf16>
    %cst_24 = arith.constant dense<0.000000e+00> : vector<8x16xf32>
    %23 = tpu.matmul %1, %22, %cst_24 {dimension_numbers = #tpu.dot_dimension_numbers<[1], [0], [0], [1], [0, 0, 1, 1], [], []>} : vector<8x32xbf16>, vector<32x16xbf16>, vector<8x16xf32> -> vector<8x16xf32>
    %c0_25 = arith.constant 0 : index
    %c0_26 = arith.constant 0 : index
    %c0_27 = arith.constant 0 : index
    %24 = vector.load %arg9[%c0_25, %c0_26, %c0_27] : memref<2x1x16xf32, #tpu.memory_space<vmem>>, vector<1x1x16xf32>
    %25 = vector.shape_cast %24 : vector<1x1x16xf32> to vector<1x16xf32>
    %26 = vector.broadcast %25 : vector<1x16xf32> to vector<8x16xf32>
    %27 = arith.addf %23, %26 : vector<8x16xf32>
    %28 = tpu.transpose %20, [1, 0] : vector<8x16xf32> -> vector<16x8xf32>
    %cst_28 = arith.constant dense<0.000000e+00> : vector<8x8xf32>
    %29 = tpu.matmul %13, %28, %cst_28 {dimension_numbers = #tpu.dot_dimension_numbers<[1], [0], [0], [1], [0, 0, 1, 1], [], []>} : vector<8x16xf32>, vector<16x8xf32>, vector<8x8xf32> -> vector<8x8xf32>
    %cst_29 = arith.constant 2.500000e-01 : f32
    %30 = vector.broadcast %cst_29 : f32 to vector<8x8xf32>
    %31 = arith.mulf %29, %30 : vector<8x8xf32>
    %cst_30 = arith.constant 0.000000e+00 : f32
    %32 = vector.broadcast %cst_30 : f32 to vector<1x8xf32>
    %33 = arith.cmpf ogt, %4, %32 : vector<1x8xf32>
    %cst_31 = arith.constant -1.000000e+09 : f32
    %34 = vector.shape_cast %33 : vector<1x8xi1> to vector<1x8xi1>
    %35 = vector.broadcast %34 : vector<1x8xi1> to vector<8x8xi1>
    %36 = vector.broadcast %cst_31 : f32 to vector<8x8xf32>
    %37 = arith.select %35, %31, %36 : vector<8x8xi1>, vector<8x8xf32>
    %cst_32 = arith.constant dense<0xFF800000> : vector<8xf32>
    %38 = vector.multi_reduction <maximumf>, %37, %cst_32 [1] : vector<8x8xf32> to vector<8xf32>
    %39 = vector.shape_cast %38 : vector<8xf32> to vector<8x1xf32>
    %40 = vector.broadcast %39 : vector<8x1xf32> to vector<8x8xf32>
    %41 = arith.subf %37, %40 : vector<8x8xf32>
    %42 = math.exp %41 : vector<8x8xf32>
    %cst_33 = arith.constant dense<0.000000e+00> : vector<8xf32>
    %43 = vector.multi_reduction <add>, %42, %cst_33 [1] : vector<8x8xf32> to vector<8xf32>
    %44 = vector.shape_cast %43 : vector<8xf32> to vector<8x1xf32>
    %45 = tpu.reciprocal %44 {approx = true} : vector<8x1xf32> -> vector<8x1xf32>
    %46 = vector.broadcast %45 : vector<8x1xf32> to vector<8x8xf32>
    %47 = arith.mulf %42, %46 : vector<8x8xf32>
    %cst_34 = arith.constant dense<0.000000e+00> : vector<8x16xf32>
    %48 = tpu.matmul %47, %27, %cst_34 {dimension_numbers = #tpu.dot_dimension_numbers<[1], [0], [0], [1], [0, 0, 1, 1], [], []>} : vector<8x8xf32>, vector<8x16xf32>, vector<8x16xf32> -> vector<8x16xf32>
    %49 = arith.truncf %48 : vector<8x16xf32> to vector<8x16xbf16>
    %c0_35 = arith.constant 0 : index
    %c0_36 = arith.constant 0 : index
    %c0_37 = arith.constant 0 : index
    %50 = vector.load %arg10[%c0_35, %c0_36, %c0_37] : memref<2x16x32xbf16, #tpu.memory_space<vmem>>, vector<1x16x32xbf16>
    %51 = vector.shape_cast %50 : vector<1x16x32xbf16> to vector<16x32xbf16>
    %cst_38 = arith.constant dense<0.000000e+00> : vector<8x32xf32>
    %52 = tpu.matmul %49, %51, %cst_38 {dimension_numbers = #tpu.dot_dimension_numbers<[1], [0], [0], [1], [0, 0, 1, 1], [], []>} : vector<8x16xbf16>, vector<16x32xbf16>, vector<8x32xf32> -> vector<8x32xf32>
    %c1 = arith.constant 1 : index
    %c0_39 = arith.constant 0 : index
    %c0_40 = arith.constant 0 : index
    %53 = vector.load %arg4[%c1, %c0_39, %c0_40] : memref<2x32x16xbf16, #tpu.memory_space<vmem>>, vector<1x32x16xbf16>
    %54 = vector.shape_cast %53 : vector<1x32x16xbf16> to vector<32x16xbf16>
    %cst_41 = arith.constant dense<0.000000e+00> : vector<8x16xf32>
    %55 = tpu.matmul %1, %54, %cst_41 {dimension_numbers = #tpu.dot_dimension_numbers<[1], [0], [0], [1], [0, 0, 1, 1], [], []>} : vector<8x32xbf16>, vector<32x16xbf16>, vector<8x16xf32> -> vector<8x16xf32>
    %c1_42 = arith.constant 1 : index
    %c0_43 = arith.constant 0 : index
    %c0_44 = arith.constant 0 : index
    %56 = vector.load %arg5[%c1_42, %c0_43, %c0_44] : memref<2x1x16xf32, #tpu.memory_space<vmem>>, vector<1x1x16xf32>
    %57 = vector.shape_cast %56 : vector<1x1x16xf32> to vector<1x16xf32>
    %58 = vector.broadcast %57 : vector<1x16xf32> to vector<8x16xf32>
    %59 = arith.addf %55, %58 : vector<8x16xf32>
    %c1_45 = arith.constant 1 : index
    %c0_46 = arith.constant 0 : index
    %c0_47 = arith.constant 0 : index
    %60 = vector.load %arg6[%c1_45, %c0_46, %c0_47] : memref<2x32x16xbf16, #tpu.memory_space<vmem>>, vector<1x32x16xbf16>
    %61 = vector.shape_cast %60 : vector<1x32x16xbf16> to vector<32x16xbf16>
    %cst_48 = arith.constant dense<0.000000e+00> : vector<8x16xf32>
    %62 = tpu.matmul %1, %61, %cst_48 {dimension_numbers = #tpu.dot_dimension_numbers<[1], [0], [0], [1], [0, 0, 1, 1], [], []>} : vector<8x32xbf16>, vector<32x16xbf16>, vector<8x16xf32> -> vector<8x16xf32>
    %c1_49 = arith.constant 1 : index
    %c0_50 = arith.constant 0 : index
    %c0_51 = arith.constant 0 : index
    %63 = vector.load %arg7[%c1_49, %c0_50, %c0_51] : memref<2x1x16xf32, #tpu.memory_space<vmem>>, vector<1x1x16xf32>
    %64 = vector.shape_cast %63 : vector<1x1x16xf32> to vector<1x16xf32>
    %65 = vector.broadcast %64 : vector<1x16xf32> to vector<8x16xf32>
    %66 = arith.addf %62, %65 : vector<8x16xf32>
    %c1_52 = arith.constant 1 : index
    %c0_53 = arith.constant 0 : index
    %c0_54 = arith.constant 0 : index
    %67 = vector.load %arg8[%c1_52, %c0_53, %c0_54] : memref<2x32x16xbf16, #tpu.memory_space<vmem>>, vector<1x32x16xbf16>
    %68 = vector.shape_cast %67 : vector<1x32x16xbf16> to vector<32x16xbf16>
    %cst_55 = arith.constant dense<0.000000e+00> : vector<8x16xf32>
    %69 = tpu.matmul %1, %68, %cst_55 {dimension_numbers = #tpu.dot_dimension_numbers<[1], [0], [0], [1], [0, 0, 1, 1], [], []>} : vector<8x32xbf16>, vector<32x16xbf16>, vector<8x16xf32> -> vector<8x16xf32>
    %c1_56 = arith.constant 1 : index
    %c0_57 = arith.constant 0 : index
    %c0_58 = arith.constant 0 : index
    %70 = vector.load %arg9[%c1_56, %c0_57, %c0_58] : memref<2x1x16xf32, #tpu.memory_space<vmem>>, vector<1x1x16xf32>
    %71 = vector.shape_cast %70 : vector<1x1x16xf32> to vector<1x16xf32>
    %72 = vector.broadcast %71 : vector<1x16xf32> to vector<8x16xf32>
    %73 = arith.addf %69, %72 : vector<8x16xf32>
    %74 = tpu.transpose %66, [1, 0] : vector<8x16xf32> -> vector<16x8xf32>
    %cst_59 = arith.constant dense<0.000000e+00> : vector<8x8xf32>
    %75 = tpu.matmul %59, %74, %cst_59 {dimension_numbers = #tpu.dot_dimension_numbers<[1], [0], [0], [1], [0, 0, 1, 1], [], []>} : vector<8x16xf32>, vector<16x8xf32>, vector<8x8xf32> -> vector<8x8xf32>
    %cst_60 = arith.constant 2.500000e-01 : f32
    %76 = vector.broadcast %cst_60 : f32 to vector<8x8xf32>
    %77 = arith.mulf %75, %76 : vector<8x8xf32>
    %cst_61 = arith.constant 0.000000e+00 : f32
    %78 = vector.broadcast %cst_61 : f32 to vector<1x8xf32>
    %79 = arith.cmpf ogt, %4, %78 : vector<1x8xf32>
    %cst_62 = arith.constant -1.000000e+09 : f32
    %80 = vector.shape_cast %79 : vector<1x8xi1> to vector<1x8xi1>
    %81 = vector.broadcast %80 : vector<1x8xi1> to vector<8x8xi1>
    %82 = vector.broadcast %cst_62 : f32 to vector<8x8xf32>
    %83 = arith.select %81, %77, %82 : vector<8x8xi1>, vector<8x8xf32>
    %cst_63 = arith.constant dense<0xFF800000> : vector<8xf32>
    %84 = vector.multi_reduction <maximumf>, %83, %cst_63 [1] : vector<8x8xf32> to vector<8xf32>
    %85 = vector.shape_cast %84 : vector<8xf32> to vector<8x1xf32>
    %86 = vector.broadcast %85 : vector<8x1xf32> to vector<8x8xf32>
    %87 = arith.subf %83, %86 : vector<8x8xf32>
    %88 = math.exp %87 : vector<8x8xf32>
    %cst_64 = arith.constant dense<0.000000e+00> : vector<8xf32>
    %89 = vector.multi_reduction <add>, %88, %cst_64 [1] : vector<8x8xf32> to vector<8xf32>
    %90 = vector.shape_cast %89 : vector<8xf32> to vector<8x1xf32>
    %91 = tpu.reciprocal %90 {approx = true} : vector<8x1xf32> -> vector<8x1xf32>
    %92 = vector.broadcast %91 : vector<8x1xf32> to vector<8x8xf32>
    %93 = arith.mulf %88, %92 : vector<8x8xf32>
    %cst_65 = arith.constant dense<0.000000e+00> : vector<8x16xf32>
    %94 = tpu.matmul %93, %73, %cst_65 {dimension_numbers = #tpu.dot_dimension_numbers<[1], [0], [0], [1], [0, 0, 1, 1], [], []>} : vector<8x8xf32>, vector<8x16xf32>, vector<8x16xf32> -> vector<8x16xf32>
    %95 = arith.truncf %94 : vector<8x16xf32> to vector<8x16xbf16>
    %c1_66 = arith.constant 1 : index
    %c0_67 = arith.constant 0 : index
    %c0_68 = arith.constant 0 : index
    %96 = vector.load %arg10[%c1_66, %c0_67, %c0_68] : memref<2x16x32xbf16, #tpu.memory_space<vmem>>, vector<1x16x32xbf16>
    %97 = vector.shape_cast %96 : vector<1x16x32xbf16> to vector<16x32xbf16>
    %cst_69 = arith.constant dense<0.000000e+00> : vector<8x32xf32>
    %98 = tpu.matmul %95, %97, %cst_69 {dimension_numbers = #tpu.dot_dimension_numbers<[1], [0], [0], [1], [0, 0, 1, 1], [], []>} : vector<8x16xbf16>, vector<16x32xbf16>, vector<8x32xf32> -> vector<8x32xf32>
    %99 = arith.addf %52, %98 : vector<8x32xf32>
    %c0_70 = arith.constant 0 : index
    %c0_71 = arith.constant 0 : index
    %100 = vector.load %arg11[%c0_70, %c0_71] : memref<1x32xf32, #tpu.memory_space<vmem>>, vector<1x32xf32>
    %101 = vector.broadcast %100 : vector<1x32xf32> to vector<8x32xf32>
    %102 = arith.addf %99, %101 : vector<8x32xf32>
    %103 = arith.addf %102, %2 : vector<8x32xf32>
    %c0_72 = arith.constant 0 : index
    %c0_73 = arith.constant 0 : index
    %104 = vector.load %arg12[%c0_72, %c0_73] : memref<1x32xf32, #tpu.memory_space<vmem>>, vector<1x32xf32>
    %c0_74 = arith.constant 0 : index
    %c0_75 = arith.constant 0 : index
    %105 = vector.load %arg13[%c0_74, %c0_75] : memref<1x32xf32, #tpu.memory_space<vmem>>, vector<1x32xf32>
    %cst_76 = arith.constant dense<0.000000e+00> : vector<8xf32>
    %106 = vector.multi_reduction <add>, %103, %cst_76 [1] : vector<8x32xf32> to vector<8xf32>
    %107 = vector.shape_cast %106 : vector<8xf32> to vector<8x1xf32>
    %cst_77 = arith.constant 3.200000e+01 : f32
    %108 = vector.broadcast %cst_77 : f32 to vector<8x1xf32>
    %109 = arith.divf %107, %108 : vector<8x1xf32>
    %110 = vector.broadcast %109 : vector<8x1xf32> to vector<8x32xf32>
    %111 = arith.subf %103, %110 : vector<8x32xf32>
    %112 = arith.mulf %111, %111 : vector<8x32xf32>
    %cst_78 = arith.constant dense<0.000000e+00> : vector<8xf32>
    %113 = vector.multi_reduction <add>, %112, %cst_78 [1] : vector<8x32xf32> to vector<8xf32>
    %114 = vector.shape_cast %113 : vector<8xf32> to vector<8x1xf32>
    %cst_79 = arith.constant 3.200000e+01 : f32
    %115 = vector.broadcast %cst_79 : f32 to vector<8x1xf32>
    %116 = arith.divf %114, %115 : vector<8x1xf32>
    %117 = vector.broadcast %109 : vector<8x1xf32> to vector<8x32xf32>
    %118 = arith.subf %103, %117 : vector<8x32xf32>
    %cst_80 = arith.constant 9.99999974E-6 : f32
    %119 = vector.broadcast %cst_80 : f32 to vector<8x1xf32>
    %120 = arith.addf %116, %119 : vector<8x1xf32>
    %121 = math.rsqrt %120 : vector<8x1xf32>
    %122 = vector.broadcast %121 : vector<8x1xf32> to vector<8x32xf32>
    %123 = arith.mulf %118, %122 : vector<8x32xf32>
    %124 = vector.broadcast %104 : vector<1x32xf32> to vector<8x32xf32>
    %125 = arith.mulf %123, %124 : vector<8x32xf32>
    %126 = vector.broadcast %105 : vector<1x32xf32> to vector<8x32xf32>
    %127 = arith.addf %125, %126 : vector<8x32xf32>
    %128 = vector.broadcast %6 : vector<8x1xf32> to vector<8x32xf32>
    %129 = arith.mulf %127, %128 : vector<8x32xf32>
    %c0_81 = arith.constant 0 : index
    %c0_82 = arith.constant 0 : index
    %130 = vector.load %arg15[%c0_81, %c0_82] : memref<1x64xf32, #tpu.memory_space<vmem>>, vector<1x64xf32>
    %131 = tpu.iota {dimensions = array<i32: 0>} : vector<8x1xi32>
    %c4_i32 = arith.constant 4 : i32
    %132 = tpu.dynamic_rotate %129 by %c4_i32 dim 0 : vector<8x32xf32>, i32 -> vector<8x32xf32>
    %c-4_i32 = arith.constant -4 : i32
    %133 = vector.broadcast %c-4_i32 : i32 to vector<8x1xi32>
    %134 = arith.addi %131, %133 : vector<8x1xi32>
    %c0_i32 = arith.constant 0 : i32
    %135 = vector.broadcast %c0_i32 : i32 to vector<8x1xi32>
    %136 = arith.cmpi sge, %134, %135 : vector<8x1xi32>
    %c-4_i32_83 = arith.constant -4 : i32
    %137 = vector.broadcast %c-4_i32_83 : i32 to vector<8x1xi32>
    %138 = arith.addi %131, %137 : vector<8x1xi32>
    %c8_i32 = arith.constant 8 : i32
    %139 = vector.broadcast %c8_i32 : i32 to vector<8x1xi32>
    %140 = arith.cmpi slt, %138, %139 : vector<8x1xi32>
    %141 = arith.andi %136, %140 : vector<8x1xi1>
    %cst_84 = arith.constant 0.000000e+00 : f32
    %142 = vector.shape_cast %141 : vector<8x1xi1> to vector<8x1xi1>
    %143 = vector.broadcast %142 : vector<8x1xi1> to vector<8x32xi1>
    %144 = vector.broadcast %cst_84 : f32 to vector<8x32xf32>
    %145 = arith.select %143, %132, %144 : vector<8x32xi1>, vector<8x32xf32>
    %146 = arith.truncf %145 : vector<8x32xf32> to vector<8x32xbf16>
    %c0_85 = arith.constant 0 : index
    %c0_86 = arith.constant 0 : index
    %c0_87 = arith.constant 0 : index
    %147 = vector.load %arg14[%c0_85, %c0_86, %c0_87] : memref<9x32x64xbf16, #tpu.memory_space<vmem>>, vector<1x32x64xbf16>
    %148 = vector.shape_cast %147 : vector<1x32x64xbf16> to vector<32x64xbf16>
    %cst_88 = arith.constant dense<0.000000e+00> : vector<8x64xf32>
    %149 = tpu.matmul %146, %148, %cst_88 {dimension_numbers = #tpu.dot_dimension_numbers<[1], [0], [0], [1], [0, 0, 1, 1], [], []>} : vector<8x32xbf16>, vector<32x64xbf16>, vector<8x64xf32> -> vector<8x64xf32>
    %c3_i32 = arith.constant 3 : i32
    %150 = tpu.dynamic_rotate %129 by %c3_i32 dim 0 : vector<8x32xf32>, i32 -> vector<8x32xf32>
    %c-3_i32 = arith.constant -3 : i32
    %151 = vector.broadcast %c-3_i32 : i32 to vector<8x1xi32>
    %152 = arith.addi %131, %151 : vector<8x1xi32>
    %c0_i32_89 = arith.constant 0 : i32
    %153 = vector.broadcast %c0_i32_89 : i32 to vector<8x1xi32>
    %154 = arith.cmpi sge, %152, %153 : vector<8x1xi32>
    %c-3_i32_90 = arith.constant -3 : i32
    %155 = vector.broadcast %c-3_i32_90 : i32 to vector<8x1xi32>
    %156 = arith.addi %131, %155 : vector<8x1xi32>
    %c8_i32_91 = arith.constant 8 : i32
    %157 = vector.broadcast %c8_i32_91 : i32 to vector<8x1xi32>
    %158 = arith.cmpi slt, %156, %157 : vector<8x1xi32>
    %159 = arith.andi %154, %158 : vector<8x1xi1>
    %cst_92 = arith.constant 0.000000e+00 : f32
    %160 = vector.shape_cast %159 : vector<8x1xi1> to vector<8x1xi1>
    %161 = vector.broadcast %160 : vector<8x1xi1> to vector<8x32xi1>
    %162 = vector.broadcast %cst_92 : f32 to vector<8x32xf32>
    %163 = arith.select %161, %150, %162 : vector<8x32xi1>, vector<8x32xf32>
    %164 = arith.truncf %163 : vector<8x32xf32> to vector<8x32xbf16>
    %c1_93 = arith.constant 1 : index
    %c0_94 = arith.constant 0 : index
    %c0_95 = arith.constant 0 : index
    %165 = vector.load %arg14[%c1_93, %c0_94, %c0_95] : memref<9x32x64xbf16, #tpu.memory_space<vmem>>, vector<1x32x64xbf16>
    %166 = vector.shape_cast %165 : vector<1x32x64xbf16> to vector<32x64xbf16>
    %cst_96 = arith.constant dense<0.000000e+00> : vector<8x64xf32>
    %167 = tpu.matmul %164, %166, %cst_96 {dimension_numbers = #tpu.dot_dimension_numbers<[1], [0], [0], [1], [0, 0, 1, 1], [], []>} : vector<8x32xbf16>, vector<32x64xbf16>, vector<8x64xf32> -> vector<8x64xf32>
    %168 = arith.addf %149, %167 : vector<8x64xf32>
    %c2_i32 = arith.constant 2 : i32
    %169 = tpu.dynamic_rotate %129 by %c2_i32 dim 0 : vector<8x32xf32>, i32 -> vector<8x32xf32>
    %c-2_i32 = arith.constant -2 : i32
    %170 = vector.broadcast %c-2_i32 : i32 to vector<8x1xi32>
    %171 = arith.addi %131, %170 : vector<8x1xi32>
    %c0_i32_97 = arith.constant 0 : i32
    %172 = vector.broadcast %c0_i32_97 : i32 to vector<8x1xi32>
    %173 = arith.cmpi sge, %171, %172 : vector<8x1xi32>
    %c-2_i32_98 = arith.constant -2 : i32
    %174 = vector.broadcast %c-2_i32_98 : i32 to vector<8x1xi32>
    %175 = arith.addi %131, %174 : vector<8x1xi32>
    %c8_i32_99 = arith.constant 8 : i32
    %176 = vector.broadcast %c8_i32_99 : i32 to vector<8x1xi32>
    %177 = arith.cmpi slt, %175, %176 : vector<8x1xi32>
    %178 = arith.andi %173, %177 : vector<8x1xi1>
    %cst_100 = arith.constant 0.000000e+00 : f32
    %179 = vector.shape_cast %178 : vector<8x1xi1> to vector<8x1xi1>
    %180 = vector.broadcast %179 : vector<8x1xi1> to vector<8x32xi1>
    %181 = vector.broadcast %cst_100 : f32 to vector<8x32xf32>
    %182 = arith.select %180, %169, %181 : vector<8x32xi1>, vector<8x32xf32>
    %183 = arith.truncf %182 : vector<8x32xf32> to vector<8x32xbf16>
    %c2 = arith.constant 2 : index
    %c0_101 = arith.constant 0 : index
    %c0_102 = arith.constant 0 : index
    %184 = vector.load %arg14[%c2, %c0_101, %c0_102] : memref<9x32x64xbf16, #tpu.memory_space<vmem>>, vector<1x32x64xbf16>
    %185 = vector.shape_cast %184 : vector<1x32x64xbf16> to vector<32x64xbf16>
    %cst_103 = arith.constant dense<0.000000e+00> : vector<8x64xf32>
    %186 = tpu.matmul %183, %185, %cst_103 {dimension_numbers = #tpu.dot_dimension_numbers<[1], [0], [0], [1], [0, 0, 1, 1], [], []>} : vector<8x32xbf16>, vector<32x64xbf16>, vector<8x64xf32> -> vector<8x64xf32>
    %187 = arith.addf %168, %186 : vector<8x64xf32>
    %c1_i32 = arith.constant 1 : i32
    %188 = tpu.dynamic_rotate %129 by %c1_i32 dim 0 : vector<8x32xf32>, i32 -> vector<8x32xf32>
    %c-1_i32 = arith.constant -1 : i32
    %189 = vector.broadcast %c-1_i32 : i32 to vector<8x1xi32>
    %190 = arith.addi %131, %189 : vector<8x1xi32>
    %c0_i32_104 = arith.constant 0 : i32
    %191 = vector.broadcast %c0_i32_104 : i32 to vector<8x1xi32>
    %192 = arith.cmpi sge, %190, %191 : vector<8x1xi32>
    %c-1_i32_105 = arith.constant -1 : i32
    %193 = vector.broadcast %c-1_i32_105 : i32 to vector<8x1xi32>
    %194 = arith.addi %131, %193 : vector<8x1xi32>
    %c8_i32_106 = arith.constant 8 : i32
    %195 = vector.broadcast %c8_i32_106 : i32 to vector<8x1xi32>
    %196 = arith.cmpi slt, %194, %195 : vector<8x1xi32>
    %197 = arith.andi %192, %196 : vector<8x1xi1>
    %cst_107 = arith.constant 0.000000e+00 : f32
    %198 = vector.shape_cast %197 : vector<8x1xi1> to vector<8x1xi1>
    %199 = vector.broadcast %198 : vector<8x1xi1> to vector<8x32xi1>
    %200 = vector.broadcast %cst_107 : f32 to vector<8x32xf32>
    %201 = arith.select %199, %188, %200 : vector<8x32xi1>, vector<8x32xf32>
    %202 = arith.truncf %201 : vector<8x32xf32> to vector<8x32xbf16>
    %c3 = arith.constant 3 : index
    %c0_108 = arith.constant 0 : index
    %c0_109 = arith.constant 0 : index
    %203 = vector.load %arg14[%c3, %c0_108, %c0_109] : memref<9x32x64xbf16, #tpu.memory_space<vmem>>, vector<1x32x64xbf16>
    %204 = vector.shape_cast %203 : vector<1x32x64xbf16> to vector<32x64xbf16>
    %cst_110 = arith.constant dense<0.000000e+00> : vector<8x64xf32>
    %205 = tpu.matmul %202, %204, %cst_110 {dimension_numbers = #tpu.dot_dimension_numbers<[1], [0], [0], [1], [0, 0, 1, 1], [], []>} : vector<8x32xbf16>, vector<32x64xbf16>, vector<8x64xf32> -> vector<8x64xf32>
    %206 = arith.addf %187, %205 : vector<8x64xf32>
    %207 = arith.truncf %129 : vector<8x32xf32> to vector<8x32xbf16>
    %c4 = arith.constant 4 : index
    %c0_111 = arith.constant 0 : index
    %c0_112 = arith.constant 0 : index
    %208 = vector.load %arg14[%c4, %c0_111, %c0_112] : memref<9x32x64xbf16, #tpu.memory_space<vmem>>, vector<1x32x64xbf16>
    %209 = vector.shape_cast %208 : vector<1x32x64xbf16> to vector<32x64xbf16>
    %cst_113 = arith.constant dense<0.000000e+00> : vector<8x64xf32>
    %210 = tpu.matmul %207, %209, %cst_113 {dimension_numbers = #tpu.dot_dimension_numbers<[1], [0], [0], [1], [0, 0, 1, 1], [], []>} : vector<8x32xbf16>, vector<32x64xbf16>, vector<8x64xf32> -> vector<8x64xf32>
    %211 = arith.addf %206, %210 : vector<8x64xf32>
    %c7_i32 = arith.constant 7 : i32
    %212 = tpu.dynamic_rotate %129 by %c7_i32 dim 0 : vector<8x32xf32>, i32 -> vector<8x32xf32>
    %c1_i32_114 = arith.constant 1 : i32
    %213 = vector.broadcast %c1_i32_114 : i32 to vector<8x1xi32>
    %214 = arith.addi %131, %213 : vector<8x1xi32>
    %c0_i32_115 = arith.constant 0 : i32
    %215 = vector.broadcast %c0_i32_115 : i32 to vector<8x1xi32>
    %216 = arith.cmpi sge, %214, %215 : vector<8x1xi32>
    %c1_i32_116 = arith.constant 1 : i32
    %217 = vector.broadcast %c1_i32_116 : i32 to vector<8x1xi32>
    %218 = arith.addi %131, %217 : vector<8x1xi32>
    %c8_i32_117 = arith.constant 8 : i32
    %219 = vector.broadcast %c8_i32_117 : i32 to vector<8x1xi32>
    %220 = arith.cmpi slt, %218, %219 : vector<8x1xi32>
    %221 = arith.andi %216, %220 : vector<8x1xi1>
    %cst_118 = arith.constant 0.000000e+00 : f32
    %222 = vector.shape_cast %221 : vector<8x1xi1> to vector<8x1xi1>
    %223 = vector.broadcast %222 : vector<8x1xi1> to vector<8x32xi1>
    %224 = vector.broadcast %cst_118 : f32 to vector<8x32xf32>
    %225 = arith.select %223, %212, %224 : vector<8x32xi1>, vector<8x32xf32>
    %226 = arith.truncf %225 : vector<8x32xf32> to vector<8x32xbf16>
    %c5 = arith.constant 5 : index
    %c0_119 = arith.constant 0 : index
    %c0_120 = arith.constant 0 : index
    %227 = vector.load %arg14[%c5, %c0_119, %c0_120] : memref<9x32x64xbf16, #tpu.memory_space<vmem>>, vector<1x32x64xbf16>
    %228 = vector.shape_cast %227 : vector<1x32x64xbf16> to vector<32x64xbf16>
    %cst_121 = arith.constant dense<0.000000e+00> : vector<8x64xf32>
    %229 = tpu.matmul %226, %228, %cst_121 {dimension_numbers = #tpu.dot_dimension_numbers<[1], [0], [0], [1], [0, 0, 1, 1], [], []>} : vector<8x32xbf16>, vector<32x64xbf16>, vector<8x64xf32> -> vector<8x64xf32>
    %230 = arith.addf %211, %229 : vector<8x64xf32>
    %c6_i32 = arith.constant 6 : i32
    %231 = tpu.dynamic_rotate %129 by %c6_i32 dim 0 : vector<8x32xf32>, i32 -> vector<8x32xf32>
    %c2_i32_122 = arith.constant 2 : i32
    %232 = vector.broadcast %c2_i32_122 : i32 to vector<8x1xi32>
    %233 = arith.addi %131, %232 : vector<8x1xi32>
    %c0_i32_123 = arith.constant 0 : i32
    %234 = vector.broadcast %c0_i32_123 : i32 to vector<8x1xi32>
    %235 = arith.cmpi sge, %233, %234 : vector<8x1xi32>
    %c2_i32_124 = arith.constant 2 : i32
    %236 = vector.broadcast %c2_i32_124 : i32 to vector<8x1xi32>
    %237 = arith.addi %131, %236 : vector<8x1xi32>
    %c8_i32_125 = arith.constant 8 : i32
    %238 = vector.broadcast %c8_i32_125 : i32 to vector<8x1xi32>
    %239 = arith.cmpi slt, %237, %238 : vector<8x1xi32>
    %240 = arith.andi %235, %239 : vector<8x1xi1>
    %cst_126 = arith.constant 0.000000e+00 : f32
    %241 = vector.shape_cast %240 : vector<8x1xi1> to vector<8x1xi1>
    %242 = vector.broadcast %241 : vector<8x1xi1> to vector<8x32xi1>
    %243 = vector.broadcast %cst_126 : f32 to vector<8x32xf32>
    %244 = arith.select %242, %231, %243 : vector<8x32xi1>, vector<8x32xf32>
    %245 = arith.truncf %244 : vector<8x32xf32> to vector<8x32xbf16>
    %c6 = arith.constant 6 : index
    %c0_127 = arith.constant 0 : index
    %c0_128 = arith.constant 0 : index
    %246 = vector.load %arg14[%c6, %c0_127, %c0_128] : memref<9x32x64xbf16, #tpu.memory_space<vmem>>, vector<1x32x64xbf16>
    %247 = vector.shape_cast %246 : vector<1x32x64xbf16> to vector<32x64xbf16>
    %cst_129 = arith.constant dense<0.000000e+00> : vector<8x64xf32>
    %248 = tpu.matmul %245, %247, %cst_129 {dimension_numbers = #tpu.dot_dimension_numbers<[1], [0], [0], [1], [0, 0, 1, 1], [], []>} : vector<8x32xbf16>, vector<32x64xbf16>, vector<8x64xf32> -> vector<8x64xf32>
    %249 = arith.addf %230, %248 : vector<8x64xf32>
    %c5_i32 = arith.constant 5 : i32
    %250 = tpu.dynamic_rotate %129 by %c5_i32 dim 0 : vector<8x32xf32>, i32 -> vector<8x32xf32>
    %c3_i32_130 = arith.constant 3 : i32
    %251 = vector.broadcast %c3_i32_130 : i32 to vector<8x1xi32>
    %252 = arith.addi %131, %251 : vector<8x1xi32>
    %c0_i32_131 = arith.constant 0 : i32
    %253 = vector.broadcast %c0_i32_131 : i32 to vector<8x1xi32>
    %254 = arith.cmpi sge, %252, %253 : vector<8x1xi32>
    %c3_i32_132 = arith.constant 3 : i32
    %255 = vector.broadcast %c3_i32_132 : i32 to vector<8x1xi32>
    %256 = arith.addi %131, %255 : vector<8x1xi32>
    %c8_i32_133 = arith.constant 8 : i32
    %257 = vector.broadcast %c8_i32_133 : i32 to vector<8x1xi32>
    %258 = arith.cmpi slt, %256, %257 : vector<8x1xi32>
    %259 = arith.andi %254, %258 : vector<8x1xi1>
    %cst_134 = arith.constant 0.000000e+00 : f32
    %260 = vector.shape_cast %259 : vector<8x1xi1> to vector<8x1xi1>
    %261 = vector.broadcast %260 : vector<8x1xi1> to vector<8x32xi1>
    %262 = vector.broadcast %cst_134 : f32 to vector<8x32xf32>
    %263 = arith.select %261, %250, %262 : vector<8x32xi1>, vector<8x32xf32>
    %264 = arith.truncf %263 : vector<8x32xf32> to vector<8x32xbf16>
    %c7 = arith.constant 7 : index
    %c0_135 = arith.constant 0 : index
    %c0_136 = arith.constant 0 : index
    %265 = vector.load %arg14[%c7, %c0_135, %c0_136] : memref<9x32x64xbf16, #tpu.memory_space<vmem>>, vector<1x32x64xbf16>
    %266 = vector.shape_cast %265 : vector<1x32x64xbf16> to vector<32x64xbf16>
    %cst_137 = arith.constant dense<0.000000e+00> : vector<8x64xf32>
    %267 = tpu.matmul %264, %266, %cst_137 {dimension_numbers = #tpu.dot_dimension_numbers<[1], [0], [0], [1], [0, 0, 1, 1], [], []>} : vector<8x32xbf16>, vector<32x64xbf16>, vector<8x64xf32> -> vector<8x64xf32>
    %268 = arith.addf %249, %267 : vector<8x64xf32>
    %c4_i32_138 = arith.constant 4 : i32
    %269 = tpu.dynamic_rotate %129 by %c4_i32_138 dim 0 : vector<8x32xf32>, i32 -> vector<8x32xf32>
    %c4_i32_139 = arith.constant 4 : i32
    %270 = vector.broadcast %c4_i32_139 : i32 to vector<8x1xi32>
    %271 = arith.addi %131, %270 : vector<8x1xi32>
    %c0_i32_140 = arith.constant 0 : i32
    %272 = vector.broadcast %c0_i32_140 : i32 to vector<8x1xi32>
    %273 = arith.cmpi sge, %271, %272 : vector<8x1xi32>
    %c4_i32_141 = arith.constant 4 : i32
    %274 = vector.broadcast %c4_i32_141 : i32 to vector<8x1xi32>
    %275 = arith.addi %131, %274 : vector<8x1xi32>
    %c8_i32_142 = arith.constant 8 : i32
    %276 = vector.broadcast %c8_i32_142 : i32 to vector<8x1xi32>
    %277 = arith.cmpi slt, %275, %276 : vector<8x1xi32>
    %278 = arith.andi %273, %277 : vector<8x1xi1>
    %cst_143 = arith.constant 0.000000e+00 : f32
    %279 = vector.shape_cast %278 : vector<8x1xi1> to vector<8x1xi1>
    %280 = vector.broadcast %279 : vector<8x1xi1> to vector<8x32xi1>
    %281 = vector.broadcast %cst_143 : f32 to vector<8x32xf32>
    %282 = arith.select %280, %269, %281 : vector<8x32xi1>, vector<8x32xf32>
    %283 = arith.truncf %282 : vector<8x32xf32> to vector<8x32xbf16>
    %c8 = arith.constant 8 : index
    %c0_144 = arith.constant 0 : index
    %c0_145 = arith.constant 0 : index
    %284 = vector.load %arg14[%c8, %c0_144, %c0_145] : memref<9x32x64xbf16, #tpu.memory_space<vmem>>, vector<1x32x64xbf16>
    %285 = vector.shape_cast %284 : vector<1x32x64xbf16> to vector<32x64xbf16>
    %cst_146 = arith.constant dense<0.000000e+00> : vector<8x64xf32>
    %286 = tpu.matmul %283, %285, %cst_146 {dimension_numbers = #tpu.dot_dimension_numbers<[1], [0], [0], [1], [0, 0, 1, 1], [], []>} : vector<8x32xbf16>, vector<32x64xbf16>, vector<8x64xf32> -> vector<8x64xf32>
    %287 = arith.addf %268, %286 : vector<8x64xf32>
    %288 = vector.broadcast %130 : vector<1x64xf32> to vector<8x64xf32>
    %289 = arith.addf %287, %288 : vector<8x64xf32>
    %cst_147 = arith.constant 0.000000e+00 : f32
    %290 = vector.broadcast %cst_147 : f32 to vector<8x64xf32>
    %291 = arith.maximumf %289, %290 : vector<8x64xf32>
    %c0_148 = arith.constant 0 : index
    %c0_149 = arith.constant 0 : index
    %292 = vector.load %arg17[%c0_148, %c0_149] : memref<1x32xf32, #tpu.memory_space<vmem>>, vector<1x32xf32>
    %293 = arith.truncf %291 : vector<8x64xf32> to vector<8x64xbf16>
    %c0_150 = arith.constant 0 : index
    %c0_151 = arith.constant 0 : index
    %c0_152 = arith.constant 0 : index
    %294 = vector.load %arg16[%c0_150, %c0_151, %c0_152] : memref<1x64x32xbf16, #tpu.memory_space<vmem>>, vector<1x64x32xbf16>
    %295 = vector.shape_cast %294 : vector<1x64x32xbf16> to vector<64x32xbf16>
    %cst_153 = arith.constant dense<0.000000e+00> : vector<8x32xf32>
    %296 = tpu.matmul %293, %295, %cst_153 {dimension_numbers = #tpu.dot_dimension_numbers<[1], [0], [0], [1], [0, 0, 1, 1], [], []>} : vector<8x64xbf16>, vector<64x32xbf16>, vector<8x32xf32> -> vector<8x32xf32>
    %297 = vector.broadcast %292 : vector<1x32xf32> to vector<8x32xf32>
    %298 = arith.addf %296, %297 : vector<8x32xf32>
    %299 = arith.addf %298, %129 : vector<8x32xf32>
    %c0_154 = arith.constant 0 : index
    %c0_155 = arith.constant 0 : index
    %300 = vector.load %arg18[%c0_154, %c0_155] : memref<1x32xf32, #tpu.memory_space<vmem>>, vector<1x32xf32>
    %c0_156 = arith.constant 0 : index
    %c0_157 = arith.constant 0 : index
    %301 = vector.load %arg19[%c0_156, %c0_157] : memref<1x32xf32, #tpu.memory_space<vmem>>, vector<1x32xf32>
    %cst_158 = arith.constant dense<0.000000e+00> : vector<8xf32>
    %302 = vector.multi_reduction <add>, %299, %cst_158 [1] : vector<8x32xf32> to vector<8xf32>
    %303 = vector.shape_cast %302 : vector<8xf32> to vector<8x1xf32>
    %cst_159 = arith.constant 3.200000e+01 : f32
    %304 = vector.broadcast %cst_159 : f32 to vector<8x1xf32>
    %305 = arith.divf %303, %304 : vector<8x1xf32>
    %306 = vector.broadcast %305 : vector<8x1xf32> to vector<8x32xf32>
    %307 = arith.subf %299, %306 : vector<8x32xf32>
    %308 = arith.mulf %307, %307 : vector<8x32xf32>
    %cst_160 = arith.constant dense<0.000000e+00> : vector<8xf32>
    %309 = vector.multi_reduction <add>, %308, %cst_160 [1] : vector<8x32xf32> to vector<8xf32>
    %310 = vector.shape_cast %309 : vector<8xf32> to vector<8x1xf32>
    %cst_161 = arith.constant 3.200000e+01 : f32
    %311 = vector.broadcast %cst_161 : f32 to vector<8x1xf32>
    %312 = arith.divf %310, %311 : vector<8x1xf32>
    %313 = vector.broadcast %305 : vector<8x1xf32> to vector<8x32xf32>
    %314 = arith.subf %299, %313 : vector<8x32xf32>
    %cst_162 = arith.constant 9.99999974E-6 : f32
    %315 = vector.broadcast %cst_162 : f32 to vector<8x1xf32>
    %316 = arith.addf %312, %315 : vector<8x1xf32>
    %317 = math.rsqrt %316 : vector<8x1xf32>
    %318 = vector.broadcast %317 : vector<8x1xf32> to vector<8x32xf32>
    %319 = arith.mulf %314, %318 : vector<8x32xf32>
    %320 = vector.broadcast %300 : vector<1x32xf32> to vector<8x32xf32>
    %321 = arith.mulf %319, %320 : vector<8x32xf32>
    %322 = vector.broadcast %301 : vector<1x32xf32> to vector<8x32xf32>
    %323 = arith.addf %321, %322 : vector<8x32xf32>
    %324 = vector.broadcast %6 : vector<8x1xf32> to vector<8x32xf32>
    %325 = arith.mulf %323, %324 : vector<8x32xf32>
    %326 = arith.truncf %325 : vector<8x32xf32> to vector<8x32xbf16>
    %c0_163 = arith.constant 0 : index
    %c0_164 = arith.constant 0 : index
    %c0_165 = arith.constant 0 : index
    %327 = vector.load %arg20[%c0_163, %c0_164, %c0_165] : memref<1x8x32xbf16, #tpu.memory_space<vmem>>, vector<1x8x32xbf16>
    %328 = vector.shape_cast %327 : vector<1x8x32xbf16> to vector<8x32xbf16>
    %329 = vector.shape_cast %326 : vector<8x32xbf16> to vector<1x8x32xbf16>
    tpu.vector_store %arg20[%c0_163, %c0_164, %c0_165], %329 {strides = array<i32>} : memref<1x8x32xbf16, #tpu.memory_space<vmem>>, vector<1x8x32xbf16>,
    return
  }
  func.func @transform_0(%arg0: i32) -> (i32, i32, i32) {
    %c0_i32 = arith.constant 0 : i32
    %c0_i32_0 = arith.constant 0 : i32
    %c0_i32_1 = arith.constant 0 : i32
    return %arg0, %c0_i32, %c0_i32_0 : i32, i32, i32
  }
  func.func @transform_1(%arg0: i32) -> (i32, i32, i32) {
    %c0_i32 = arith.constant 0 : i32
    %c0_i32_0 = arith.constant 0 : i32
    %c0_i32_1 = arith.constant 0 : i32
    return %arg0, %c0_i32, %c0_i32_0 : i32, i32, i32
  }
  func.func @transform_2(%arg0: i32) -> (i32, i32, i32) {
    %c0_i32 = arith.constant 0 : i32
    %c0_i32_0 = arith.constant 0 : i32
    %c0_i32_1 = arith.constant 0 : i32
    return %arg0, %c0_i32, %c0_i32_0 : i32, i32, i32
  }
  func.func @transform_3(%arg0: i32) -> (i32, i32, i32) {
    %c0_i32 = arith.constant 0 : i32
    %c0_i32_0 = arith.constant 0 : i32
    %c0_i32_1 = arith.constant 0 : i32
    %c0_i32_2 = arith.constant 0 : i32
    return %c0_i32, %c0_i32_0, %c0_i32_1 : i32, i32, i32
  }
  func.func @transform_4(%arg0: i32) -> (i32, i32, i32) {
    %c0_i32 = arith.constant 0 : i32
    %c0_i32_0 = arith.constant 0 : i32
    %c0_i32_1 = arith.constant 0 : i32
    %c0_i32_2 = arith.constant 0 : i32
    return %c0_i32, %c0_i32_0, %c0_i32_1 : i32, i32, i32
  }
  func.func @transform_5(%arg0: i32) -> (i32, i32, i32) {
    %c0_i32 = arith.constant 0 : i32
    %c0_i32_0 = arith.constant 0 : i32
    %c0_i32_1 = arith.constant 0 : i32
    %c0_i32_2 = arith.constant 0 : i32
    return %c0_i32, %c0_i32_0, %c0_i32_1 : i32, i32, i32
  }
  func.func @transform_6(%arg0: i32) -> (i32, i32, i32) {
    %c0_i32 = arith.constant 0 : i32
    %c0_i32_0 = arith.constant 0 : i32
    %c0_i32_1 = arith.constant 0 : i32
    %c0_i32_2 = arith.constant 0 : i32
    return %c0_i32, %c0_i32_0, %c0_i32_1 : i32, i32, i32
  }
  func.func @transform_7(%arg0: i32) -> (i32, i32, i32) {
    %c0_i32 = arith.constant 0 : i32
    %c0_i32_0 = arith.constant 0 : i32
    %c0_i32_1 = arith.constant 0 : i32
    %c0_i32_2 = arith.constant 0 : i32
    return %c0_i32, %c0_i32_0, %c0_i32_1 : i32, i32, i32
  }
  func.func @transform_8(%arg0: i32) -> (i32, i32, i32) {
    %c0_i32 = arith.constant 0 : i32
    %c0_i32_0 = arith.constant 0 : i32
    %c0_i32_1 = arith.constant 0 : i32
    %c0_i32_2 = arith.constant 0 : i32
    return %c0_i32, %c0_i32_0, %c0_i32_1 : i32, i32, i32
  }
  func.func @transform_9(%arg0: i32) -> (i32, i32, i32) {
    %c0_i32 = arith.constant 0 : i32
    %c0_i32_0 = arith.constant 0 : i32
    %c0_i32_1 = arith.constant 0 : i32
    %c0_i32_2 = arith.constant 0 : i32
    return %c0_i32, %c0_i32_0, %c0_i32_1 : i32, i32, i32
  }
  func.func @transform_10(%arg0: i32) -> (i32, i32) {
    %c0_i32 = arith.constant 0 : i32
    %c0_i32_0 = arith.constant 0 : i32
    %c0_i32_1 = arith.constant 0 : i32
    return %c0_i32, %c0_i32_0 : i32, i32
  }
  func.func @transform_11(%arg0: i32) -> (i32, i32) {
    %c0_i32 = arith.constant 0 : i32
    %c0_i32_0 = arith.constant 0 : i32
    %c0_i32_1 = arith.constant 0 : i32
    return %c0_i32, %c0_i32_0 : i32, i32
  }
  func.func @transform_12(%arg0: i32) -> (i32, i32) {
    %c0_i32 = arith.constant 0 : i32
    %c0_i32_0 = arith.constant 0 : i32
    %c0_i32_1 = arith.constant 0 : i32
    return %c0_i32, %c0_i32_0 : i32, i32
  }
  func.func @transform_13(%arg0: i32) -> (i32, i32, i32) {
    %c0_i32 = arith.constant 0 : i32
    %c0_i32_0 = arith.constant 0 : i32
    %c0_i32_1 = arith.constant 0 : i32
    %c0_i32_2 = arith.constant 0 : i32
    return %c0_i32, %c0_i32_0, %c0_i32_1 : i32, i32, i32
  }
  func.func @transform_14(%arg0: i32) -> (i32, i32) {
    %c0_i32 = arith.constant 0 : i32
    %c0_i32_0 = arith.constant 0 : i32
    %c0_i32_1 = arith.constant 0 : i32
    return %c0_i32, %c0_i32_0 : i32, i32
  }
  func.func @transform_15(%arg0: i32) -> (i32, i32, i32) {
    %c0_i32 = arith.constant 0 : i32
    %c0_i32_0 = arith.constant 0 : i32
    %c0_i32_1 = arith.constant 0 : i32
    %c0_i32_2 = arith.constant 0 : i32
    return %c0_i32, %c0_i32_0, %c0_i32_1 : i32, i32, i32
  }
  func.func @transform_16(%arg0: i32) -> (i32, i32) {
    %c0_i32 = arith.constant 0 : i32
    %c0_i32_0 = arith.constant 0 : i32
    %c0_i32_1 = arith.constant 0 : i32
    return %c0_i32, %c0_i32_0 : i32, i32
  }
  func.func @transform_17(%arg0: i32) -> (i32, i32) {
    %c0_i32 = arith.constant 0 : i32
    %c0_i32_0 = arith.constant 0 : i32
    %c0_i32_1 = arith.constant 0 : i32
    return %c0_i32, %c0_i32_0 : i32, i32
  }
  func.func @transform_18(%arg0: i32) -> (i32, i32) {
    %c0_i32 = arith.constant 0 : i32
    %c0_i32_0 = arith.constant 0 : i32
    %c0_i32_1 = arith.constant 0 : i32
    return %c0_i32, %c0_i32_0 : i32, i32
  }
  func.func @transform_19(%arg0: i32) -> (i32, i32, i32) {
    %c0_i32 = arith.constant 0 : i32
    %c0_i32_0 = arith.constant 0 : i32
    %c0_i32_1 = arith.constant 0 : i32
    return %arg0, %c0_i32, %c0_i32_0 : i32, i32, i32
  }
}

module attributes {stable_mosaic.version = 11 : i64} {
  func.func @_fft_layer_kernel(%arg0: i32, %arg1: memref<1x16x32xbf16, #tpu.memory_space<vmem>>, %arg2: memref<1x1x16xf32, #tpu.memory_space<vmem>>, %arg3: memref<1x16x1xf32, #tpu.memory_space<vmem>>, %arg4: memref<2x32x16xbf16, #tpu.memory_space<vmem>>, %arg5: memref<2x1x16xf32, #tpu.memory_space<vmem>>, %arg6: memref<2x32x16xbf16, #tpu.memory_space<vmem>>, %arg7: memref<2x1x16xf32, #tpu.memory_space<vmem>>, %arg8: memref<2x32x16xbf16, #tpu.memory_space<vmem>>, %arg9: memref<2x1x16xf32, #tpu.memory_space<vmem>>, %arg10: memref<2x16x32xbf16, #tpu.memory_space<vmem>>, %arg11: memref<1x32xf32, #tpu.memory_space<vmem>>, %arg12: memref<1x32xf32, #tpu.memory_space<vmem>>, %arg13: memref<1x32xf32, #tpu.memory_space<vmem>>, %arg14: memref<9x32x64xbf16, #tpu.memory_space<vmem>>, %arg15: memref<1x64xf32, #tpu.memory_space<vmem>>, %arg16: memref<1x64x32xbf16, #tpu.memory_space<vmem>>, %arg17: memref<1x32xf32, #tpu.memory_space<vmem>>, %arg18: memref<1x32xf32, #tpu.memory_space<vmem>>, %arg19: memref<1x32xf32, #tpu.memory_space<vmem>>, %arg20: memref<1x16x32xbf16, #tpu.memory_space<vmem>>) attributes {dimension_semantics = [#tpu.dimension_semantics<parallel>], iteration_bounds = array<i64: 2>, scalar_prefetch = 0 : i64, scratch_operands = 0 : i64, tpu.core_type = #tpu.core_type<tc>, window_params = [{transform_indices = @transform_0, window_bounds = array<i64: 1, 16, 32>}, {transform_indices = @transform_1, window_bounds = array<i64: 1, 1, 16>}, {transform_indices = @transform_2, window_bounds = array<i64: 1, 16, 1>}, {pipeline_mode = #tpu.pipeline_mode<synchronous>, transform_indices = @transform_3, window_bounds = array<i64: 2, 32, 16>}, {pipeline_mode = #tpu.pipeline_mode<synchronous>, transform_indices = @transform_4, window_bounds = array<i64: 2, 1, 16>}, {pipeline_mode = #tpu.pipeline_mode<synchronous>, transform_indices = @transform_5, window_bounds = array<i64: 2, 32, 16>}, {pipeline_mode = #tpu.pipeline_mode<synchronous>, transform_indices = @transform_6, window_bounds = array<i64: 2, 1, 16>}, {pipeline_mode = #tpu.pipeline_mode<synchronous>, transform_indices = @transform_7, window_bounds = array<i64: 2, 32, 16>}, {pipeline_mode = #tpu.pipeline_mode<synchronous>, transform_indices = @transform_8, window_bounds = array<i64: 2, 1, 16>}, {pipeline_mode = #tpu.pipeline_mode<synchronous>, transform_indices = @transform_9, window_bounds = array<i64: 2, 16, 32>}, {pipeline_mode = #tpu.pipeline_mode<synchronous>, transform_indices = @transform_10, window_bounds = array<i64: 1, 32>}, {pipeline_mode = #tpu.pipeline_mode<synchronous>, transform_indices = @transform_11, window_bounds = array<i64: 1, 32>}, {pipeline_mode = #tpu.pipeline_mode<synchronous>, transform_indices = @transform_12, window_bounds = array<i64: 1, 32>}, {pipeline_mode = #tpu.pipeline_mode<synchronous>, transform_indices = @transform_13, window_bounds = array<i64: 9, 32, 64>}, {pipeline_mode = #tpu.pipeline_mode<synchronous>, transform_indices = @transform_14, window_bounds = array<i64: 1, 64>}, {pipeline_mode = #tpu.pipeline_mode<synchronous>, transform_indices = @transform_15, window_bounds = array<i64: 1, 64, 32>}, {pipeline_mode = #tpu.pipeline_mode<synchronous>, transform_indices = @transform_16, window_bounds = array<i64: 1, 32>}, {pipeline_mode = #tpu.pipeline_mode<synchronous>, transform_indices = @transform_17, window_bounds = array<i64: 1, 32>}, {pipeline_mode = #tpu.pipeline_mode<synchronous>, transform_indices = @transform_18, window_bounds = array<i64: 1, 32>}, {transform_indices = @transform_19, window_bounds = array<i64: 1, 16, 32>}]} {
    %c0 = arith.constant 0 : index
    %c0_0 = arith.constant 0 : index
    %c0_1 = arith.constant 0 : index
    %0 = vector.load %arg1[%c0, %c0_0, %c0_1] : memref<1x16x32xbf16, #tpu.memory_space<vmem>>, vector<1x16x32xbf16>
    %1 = vector.shape_cast %0 : vector<1x16x32xbf16> to vector<16x32xbf16>
    %2 = arith.extf %1 : vector<16x32xbf16> to vector<16x32xf32>
    %c0_2 = arith.constant 0 : index
    %c0_3 = arith.constant 0 : index
    %c0_4 = arith.constant 0 : index
    %3 = vector.load %arg2[%c0_2, %c0_3, %c0_4] : memref<1x1x16xf32, #tpu.memory_space<vmem>>, vector<1x1x16xf32>
    %4 = vector.shape_cast %3 : vector<1x1x16xf32> to vector<1x16xf32>
    %c0_5 = arith.constant 0 : index
    %c0_6 = arith.constant 0 : index
    %c0_7 = arith.constant 0 : index
    %5 = vector.load %arg3[%c0_5, %c0_6, %c0_7] : memref<1x16x1xf32, #tpu.memory_space<vmem>>, vector<1x16x1xf32>
    %6 = vector.shape_cast %5 : vector<1x16x1xf32> to vector<16x1xf32>
    %c0_8 = arith.constant 0 : index
    %c0_9 = arith.constant 0 : index
    %c0_10 = arith.constant 0 : index
    %7 = vector.load %arg4[%c0_8, %c0_9, %c0_10] : memref<2x32x16xbf16, #tpu.memory_space<vmem>>, vector<1x32x16xbf16>
    %8 = vector.shape_cast %7 : vector<1x32x16xbf16> to vector<32x16xbf16>
    %cst = arith.constant dense<0.000000e+00> : vector<16x16xf32>
    %9 = tpu.matmul %1, %8, %cst {dimension_numbers = #tpu.dot_dimension_numbers<[1], [0], [0], [1], [0, 0, 1, 1], [], []>} : vector<16x32xbf16>, vector<32x16xbf16>, vector<16x16xf32> -> vector<16x16xf32>
    %c0_11 = arith.constant 0 : index
    %c0_12 = arith.constant 0 : index
    %c0_13 = arith.constant 0 : index
    %10 = vector.load %arg5[%c0_11, %c0_12, %c0_13] : memref<2x1x16xf32, #tpu.memory_space<vmem>>, vector<1x1x16xf32>
    %11 = vector.shape_cast %10 : vector<1x1x16xf32> to vector<1x16xf32>
    %12 = vector.broadcast %11 : vector<1x16xf32> to vector<16x16xf32>
    %13 = arith.addf %9, %12 : vector<16x16xf32>
    %c0_14 = arith.constant 0 : index
    %c0_15 = arith.constant 0 : index
    %c0_16 = arith.constant 0 : index
    %14 = vector.load %arg6[%c0_14, %c0_15, %c0_16] : memref<2x32x16xbf16, #tpu.memory_space<vmem>>, vector<1x32x16xbf16>
    %15 = vector.shape_cast %14 : vector<1x32x16xbf16> to vector<32x16xbf16>
    %cst_17 = arith.constant dense<0.000000e+00> : vector<16x16xf32>
    %16 = tpu.matmul %1, %15, %cst_17 {dimension_numbers = #tpu.dot_dimension_numbers<[1], [0], [0], [1], [0, 0, 1, 1], [], []>} : vector<16x32xbf16>, vector<32x16xbf16>, vector<16x16xf32> -> vector<16x16xf32>
    %c0_18 = arith.constant 0 : index
    %c0_19 = arith.constant 0 : index
    %c0_20 = arith.constant 0 : index
    %17 = vector.load %arg7[%c0_18, %c0_19, %c0_20] : memref<2x1x16xf32, #tpu.memory_space<vmem>>, vector<1x1x16xf32>
    %18 = vector.shape_cast %17 : vector<1x1x16xf32> to vector<1x16xf32>
    %19 = vector.broadcast %18 : vector<1x16xf32> to vector<16x16xf32>
    %20 = arith.addf %16, %19 : vector<16x16xf32>
    %c0_21 = arith.constant 0 : index
    %c0_22 = arith.constant 0 : index
    %c0_23 = arith.constant 0 : index
    %21 = vector.load %arg8[%c0_21, %c0_22, %c0_23] : memref<2x32x16xbf16, #tpu.memory_space<vmem>>, vector<1x32x16xbf16>
    %22 = vector.shape_cast %21 : vector<1x32x16xbf16> to vector<32x16xbf16>
    %cst_24 = arith.constant dense<0.000000e+00> : vector<16x16xf32>
    %23 = tpu.matmul %1, %22, %cst_24 {dimension_numbers = #tpu.dot_dimension_numbers<[1], [0], [0], [1], [0, 0, 1, 1], [], []>} : vector<16x32xbf16>, vector<32x16xbf16>, vector<16x16xf32> -> vector<16x16xf32>
    %c0_25 = arith.constant 0 : index
    %c0_26 = arith.constant 0 : index
    %c0_27 = arith.constant 0 : index
    %24 = vector.load %arg9[%c0_25, %c0_26, %c0_27] : memref<2x1x16xf32, #tpu.memory_space<vmem>>, vector<1x1x16xf32>
    %25 = vector.shape_cast %24 : vector<1x1x16xf32> to vector<1x16xf32>
    %26 = vector.broadcast %25 : vector<1x16xf32> to vector<16x16xf32>
    %27 = arith.addf %23, %26 : vector<16x16xf32>
    %28 = tpu.transpose %20, [1, 0] : vector<16x16xf32> -> vector<16x16xf32>
    %cst_28 = arith.constant dense<0.000000e+00> : vector<16x16xf32>
    %29 = tpu.matmul %13, %28, %cst_28 {dimension_numbers = #tpu.dot_dimension_numbers<[1], [0], [0], [1], [0, 0, 1, 1], [], []>} : vector<16x16xf32>, vector<16x16xf32>, vector<16x16xf32> -> vector<16x16xf32>
    %cst_29 = arith.constant 2.500000e-01 : f32
    %30 = vector.broadcast %cst_29 : f32 to vector<16x16xf32>
    %31 = arith.mulf %29, %30 : vector<16x16xf32>
    %cst_30 = arith.constant 0.000000e+00 : f32
    %32 = vector.broadcast %cst_30 : f32 to vector<1x16xf32>
    %33 = arith.cmpf ogt, %4, %32 : vector<1x16xf32>
    %cst_31 = arith.constant -1.000000e+09 : f32
    %34 = vector.shape_cast %33 : vector<1x16xi1> to vector<1x16xi1>
    %35 = vector.broadcast %34 : vector<1x16xi1> to vector<16x16xi1>
    %36 = vector.broadcast %cst_31 : f32 to vector<16x16xf32>
    %37 = arith.select %35, %31, %36 : vector<16x16xi1>, vector<16x16xf32>
    %cst_32 = arith.constant dense<0xFF800000> : vector<16xf32>
    %38 = vector.multi_reduction <maximumf>, %37, %cst_32 [1] : vector<16x16xf32> to vector<16xf32>
    %39 = vector.shape_cast %38 : vector<16xf32> to vector<16x1xf32>
    %40 = vector.broadcast %39 : vector<16x1xf32> to vector<16x16xf32>
    %41 = arith.subf %37, %40 : vector<16x16xf32>
    %42 = math.exp %41 : vector<16x16xf32>
    %cst_33 = arith.constant dense<0.000000e+00> : vector<16xf32>
    %43 = vector.multi_reduction <add>, %42, %cst_33 [1] : vector<16x16xf32> to vector<16xf32>
    %44 = vector.shape_cast %43 : vector<16xf32> to vector<16x1xf32>
    %45 = tpu.reciprocal %44 {approx = true} : vector<16x1xf32> -> vector<16x1xf32>
    %46 = vector.broadcast %45 : vector<16x1xf32> to vector<16x16xf32>
    %47 = arith.mulf %42, %46 : vector<16x16xf32>
    %cst_34 = arith.constant dense<0.000000e+00> : vector<16x16xf32>
    %48 = tpu.matmul %47, %27, %cst_34 {dimension_numbers = #tpu.dot_dimension_numbers<[1], [0], [0], [1], [0, 0, 1, 1], [], []>} : vector<16x16xf32>, vector<16x16xf32>, vector<16x16xf32> -> vector<16x16xf32>
    %49 = arith.truncf %48 : vector<16x16xf32> to vector<16x16xbf16>
    %c0_35 = arith.constant 0 : index
    %c0_36 = arith.constant 0 : index
    %c0_37 = arith.constant 0 : index
    %50 = vector.load %arg10[%c0_35, %c0_36, %c0_37] : memref<2x16x32xbf16, #tpu.memory_space<vmem>>, vector<1x16x32xbf16>
    %51 = vector.shape_cast %50 : vector<1x16x32xbf16> to vector<16x32xbf16>
    %cst_38 = arith.constant dense<0.000000e+00> : vector<16x32xf32>
    %52 = tpu.matmul %49, %51, %cst_38 {dimension_numbers = #tpu.dot_dimension_numbers<[1], [0], [0], [1], [0, 0, 1, 1], [], []>} : vector<16x16xbf16>, vector<16x32xbf16>, vector<16x32xf32> -> vector<16x32xf32>
    %c1 = arith.constant 1 : index
    %c0_39 = arith.constant 0 : index
    %c0_40 = arith.constant 0 : index
    %53 = vector.load %arg4[%c1, %c0_39, %c0_40] : memref<2x32x16xbf16, #tpu.memory_space<vmem>>, vector<1x32x16xbf16>
    %54 = vector.shape_cast %53 : vector<1x32x16xbf16> to vector<32x16xbf16>
    %cst_41 = arith.constant dense<0.000000e+00> : vector<16x16xf32>
    %55 = tpu.matmul %1, %54, %cst_41 {dimension_numbers = #tpu.dot_dimension_numbers<[1], [0], [0], [1], [0, 0, 1, 1], [], []>} : vector<16x32xbf16>, vector<32x16xbf16>, vector<16x16xf32> -> vector<16x16xf32>
    %c1_42 = arith.constant 1 : index
    %c0_43 = arith.constant 0 : index
    %c0_44 = arith.constant 0 : index
    %56 = vector.load %arg5[%c1_42, %c0_43, %c0_44] : memref<2x1x16xf32, #tpu.memory_space<vmem>>, vector<1x1x16xf32>
    %57 = vector.shape_cast %56 : vector<1x1x16xf32> to vector<1x16xf32>
    %58 = vector.broadcast %57 : vector<1x16xf32> to vector<16x16xf32>
    %59 = arith.addf %55, %58 : vector<16x16xf32>
    %c1_45 = arith.constant 1 : index
    %c0_46 = arith.constant 0 : index
    %c0_47 = arith.constant 0 : index
    %60 = vector.load %arg6[%c1_45, %c0_46, %c0_47] : memref<2x32x16xbf16, #tpu.memory_space<vmem>>, vector<1x32x16xbf16>
    %61 = vector.shape_cast %60 : vector<1x32x16xbf16> to vector<32x16xbf16>
    %cst_48 = arith.constant dense<0.000000e+00> : vector<16x16xf32>
    %62 = tpu.matmul %1, %61, %cst_48 {dimension_numbers = #tpu.dot_dimension_numbers<[1], [0], [0], [1], [0, 0, 1, 1], [], []>} : vector<16x32xbf16>, vector<32x16xbf16>, vector<16x16xf32> -> vector<16x16xf32>
    %c1_49 = arith.constant 1 : index
    %c0_50 = arith.constant 0 : index
    %c0_51 = arith.constant 0 : index
    %63 = vector.load %arg7[%c1_49, %c0_50, %c0_51] : memref<2x1x16xf32, #tpu.memory_space<vmem>>, vector<1x1x16xf32>
    %64 = vector.shape_cast %63 : vector<1x1x16xf32> to vector<1x16xf32>
    %65 = vector.broadcast %64 : vector<1x16xf32> to vector<16x16xf32>
    %66 = arith.addf %62, %65 : vector<16x16xf32>
    %c1_52 = arith.constant 1 : index
    %c0_53 = arith.constant 0 : index
    %c0_54 = arith.constant 0 : index
    %67 = vector.load %arg8[%c1_52, %c0_53, %c0_54] : memref<2x32x16xbf16, #tpu.memory_space<vmem>>, vector<1x32x16xbf16>
    %68 = vector.shape_cast %67 : vector<1x32x16xbf16> to vector<32x16xbf16>
    %cst_55 = arith.constant dense<0.000000e+00> : vector<16x16xf32>
    %69 = tpu.matmul %1, %68, %cst_55 {dimension_numbers = #tpu.dot_dimension_numbers<[1], [0], [0], [1], [0, 0, 1, 1], [], []>} : vector<16x32xbf16>, vector<32x16xbf16>, vector<16x16xf32> -> vector<16x16xf32>
    %c1_56 = arith.constant 1 : index
    %c0_57 = arith.constant 0 : index
    %c0_58 = arith.constant 0 : index
    %70 = vector.load %arg9[%c1_56, %c0_57, %c0_58] : memref<2x1x16xf32, #tpu.memory_space<vmem>>, vector<1x1x16xf32>
    %71 = vector.shape_cast %70 : vector<1x1x16xf32> to vector<1x16xf32>
    %72 = vector.broadcast %71 : vector<1x16xf32> to vector<16x16xf32>
    %73 = arith.addf %69, %72 : vector<16x16xf32>
    %74 = tpu.transpose %66, [1, 0] : vector<16x16xf32> -> vector<16x16xf32>
    %cst_59 = arith.constant dense<0.000000e+00> : vector<16x16xf32>
    %75 = tpu.matmul %59, %74, %cst_59 {dimension_numbers = #tpu.dot_dimension_numbers<[1], [0], [0], [1], [0, 0, 1, 1], [], []>} : vector<16x16xf32>, vector<16x16xf32>, vector<16x16xf32> -> vector<16x16xf32>
    %cst_60 = arith.constant 2.500000e-01 : f32
    %76 = vector.broadcast %cst_60 : f32 to vector<16x16xf32>
    %77 = arith.mulf %75, %76 : vector<16x16xf32>
    %cst_61 = arith.constant 0.000000e+00 : f32
    %78 = vector.broadcast %cst_61 : f32 to vector<1x16xf32>
    %79 = arith.cmpf ogt, %4, %78 : vector<1x16xf32>
    %cst_62 = arith.constant -1.000000e+09 : f32
    %80 = vector.shape_cast %79 : vector<1x16xi1> to vector<1x16xi1>
    %81 = vector.broadcast %80 : vector<1x16xi1> to vector<16x16xi1>
    %82 = vector.broadcast %cst_62 : f32 to vector<16x16xf32>
    %83 = arith.select %81, %77, %82 : vector<16x16xi1>, vector<16x16xf32>
    %cst_63 = arith.constant dense<0xFF800000> : vector<16xf32>
    %84 = vector.multi_reduction <maximumf>, %83, %cst_63 [1] : vector<16x16xf32> to vector<16xf32>
    %85 = vector.shape_cast %84 : vector<16xf32> to vector<16x1xf32>
    %86 = vector.broadcast %85 : vector<16x1xf32> to vector<16x16xf32>
    %87 = arith.subf %83, %86 : vector<16x16xf32>
    %88 = math.exp %87 : vector<16x16xf32>
    %cst_64 = arith.constant dense<0.000000e+00> : vector<16xf32>
    %89 = vector.multi_reduction <add>, %88, %cst_64 [1] : vector<16x16xf32> to vector<16xf32>
    %90 = vector.shape_cast %89 : vector<16xf32> to vector<16x1xf32>
    %91 = tpu.reciprocal %90 {approx = true} : vector<16x1xf32> -> vector<16x1xf32>
    %92 = vector.broadcast %91 : vector<16x1xf32> to vector<16x16xf32>
    %93 = arith.mulf %88, %92 : vector<16x16xf32>
    %cst_65 = arith.constant dense<0.000000e+00> : vector<16x16xf32>
    %94 = tpu.matmul %93, %73, %cst_65 {dimension_numbers = #tpu.dot_dimension_numbers<[1], [0], [0], [1], [0, 0, 1, 1], [], []>} : vector<16x16xf32>, vector<16x16xf32>, vector<16x16xf32> -> vector<16x16xf32>
    %95 = arith.truncf %94 : vector<16x16xf32> to vector<16x16xbf16>
    %c1_66 = arith.constant 1 : index
    %c0_67 = arith.constant 0 : index
    %c0_68 = arith.constant 0 : index
    %96 = vector.load %arg10[%c1_66, %c0_67, %c0_68] : memref<2x16x32xbf16, #tpu.memory_space<vmem>>, vector<1x16x32xbf16>
    %97 = vector.shape_cast %96 : vector<1x16x32xbf16> to vector<16x32xbf16>
    %cst_69 = arith.constant dense<0.000000e+00> : vector<16x32xf32>
    %98 = tpu.matmul %95, %97, %cst_69 {dimension_numbers = #tpu.dot_dimension_numbers<[1], [0], [0], [1], [0, 0, 1, 1], [], []>} : vector<16x16xbf16>, vector<16x32xbf16>, vector<16x32xf32> -> vector<16x32xf32>
    %99 = arith.addf %52, %98 : vector<16x32xf32>
    %c0_70 = arith.constant 0 : index
    %c0_71 = arith.constant 0 : index
    %100 = vector.load %arg11[%c0_70, %c0_71] : memref<1x32xf32, #tpu.memory_space<vmem>>, vector<1x32xf32>
    %101 = vector.broadcast %100 : vector<1x32xf32> to vector<16x32xf32>
    %102 = arith.addf %99, %101 : vector<16x32xf32>
    %103 = arith.addf %102, %2 : vector<16x32xf32>
    %c0_72 = arith.constant 0 : index
    %c0_73 = arith.constant 0 : index
    %104 = vector.load %arg12[%c0_72, %c0_73] : memref<1x32xf32, #tpu.memory_space<vmem>>, vector<1x32xf32>
    %c0_74 = arith.constant 0 : index
    %c0_75 = arith.constant 0 : index
    %105 = vector.load %arg13[%c0_74, %c0_75] : memref<1x32xf32, #tpu.memory_space<vmem>>, vector<1x32xf32>
    %cst_76 = arith.constant dense<0.000000e+00> : vector<16xf32>
    %106 = vector.multi_reduction <add>, %103, %cst_76 [1] : vector<16x32xf32> to vector<16xf32>
    %107 = vector.shape_cast %106 : vector<16xf32> to vector<16x1xf32>
    %cst_77 = arith.constant 3.200000e+01 : f32
    %108 = vector.broadcast %cst_77 : f32 to vector<16x1xf32>
    %109 = arith.divf %107, %108 : vector<16x1xf32>
    %110 = vector.broadcast %109 : vector<16x1xf32> to vector<16x32xf32>
    %111 = arith.subf %103, %110 : vector<16x32xf32>
    %112 = arith.mulf %111, %111 : vector<16x32xf32>
    %cst_78 = arith.constant dense<0.000000e+00> : vector<16xf32>
    %113 = vector.multi_reduction <add>, %112, %cst_78 [1] : vector<16x32xf32> to vector<16xf32>
    %114 = vector.shape_cast %113 : vector<16xf32> to vector<16x1xf32>
    %cst_79 = arith.constant 3.200000e+01 : f32
    %115 = vector.broadcast %cst_79 : f32 to vector<16x1xf32>
    %116 = arith.divf %114, %115 : vector<16x1xf32>
    %117 = vector.broadcast %109 : vector<16x1xf32> to vector<16x32xf32>
    %118 = arith.subf %103, %117 : vector<16x32xf32>
    %cst_80 = arith.constant 9.99999974E-6 : f32
    %119 = vector.broadcast %cst_80 : f32 to vector<16x1xf32>
    %120 = arith.addf %116, %119 : vector<16x1xf32>
    %121 = math.rsqrt %120 : vector<16x1xf32>
    %122 = vector.broadcast %121 : vector<16x1xf32> to vector<16x32xf32>
    %123 = arith.mulf %118, %122 : vector<16x32xf32>
    %124 = vector.broadcast %104 : vector<1x32xf32> to vector<16x32xf32>
    %125 = arith.mulf %123, %124 : vector<16x32xf32>
    %126 = vector.broadcast %105 : vector<1x32xf32> to vector<16x32xf32>
    %127 = arith.addf %125, %126 : vector<16x32xf32>
    %128 = vector.broadcast %6 : vector<16x1xf32> to vector<16x32xf32>
    %129 = arith.mulf %127, %128 : vector<16x32xf32>
    %c0_81 = arith.constant 0 : index
    %c0_82 = arith.constant 0 : index
    %130 = vector.load %arg15[%c0_81, %c0_82] : memref<1x64xf32, #tpu.memory_space<vmem>>, vector<1x64xf32>
    %131 = tpu.iota {dimensions = array<i32: 0>} : vector<16x1xi32>
    %c4_i32 = arith.constant 4 : i32
    %132 = tpu.dynamic_rotate %129 by %c4_i32 dim 0 : vector<16x32xf32>, i32 -> vector<16x32xf32>
    %c-4_i32 = arith.constant -4 : i32
    %133 = vector.broadcast %c-4_i32 : i32 to vector<16x1xi32>
    %134 = arith.addi %131, %133 : vector<16x1xi32>
    %c0_i32 = arith.constant 0 : i32
    %135 = vector.broadcast %c0_i32 : i32 to vector<16x1xi32>
    %136 = arith.cmpi sge, %134, %135 : vector<16x1xi32>
    %c-4_i32_83 = arith.constant -4 : i32
    %137 = vector.broadcast %c-4_i32_83 : i32 to vector<16x1xi32>
    %138 = arith.addi %131, %137 : vector<16x1xi32>
    %c16_i32 = arith.constant 16 : i32
    %139 = vector.broadcast %c16_i32 : i32 to vector<16x1xi32>
    %140 = arith.cmpi slt, %138, %139 : vector<16x1xi32>
    %141 = arith.andi %136, %140 : vector<16x1xi1>
    %cst_84 = arith.constant 0.000000e+00 : f32
    %142 = vector.shape_cast %141 : vector<16x1xi1> to vector<16x1xi1>
    %143 = vector.broadcast %142 : vector<16x1xi1> to vector<16x32xi1>
    %144 = vector.broadcast %cst_84 : f32 to vector<16x32xf32>
    %145 = arith.select %143, %132, %144 : vector<16x32xi1>, vector<16x32xf32>
    %146 = arith.truncf %145 : vector<16x32xf32> to vector<16x32xbf16>
    %c0_85 = arith.constant 0 : index
    %c0_86 = arith.constant 0 : index
    %c0_87 = arith.constant 0 : index
    %147 = vector.load %arg14[%c0_85, %c0_86, %c0_87] : memref<9x32x64xbf16, #tpu.memory_space<vmem>>, vector<1x32x64xbf16>
    %148 = vector.shape_cast %147 : vector<1x32x64xbf16> to vector<32x64xbf16>
    %cst_88 = arith.constant dense<0.000000e+00> : vector<16x64xf32>
    %149 = tpu.matmul %146, %148, %cst_88 {dimension_numbers = #tpu.dot_dimension_numbers<[1], [0], [0], [1], [0, 0, 1, 1], [], []>} : vector<16x32xbf16>, vector<32x64xbf16>, vector<16x64xf32> -> vector<16x64xf32>
    %c3_i32 = arith.constant 3 : i32
    %150 = tpu.dynamic_rotate %129 by %c3_i32 dim 0 : vector<16x32xf32>, i32 -> vector<16x32xf32>
    %c-3_i32 = arith.constant -3 : i32
    %151 = vector.broadcast %c-3_i32 : i32 to vector<16x1xi32>
    %152 = arith.addi %131, %151 : vector<16x1xi32>
    %c0_i32_89 = arith.constant 0 : i32
    %153 = vector.broadcast %c0_i32_89 : i32 to vector<16x1xi32>
    %154 = arith.cmpi sge, %152, %153 : vector<16x1xi32>
    %c-3_i32_90 = arith.constant -3 : i32
    %155 = vector.broadcast %c-3_i32_90 : i32 to vector<16x1xi32>
    %156 = arith.addi %131, %155 : vector<16x1xi32>
    %c16_i32_91 = arith.constant 16 : i32
    %157 = vector.broadcast %c16_i32_91 : i32 to vector<16x1xi32>
    %158 = arith.cmpi slt, %156, %157 : vector<16x1xi32>
    %159 = arith.andi %154, %158 : vector<16x1xi1>
    %cst_92 = arith.constant 0.000000e+00 : f32
    %160 = vector.shape_cast %159 : vector<16x1xi1> to vector<16x1xi1>
    %161 = vector.broadcast %160 : vector<16x1xi1> to vector<16x32xi1>
    %162 = vector.broadcast %cst_92 : f32 to vector<16x32xf32>
    %163 = arith.select %161, %150, %162 : vector<16x32xi1>, vector<16x32xf32>
    %164 = arith.truncf %163 : vector<16x32xf32> to vector<16x32xbf16>
    %c1_93 = arith.constant 1 : index
    %c0_94 = arith.constant 0 : index
    %c0_95 = arith.constant 0 : index
    %165 = vector.load %arg14[%c1_93, %c0_94, %c0_95] : memref<9x32x64xbf16, #tpu.memory_space<vmem>>, vector<1x32x64xbf16>
    %166 = vector.shape_cast %165 : vector<1x32x64xbf16> to vector<32x64xbf16>
    %cst_96 = arith.constant dense<0.000000e+00> : vector<16x64xf32>
    %167 = tpu.matmul %164, %166, %cst_96 {dimension_numbers = #tpu.dot_dimension_numbers<[1], [0], [0], [1], [0, 0, 1, 1], [], []>} : vector<16x32xbf16>, vector<32x64xbf16>, vector<16x64xf32> -> vector<16x64xf32>
    %168 = arith.addf %149, %167 : vector<16x64xf32>
    %c2_i32 = arith.constant 2 : i32
    %169 = tpu.dynamic_rotate %129 by %c2_i32 dim 0 : vector<16x32xf32>, i32 -> vector<16x32xf32>
    %c-2_i32 = arith.constant -2 : i32
    %170 = vector.broadcast %c-2_i32 : i32 to vector<16x1xi32>
    %171 = arith.addi %131, %170 : vector<16x1xi32>
    %c0_i32_97 = arith.constant 0 : i32
    %172 = vector.broadcast %c0_i32_97 : i32 to vector<16x1xi32>
    %173 = arith.cmpi sge, %171, %172 : vector<16x1xi32>
    %c-2_i32_98 = arith.constant -2 : i32
    %174 = vector.broadcast %c-2_i32_98 : i32 to vector<16x1xi32>
    %175 = arith.addi %131, %174 : vector<16x1xi32>
    %c16_i32_99 = arith.constant 16 : i32
    %176 = vector.broadcast %c16_i32_99 : i32 to vector<16x1xi32>
    %177 = arith.cmpi slt, %175, %176 : vector<16x1xi32>
    %178 = arith.andi %173, %177 : vector<16x1xi1>
    %cst_100 = arith.constant 0.000000e+00 : f32
    %179 = vector.shape_cast %178 : vector<16x1xi1> to vector<16x1xi1>
    %180 = vector.broadcast %179 : vector<16x1xi1> to vector<16x32xi1>
    %181 = vector.broadcast %cst_100 : f32 to vector<16x32xf32>
    %182 = arith.select %180, %169, %181 : vector<16x32xi1>, vector<16x32xf32>
    %183 = arith.truncf %182 : vector<16x32xf32> to vector<16x32xbf16>
    %c2 = arith.constant 2 : index
    %c0_101 = arith.constant 0 : index
    %c0_102 = arith.constant 0 : index
    %184 = vector.load %arg14[%c2, %c0_101, %c0_102] : memref<9x32x64xbf16, #tpu.memory_space<vmem>>, vector<1x32x64xbf16>
    %185 = vector.shape_cast %184 : vector<1x32x64xbf16> to vector<32x64xbf16>
    %cst_103 = arith.constant dense<0.000000e+00> : vector<16x64xf32>
    %186 = tpu.matmul %183, %185, %cst_103 {dimension_numbers = #tpu.dot_dimension_numbers<[1], [0], [0], [1], [0, 0, 1, 1], [], []>} : vector<16x32xbf16>, vector<32x64xbf16>, vector<16x64xf32> -> vector<16x64xf32>
    %187 = arith.addf %168, %186 : vector<16x64xf32>
    %c1_i32 = arith.constant 1 : i32
    %188 = tpu.dynamic_rotate %129 by %c1_i32 dim 0 : vector<16x32xf32>, i32 -> vector<16x32xf32>
    %c-1_i32 = arith.constant -1 : i32
    %189 = vector.broadcast %c-1_i32 : i32 to vector<16x1xi32>
    %190 = arith.addi %131, %189 : vector<16x1xi32>
    %c0_i32_104 = arith.constant 0 : i32
    %191 = vector.broadcast %c0_i32_104 : i32 to vector<16x1xi32>
    %192 = arith.cmpi sge, %190, %191 : vector<16x1xi32>
    %c-1_i32_105 = arith.constant -1 : i32
    %193 = vector.broadcast %c-1_i32_105 : i32 to vector<16x1xi32>
    %194 = arith.addi %131, %193 : vector<16x1xi32>
    %c16_i32_106 = arith.constant 16 : i32
    %195 = vector.broadcast %c16_i32_106 : i32 to vector<16x1xi32>
    %196 = arith.cmpi slt, %194, %195 : vector<16x1xi32>
    %197 = arith.andi %192, %196 : vector<16x1xi1>
    %cst_107 = arith.constant 0.000000e+00 : f32
    %198 = vector.shape_cast %197 : vector<16x1xi1> to vector<16x1xi1>
    %199 = vector.broadcast %198 : vector<16x1xi1> to vector<16x32xi1>
    %200 = vector.broadcast %cst_107 : f32 to vector<16x32xf32>
    %201 = arith.select %199, %188, %200 : vector<16x32xi1>, vector<16x32xf32>
    %202 = arith.truncf %201 : vector<16x32xf32> to vector<16x32xbf16>
    %c3 = arith.constant 3 : index
    %c0_108 = arith.constant 0 : index
    %c0_109 = arith.constant 0 : index
    %203 = vector.load %arg14[%c3, %c0_108, %c0_109] : memref<9x32x64xbf16, #tpu.memory_space<vmem>>, vector<1x32x64xbf16>
    %204 = vector.shape_cast %203 : vector<1x32x64xbf16> to vector<32x64xbf16>
    %cst_110 = arith.constant dense<0.000000e+00> : vector<16x64xf32>
    %205 = tpu.matmul %202, %204, %cst_110 {dimension_numbers = #tpu.dot_dimension_numbers<[1], [0], [0], [1], [0, 0, 1, 1], [], []>} : vector<16x32xbf16>, vector<32x64xbf16>, vector<16x64xf32> -> vector<16x64xf32>
    %206 = arith.addf %187, %205 : vector<16x64xf32>
    %207 = arith.truncf %129 : vector<16x32xf32> to vector<16x32xbf16>
    %c4 = arith.constant 4 : index
    %c0_111 = arith.constant 0 : index
    %c0_112 = arith.constant 0 : index
    %208 = vector.load %arg14[%c4, %c0_111, %c0_112] : memref<9x32x64xbf16, #tpu.memory_space<vmem>>, vector<1x32x64xbf16>
    %209 = vector.shape_cast %208 : vector<1x32x64xbf16> to vector<32x64xbf16>
    %cst_113 = arith.constant dense<0.000000e+00> : vector<16x64xf32>
    %210 = tpu.matmul %207, %209, %cst_113 {dimension_numbers = #tpu.dot_dimension_numbers<[1], [0], [0], [1], [0, 0, 1, 1], [], []>} : vector<16x32xbf16>, vector<32x64xbf16>, vector<16x64xf32> -> vector<16x64xf32>
    %211 = arith.addf %206, %210 : vector<16x64xf32>
    %c15_i32 = arith.constant 15 : i32
    %212 = tpu.dynamic_rotate %129 by %c15_i32 dim 0 : vector<16x32xf32>, i32 -> vector<16x32xf32>
    %c1_i32_114 = arith.constant 1 : i32
    %213 = vector.broadcast %c1_i32_114 : i32 to vector<16x1xi32>
    %214 = arith.addi %131, %213 : vector<16x1xi32>
    %c0_i32_115 = arith.constant 0 : i32
    %215 = vector.broadcast %c0_i32_115 : i32 to vector<16x1xi32>
    %216 = arith.cmpi sge, %214, %215 : vector<16x1xi32>
    %c1_i32_116 = arith.constant 1 : i32
    %217 = vector.broadcast %c1_i32_116 : i32 to vector<16x1xi32>
    %218 = arith.addi %131, %217 : vector<16x1xi32>
    %c16_i32_117 = arith.constant 16 : i32
    %219 = vector.broadcast %c16_i32_117 : i32 to vector<16x1xi32>
    %220 = arith.cmpi slt, %218, %219 : vector<16x1xi32>
    %221 = arith.andi %216, %220 : vector<16x1xi1>
    %cst_118 = arith.constant 0.000000e+00 : f32
    %222 = vector.shape_cast %221 : vector<16x1xi1> to vector<16x1xi1>
    %223 = vector.broadcast %222 : vector<16x1xi1> to vector<16x32xi1>
    %224 = vector.broadcast %cst_118 : f32 to vector<16x32xf32>
    %225 = arith.select %223, %212, %224 : vector<16x32xi1>, vector<16x32xf32>
    %226 = arith.truncf %225 : vector<16x32xf32> to vector<16x32xbf16>
    %c5 = arith.constant 5 : index
    %c0_119 = arith.constant 0 : index
    %c0_120 = arith.constant 0 : index
    %227 = vector.load %arg14[%c5, %c0_119, %c0_120] : memref<9x32x64xbf16, #tpu.memory_space<vmem>>, vector<1x32x64xbf16>
    %228 = vector.shape_cast %227 : vector<1x32x64xbf16> to vector<32x64xbf16>
    %cst_121 = arith.constant dense<0.000000e+00> : vector<16x64xf32>
    %229 = tpu.matmul %226, %228, %cst_121 {dimension_numbers = #tpu.dot_dimension_numbers<[1], [0], [0], [1], [0, 0, 1, 1], [], []>} : vector<16x32xbf16>, vector<32x64xbf16>, vector<16x64xf32> -> vector<16x64xf32>
    %230 = arith.addf %211, %229 : vector<16x64xf32>
    %c14_i32 = arith.constant 14 : i32
    %231 = tpu.dynamic_rotate %129 by %c14_i32 dim 0 : vector<16x32xf32>, i32 -> vector<16x32xf32>
    %c2_i32_122 = arith.constant 2 : i32
    %232 = vector.broadcast %c2_i32_122 : i32 to vector<16x1xi32>
    %233 = arith.addi %131, %232 : vector<16x1xi32>
    %c0_i32_123 = arith.constant 0 : i32
    %234 = vector.broadcast %c0_i32_123 : i32 to vector<16x1xi32>
    %235 = arith.cmpi sge, %233, %234 : vector<16x1xi32>
    %c2_i32_124 = arith.constant 2 : i32
    %236 = vector.broadcast %c2_i32_124 : i32 to vector<16x1xi32>
    %237 = arith.addi %131, %236 : vector<16x1xi32>
    %c16_i32_125 = arith.constant 16 : i32
    %238 = vector.broadcast %c16_i32_125 : i32 to vector<16x1xi32>
    %239 = arith.cmpi slt, %237, %238 : vector<16x1xi32>
    %240 = arith.andi %235, %239 : vector<16x1xi1>
    %cst_126 = arith.constant 0.000000e+00 : f32
    %241 = vector.shape_cast %240 : vector<16x1xi1> to vector<16x1xi1>
    %242 = vector.broadcast %241 : vector<16x1xi1> to vector<16x32xi1>
    %243 = vector.broadcast %cst_126 : f32 to vector<16x32xf32>
    %244 = arith.select %242, %231, %243 : vector<16x32xi1>, vector<16x32xf32>
    %245 = arith.truncf %244 : vector<16x32xf32> to vector<16x32xbf16>
    %c6 = arith.constant 6 : index
    %c0_127 = arith.constant 0 : index
    %c0_128 = arith.constant 0 : index
    %246 = vector.load %arg14[%c6, %c0_127, %c0_128] : memref<9x32x64xbf16, #tpu.memory_space<vmem>>, vector<1x32x64xbf16>
    %247 = vector.shape_cast %246 : vector<1x32x64xbf16> to vector<32x64xbf16>
    %cst_129 = arith.constant dense<0.000000e+00> : vector<16x64xf32>
    %248 = tpu.matmul %245, %247, %cst_129 {dimension_numbers = #tpu.dot_dimension_numbers<[1], [0], [0], [1], [0, 0, 1, 1], [], []>} : vector<16x32xbf16>, vector<32x64xbf16>, vector<16x64xf32> -> vector<16x64xf32>
    %249 = arith.addf %230, %248 : vector<16x64xf32>
    %c13_i32 = arith.constant 13 : i32
    %250 = tpu.dynamic_rotate %129 by %c13_i32 dim 0 : vector<16x32xf32>, i32 -> vector<16x32xf32>
    %c3_i32_130 = arith.constant 3 : i32
    %251 = vector.broadcast %c3_i32_130 : i32 to vector<16x1xi32>
    %252 = arith.addi %131, %251 : vector<16x1xi32>
    %c0_i32_131 = arith.constant 0 : i32
    %253 = vector.broadcast %c0_i32_131 : i32 to vector<16x1xi32>
    %254 = arith.cmpi sge, %252, %253 : vector<16x1xi32>
    %c3_i32_132 = arith.constant 3 : i32
    %255 = vector.broadcast %c3_i32_132 : i32 to vector<16x1xi32>
    %256 = arith.addi %131, %255 : vector<16x1xi32>
    %c16_i32_133 = arith.constant 16 : i32
    %257 = vector.broadcast %c16_i32_133 : i32 to vector<16x1xi32>
    %258 = arith.cmpi slt, %256, %257 : vector<16x1xi32>
    %259 = arith.andi %254, %258 : vector<16x1xi1>
    %cst_134 = arith.constant 0.000000e+00 : f32
    %260 = vector.shape_cast %259 : vector<16x1xi1> to vector<16x1xi1>
    %261 = vector.broadcast %260 : vector<16x1xi1> to vector<16x32xi1>
    %262 = vector.broadcast %cst_134 : f32 to vector<16x32xf32>
    %263 = arith.select %261, %250, %262 : vector<16x32xi1>, vector<16x32xf32>
    %264 = arith.truncf %263 : vector<16x32xf32> to vector<16x32xbf16>
    %c7 = arith.constant 7 : index
    %c0_135 = arith.constant 0 : index
    %c0_136 = arith.constant 0 : index
    %265 = vector.load %arg14[%c7, %c0_135, %c0_136] : memref<9x32x64xbf16, #tpu.memory_space<vmem>>, vector<1x32x64xbf16>
    %266 = vector.shape_cast %265 : vector<1x32x64xbf16> to vector<32x64xbf16>
    %cst_137 = arith.constant dense<0.000000e+00> : vector<16x64xf32>
    %267 = tpu.matmul %264, %266, %cst_137 {dimension_numbers = #tpu.dot_dimension_numbers<[1], [0], [0], [1], [0, 0, 1, 1], [], []>} : vector<16x32xbf16>, vector<32x64xbf16>, vector<16x64xf32> -> vector<16x64xf32>
    %268 = arith.addf %249, %267 : vector<16x64xf32>
    %c12_i32 = arith.constant 12 : i32
    %269 = tpu.dynamic_rotate %129 by %c12_i32 dim 0 : vector<16x32xf32>, i32 -> vector<16x32xf32>
    %c4_i32_138 = arith.constant 4 : i32
    %270 = vector.broadcast %c4_i32_138 : i32 to vector<16x1xi32>
    %271 = arith.addi %131, %270 : vector<16x1xi32>
    %c0_i32_139 = arith.constant 0 : i32
    %272 = vector.broadcast %c0_i32_139 : i32 to vector<16x1xi32>
    %273 = arith.cmpi sge, %271, %272 : vector<16x1xi32>
    %c4_i32_140 = arith.constant 4 : i32
    %274 = vector.broadcast %c4_i32_140 : i32 to vector<16x1xi32>
    %275 = arith.addi %131, %274 : vector<16x1xi32>
    %c16_i32_141 = arith.constant 16 : i32
    %276 = vector.broadcast %c16_i32_141 : i32 to vector<16x1xi32>
    %277 = arith.cmpi slt, %275, %276 : vector<16x1xi32>
    %278 = arith.andi %273, %277 : vector<16x1xi1>
    %cst_142 = arith.constant 0.000000e+00 : f32
    %279 = vector.shape_cast %278 : vector<16x1xi1> to vector<16x1xi1>
    %280 = vector.broadcast %279 : vector<16x1xi1> to vector<16x32xi1>
    %281 = vector.broadcast %cst_142 : f32 to vector<16x32xf32>
    %282 = arith.select %280, %269, %281 : vector<16x32xi1>, vector<16x32xf32>
    %283 = arith.truncf %282 : vector<16x32xf32> to vector<16x32xbf16>
    %c8 = arith.constant 8 : index
    %c0_143 = arith.constant 0 : index
    %c0_144 = arith.constant 0 : index
    %284 = vector.load %arg14[%c8, %c0_143, %c0_144] : memref<9x32x64xbf16, #tpu.memory_space<vmem>>, vector<1x32x64xbf16>
    %285 = vector.shape_cast %284 : vector<1x32x64xbf16> to vector<32x64xbf16>
    %cst_145 = arith.constant dense<0.000000e+00> : vector<16x64xf32>
    %286 = tpu.matmul %283, %285, %cst_145 {dimension_numbers = #tpu.dot_dimension_numbers<[1], [0], [0], [1], [0, 0, 1, 1], [], []>} : vector<16x32xbf16>, vector<32x64xbf16>, vector<16x64xf32> -> vector<16x64xf32>
    %287 = arith.addf %268, %286 : vector<16x64xf32>
    %288 = vector.broadcast %130 : vector<1x64xf32> to vector<16x64xf32>
    %289 = arith.addf %287, %288 : vector<16x64xf32>
    %cst_146 = arith.constant 0.000000e+00 : f32
    %290 = vector.broadcast %cst_146 : f32 to vector<16x64xf32>
    %291 = arith.maximumf %289, %290 : vector<16x64xf32>
    %c0_147 = arith.constant 0 : index
    %c0_148 = arith.constant 0 : index
    %292 = vector.load %arg17[%c0_147, %c0_148] : memref<1x32xf32, #tpu.memory_space<vmem>>, vector<1x32xf32>
    %293 = arith.truncf %291 : vector<16x64xf32> to vector<16x64xbf16>
    %c0_149 = arith.constant 0 : index
    %c0_150 = arith.constant 0 : index
    %c0_151 = arith.constant 0 : index
    %294 = vector.load %arg16[%c0_149, %c0_150, %c0_151] : memref<1x64x32xbf16, #tpu.memory_space<vmem>>, vector<1x64x32xbf16>
    %295 = vector.shape_cast %294 : vector<1x64x32xbf16> to vector<64x32xbf16>
    %cst_152 = arith.constant dense<0.000000e+00> : vector<16x32xf32>
    %296 = tpu.matmul %293, %295, %cst_152 {dimension_numbers = #tpu.dot_dimension_numbers<[1], [0], [0], [1], [0, 0, 1, 1], [], []>} : vector<16x64xbf16>, vector<64x32xbf16>, vector<16x32xf32> -> vector<16x32xf32>
    %297 = vector.broadcast %292 : vector<1x32xf32> to vector<16x32xf32>
    %298 = arith.addf %296, %297 : vector<16x32xf32>
    %299 = arith.addf %298, %129 : vector<16x32xf32>
    %c0_153 = arith.constant 0 : index
    %c0_154 = arith.constant 0 : index
    %300 = vector.load %arg18[%c0_153, %c0_154] : memref<1x32xf32, #tpu.memory_space<vmem>>, vector<1x32xf32>
    %c0_155 = arith.constant 0 : index
    %c0_156 = arith.constant 0 : index
    %301 = vector.load %arg19[%c0_155, %c0_156] : memref<1x32xf32, #tpu.memory_space<vmem>>, vector<1x32xf32>
    %cst_157 = arith.constant dense<0.000000e+00> : vector<16xf32>
    %302 = vector.multi_reduction <add>, %299, %cst_157 [1] : vector<16x32xf32> to vector<16xf32>
    %303 = vector.shape_cast %302 : vector<16xf32> to vector<16x1xf32>
    %cst_158 = arith.constant 3.200000e+01 : f32
    %304 = vector.broadcast %cst_158 : f32 to vector<16x1xf32>
    %305 = arith.divf %303, %304 : vector<16x1xf32>
    %306 = vector.broadcast %305 : vector<16x1xf32> to vector<16x32xf32>
    %307 = arith.subf %299, %306 : vector<16x32xf32>
    %308 = arith.mulf %307, %307 : vector<16x32xf32>
    %cst_159 = arith.constant dense<0.000000e+00> : vector<16xf32>
    %309 = vector.multi_reduction <add>, %308, %cst_159 [1] : vector<16x32xf32> to vector<16xf32>
    %310 = vector.shape_cast %309 : vector<16xf32> to vector<16x1xf32>
    %cst_160 = arith.constant 3.200000e+01 : f32
    %311 = vector.broadcast %cst_160 : f32 to vector<16x1xf32>
    %312 = arith.divf %310, %311 : vector<16x1xf32>
    %313 = vector.broadcast %305 : vector<16x1xf32> to vector<16x32xf32>
    %314 = arith.subf %299, %313 : vector<16x32xf32>
    %cst_161 = arith.constant 9.99999974E-6 : f32
    %315 = vector.broadcast %cst_161 : f32 to vector<16x1xf32>
    %316 = arith.addf %312, %315 : vector<16x1xf32>
    %317 = math.rsqrt %316 : vector<16x1xf32>
    %318 = vector.broadcast %317 : vector<16x1xf32> to vector<16x32xf32>
    %319 = arith.mulf %314, %318 : vector<16x32xf32>
    %320 = vector.broadcast %300 : vector<1x32xf32> to vector<16x32xf32>
    %321 = arith.mulf %319, %320 : vector<16x32xf32>
    %322 = vector.broadcast %301 : vector<1x32xf32> to vector<16x32xf32>
    %323 = arith.addf %321, %322 : vector<16x32xf32>
    %324 = vector.broadcast %6 : vector<16x1xf32> to vector<16x32xf32>
    %325 = arith.mulf %323, %324 : vector<16x32xf32>
    %326 = arith.truncf %325 : vector<16x32xf32> to vector<16x32xbf16>
    %c0_162 = arith.constant 0 : index
    %c0_163 = arith.constant 0 : index
    %c0_164 = arith.constant 0 : index
    %327 = vector.load %arg20[%c0_162, %c0_163, %c0_164] : memref<1x16x32xbf16, #tpu.memory_space<vmem>>, vector<1x16x32xbf16>
    %328 = vector.shape_cast %327 : vector<1x16x32xbf16> to vector<16x32xbf16>
    %329 = vector.shape_cast %326 : vector<16x32xbf16> to vector<1x16x32xbf16>
    tpu.vector_store %arg20[%c0_162, %c0_163, %c0_164], %329 {strides = array<i32>} : memref<1x16x32xbf16, #tpu.memory_space<vmem>>, vector<1x16x32xbf16>,
    return
  }
  func.func @transform_0(%arg0: i32) -> (i32, i32, i32) {
    %c0_i32 = arith.constant 0 : i32
    %c0_i32_0 = arith.constant 0 : i32
    %c0_i32_1 = arith.constant 0 : i32
    return %arg0, %c0_i32, %c0_i32_0 : i32, i32, i32
  }
  func.func @transform_1(%arg0: i32) -> (i32, i32, i32) {
    %c0_i32 = arith.constant 0 : i32
    %c0_i32_0 = arith.constant 0 : i32
    %c0_i32_1 = arith.constant 0 : i32
    return %arg0, %c0_i32, %c0_i32_0 : i32, i32, i32
  }
  func.func @transform_2(%arg0: i32) -> (i32, i32, i32) {
    %c0_i32 = arith.constant 0 : i32
    %c0_i32_0 = arith.constant 0 : i32
    %c0_i32_1 = arith.constant 0 : i32
    return %arg0, %c0_i32, %c0_i32_0 : i32, i32, i32
  }
  func.func @transform_3(%arg0: i32) -> (i32, i32, i32) {
    %c0_i32 = arith.constant 0 : i32
    %c0_i32_0 = arith.constant 0 : i32
    %c0_i32_1 = arith.constant 0 : i32
    %c0_i32_2 = arith.constant 0 : i32
    return %c0_i32, %c0_i32_0, %c0_i32_1 : i32, i32, i32
  }
  func.func @transform_4(%arg0: i32) -> (i32, i32, i32) {
    %c0_i32 = arith.constant 0 : i32
    %c0_i32_0 = arith.constant 0 : i32
    %c0_i32_1 = arith.constant 0 : i32
    %c0_i32_2 = arith.constant 0 : i32
    return %c0_i32, %c0_i32_0, %c0_i32_1 : i32, i32, i32
  }
  func.func @transform_5(%arg0: i32) -> (i32, i32, i32) {
    %c0_i32 = arith.constant 0 : i32
    %c0_i32_0 = arith.constant 0 : i32
    %c0_i32_1 = arith.constant 0 : i32
    %c0_i32_2 = arith.constant 0 : i32
    return %c0_i32, %c0_i32_0, %c0_i32_1 : i32, i32, i32
  }
  func.func @transform_6(%arg0: i32) -> (i32, i32, i32) {
    %c0_i32 = arith.constant 0 : i32
    %c0_i32_0 = arith.constant 0 : i32
    %c0_i32_1 = arith.constant 0 : i32
    %c0_i32_2 = arith.constant 0 : i32
    return %c0_i32, %c0_i32_0, %c0_i32_1 : i32, i32, i32
  }
  func.func @transform_7(%arg0: i32) -> (i32, i32, i32) {
    %c0_i32 = arith.constant 0 : i32
    %c0_i32_0 = arith.constant 0 : i32
    %c0_i32_1 = arith.constant 0 : i32
    %c0_i32_2 = arith.constant 0 : i32
    return %c0_i32, %c0_i32_0, %c0_i32_1 : i32, i32, i32
  }
  func.func @transform_8(%arg0: i32) -> (i32, i32, i32) {
    %c0_i32 = arith.constant 0 : i32
    %c0_i32_0 = arith.constant 0 : i32
    %c0_i32_1 = arith.constant 0 : i32
    %c0_i32_2 = arith.constant 0 : i32
    return %c0_i32, %c0_i32_0, %c0_i32_1 : i32, i32, i32
  }
  func.func @transform_9(%arg0: i32) -> (i32, i32, i32) {
    %c0_i32 = arith.constant 0 : i32
    %c0_i32_0 = arith.constant 0 : i32
    %c0_i32_1 = arith.constant 0 : i32
    %c0_i32_2 = arith.constant 0 : i32
    return %c0_i32, %c0_i32_0, %c0_i32_1 : i32, i32, i32
  }
  func.func @transform_10(%arg0: i32) -> (i32, i32) {
    %c0_i32 = arith.constant 0 : i32
    %c0_i32_0 = arith.constant 0 : i32
    %c0_i32_1 = arith.constant 0 : i32
    return %c0_i32, %c0_i32_0 : i32, i32
  }
  func.func @transform_11(%arg0: i32) -> (i32, i32) {
    %c0_i32 = arith.constant 0 : i32
    %c0_i32_0 = arith.constant 0 : i32
    %c0_i32_1 = arith.constant 0 : i32
    return %c0_i32, %c0_i32_0 : i32, i32
  }
  func.func @transform_12(%arg0: i32) -> (i32, i32) {
    %c0_i32 = arith.constant 0 : i32
    %c0_i32_0 = arith.constant 0 : i32
    %c0_i32_1 = arith.constant 0 : i32
    return %c0_i32, %c0_i32_0 : i32, i32
  }
  func.func @transform_13(%arg0: i32) -> (i32, i32, i32) {
    %c0_i32 = arith.constant 0 : i32
    %c0_i32_0 = arith.constant 0 : i32
    %c0_i32_1 = arith.constant 0 : i32
    %c0_i32_2 = arith.constant 0 : i32
    return %c0_i32, %c0_i32_0, %c0_i32_1 : i32, i32, i32
  }
  func.func @transform_14(%arg0: i32) -> (i32, i32) {
    %c0_i32 = arith.constant 0 : i32
    %c0_i32_0 = arith.constant 0 : i32
    %c0_i32_1 = arith.constant 0 : i32
    return %c0_i32, %c0_i32_0 : i32, i32
  }
  func.func @transform_15(%arg0: i32) -> (i32, i32, i32) {
    %c0_i32 = arith.constant 0 : i32
    %c0_i32_0 = arith.constant 0 : i32
    %c0_i32_1 = arith.constant 0 : i32
    %c0_i32_2 = arith.constant 0 : i32
    return %c0_i32, %c0_i32_0, %c0_i32_1 : i32, i32, i32
  }
  func.func @transform_16(%arg0: i32) -> (i32, i32) {
    %c0_i32 = arith.constant 0 : i32
    %c0_i32_0 = arith.constant 0 : i32
    %c0_i32_1 = arith.constant 0 : i32
    return %c0_i32, %c0_i32_0 : i32, i32
  }
  func.func @transform_17(%arg0: i32) -> (i32, i32) {
    %c0_i32 = arith.constant 0 : i32
    %c0_i32_0 = arith.constant 0 : i32
    %c0_i32_1 = arith.constant 0 : i32
    return %c0_i32, %c0_i32_0 : i32, i32
  }
  func.func @transform_18(%arg0: i32) -> (i32, i32) {
    %c0_i32 = arith.constant 0 : i32
    %c0_i32_0 = arith.constant 0 : i32
    %c0_i32_1 = arith.constant 0 : i32
    return %c0_i32, %c0_i32_0 : i32, i32
  }
  func.func @transform_19(%arg0: i32) -> (i32, i32, i32) {
    %c0_i32 = arith.constant 0 : i32
    %c0_i32_0 = arith.constant 0 : i32
    %c0_i32_1 = arith.constant 0 : i32
    return %arg0, %c0_i32, %c0_i32_0 : i32, i32, i32
  }
}

module attributes {stable_mosaic.version = 11 : i64} {
  func.func @_predictor_kernel(%arg0: i32, %arg1: memref<1x16x32xbf16, #tpu.memory_space<vmem>>, %arg2: memref<3x32x32xbf16, #tpu.memory_space<vmem>>, %arg3: memref<1x32xf32, #tpu.memory_space<vmem>>, %arg4: memref<1x32xf32, #tpu.memory_space<vmem>>, %arg5: memref<1x32xf32, #tpu.memory_space<vmem>>, %arg6: memref<3x32x32xbf16, #tpu.memory_space<vmem>>, %arg7: memref<1x32xf32, #tpu.memory_space<vmem>>, %arg8: memref<1x32xf32, #tpu.memory_space<vmem>>, %arg9: memref<1x32xf32, #tpu.memory_space<vmem>>, %arg10: memref<1x32xf32, #tpu.memory_space<vmem>>, %arg11: memref<1x1xf32, #tpu.memory_space<vmem>>, %arg12: memref<1x16x1xf32, #tpu.memory_space<vmem>>) attributes {dimension_semantics = [#tpu.dimension_semantics<parallel>], iteration_bounds = array<i64: 2>, scalar_prefetch = 0 : i64, scratch_operands = 0 : i64, tpu.core_type = #tpu.core_type<tc>, window_params = [{transform_indices = @transform_0, window_bounds = array<i64: 1, 16, 32>}, {pipeline_mode = #tpu.pipeline_mode<synchronous>, transform_indices = @transform_1, window_bounds = array<i64: 3, 32, 32>}, {pipeline_mode = #tpu.pipeline_mode<synchronous>, transform_indices = @transform_2, window_bounds = array<i64: 1, 32>}, {pipeline_mode = #tpu.pipeline_mode<synchronous>, transform_indices = @transform_3, window_bounds = array<i64: 1, 32>}, {pipeline_mode = #tpu.pipeline_mode<synchronous>, transform_indices = @transform_4, window_bounds = array<i64: 1, 32>}, {pipeline_mode = #tpu.pipeline_mode<synchronous>, transform_indices = @transform_5, window_bounds = array<i64: 3, 32, 32>}, {pipeline_mode = #tpu.pipeline_mode<synchronous>, transform_indices = @transform_6, window_bounds = array<i64: 1, 32>}, {pipeline_mode = #tpu.pipeline_mode<synchronous>, transform_indices = @transform_7, window_bounds = array<i64: 1, 32>}, {pipeline_mode = #tpu.pipeline_mode<synchronous>, transform_indices = @transform_8, window_bounds = array<i64: 1, 32>}, {pipeline_mode = #tpu.pipeline_mode<synchronous>, transform_indices = @transform_9, window_bounds = array<i64: 1, 32>}, {pipeline_mode = #tpu.pipeline_mode<synchronous>, transform_indices = @transform_10, window_bounds = array<i64: 1, 1>}, {transform_indices = @transform_11, window_bounds = array<i64: 1, 16, 1>}]} {
    %c0 = arith.constant 0 : index
    %c0_0 = arith.constant 0 : index
    %c0_1 = arith.constant 0 : index
    %0 = vector.load %arg1[%c0, %c0_0, %c0_1] : memref<1x16x32xbf16, #tpu.memory_space<vmem>>, vector<1x16x32xbf16>
    %1 = vector.shape_cast %0 : vector<1x16x32xbf16> to vector<16x32xbf16>
    %2 = arith.extf %1 : vector<16x32xbf16> to vector<16x32xf32>
    %c0_2 = arith.constant 0 : index
    %c0_3 = arith.constant 0 : index
    %3 = vector.load %arg3[%c0_2, %c0_3] : memref<1x32xf32, #tpu.memory_space<vmem>>, vector<1x32xf32>
    %4 = tpu.iota {dimensions = array<i32: 0>} : vector<16x1xi32>
    %c1_i32 = arith.constant 1 : i32
    %5 = tpu.dynamic_rotate %2 by %c1_i32 dim 0 : vector<16x32xf32>, i32 -> vector<16x32xf32>
    %c-1_i32 = arith.constant -1 : i32
    %6 = vector.broadcast %c-1_i32 : i32 to vector<16x1xi32>
    %7 = arith.addi %4, %6 : vector<16x1xi32>
    %c0_i32 = arith.constant 0 : i32
    %8 = vector.broadcast %c0_i32 : i32 to vector<16x1xi32>
    %9 = arith.cmpi sge, %7, %8 : vector<16x1xi32>
    %c-1_i32_4 = arith.constant -1 : i32
    %10 = vector.broadcast %c-1_i32_4 : i32 to vector<16x1xi32>
    %11 = arith.addi %4, %10 : vector<16x1xi32>
    %c16_i32 = arith.constant 16 : i32
    %12 = vector.broadcast %c16_i32 : i32 to vector<16x1xi32>
    %13 = arith.cmpi slt, %11, %12 : vector<16x1xi32>
    %14 = arith.andi %9, %13 : vector<16x1xi1>
    %cst = arith.constant 0.000000e+00 : f32
    %15 = vector.shape_cast %14 : vector<16x1xi1> to vector<16x1xi1>
    %16 = vector.broadcast %15 : vector<16x1xi1> to vector<16x32xi1>
    %17 = vector.broadcast %cst : f32 to vector<16x32xf32>
    %18 = arith.select %16, %5, %17 : vector<16x32xi1>, vector<16x32xf32>
    %19 = arith.truncf %18 : vector<16x32xf32> to vector<16x32xbf16>
    %c0_5 = arith.constant 0 : index
    %c0_6 = arith.constant 0 : index
    %c0_7 = arith.constant 0 : index
    %20 = vector.load %arg2[%c0_5, %c0_6, %c0_7] : memref<3x32x32xbf16, #tpu.memory_space<vmem>>, vector<1x32x32xbf16>
    %21 = vector.shape_cast %20 : vector<1x32x32xbf16> to vector<32x32xbf16>
    %cst_8 = arith.constant dense<0.000000e+00> : vector<16x32xf32>
    %22 = tpu.matmul %19, %21, %cst_8 {dimension_numbers = #tpu.dot_dimension_numbers<[1], [0], [0], [1], [0, 0, 1, 1], [], []>} : vector<16x32xbf16>, vector<32x32xbf16>, vector<16x32xf32> -> vector<16x32xf32>
    %23 = arith.truncf %2 : vector<16x32xf32> to vector<16x32xbf16>
    %c1 = arith.constant 1 : index
    %c0_9 = arith.constant 0 : index
    %c0_10 = arith.constant 0 : index
    %24 = vector.load %arg2[%c1, %c0_9, %c0_10] : memref<3x32x32xbf16, #tpu.memory_space<vmem>>, vector<1x32x32xbf16>
    %25 = vector.shape_cast %24 : vector<1x32x32xbf16> to vector<32x32xbf16>
    %cst_11 = arith.constant dense<0.000000e+00> : vector<16x32xf32>
    %26 = tpu.matmul %23, %25, %cst_11 {dimension_numbers = #tpu.dot_dimension_numbers<[1], [0], [0], [1], [0, 0, 1, 1], [], []>} : vector<16x32xbf16>, vector<32x32xbf16>, vector<16x32xf32> -> vector<16x32xf32>
    %27 = arith.addf %22, %26 : vector<16x32xf32>
    %c15_i32 = arith.constant 15 : i32
    %28 = tpu.dynamic_rotate %2 by %c15_i32 dim 0 : vector<16x32xf32>, i32 -> vector<16x32xf32>
    %c1_i32_12 = arith.constant 1 : i32
    %29 = vector.broadcast %c1_i32_12 : i32 to vector<16x1xi32>
    %30 = arith.addi %4, %29 : vector<16x1xi32>
    %c0_i32_13 = arith.constant 0 : i32
    %31 = vector.broadcast %c0_i32_13 : i32 to vector<16x1xi32>
    %32 = arith.cmpi sge, %30, %31 : vector<16x1xi32>
    %c1_i32_14 = arith.constant 1 : i32
    %33 = vector.broadcast %c1_i32_14 : i32 to vector<16x1xi32>
    %34 = arith.addi %4, %33 : vector<16x1xi32>
    %c16_i32_15 = arith.constant 16 : i32
    %35 = vector.broadcast %c16_i32_15 : i32 to vector<16x1xi32>
    %36 = arith.cmpi slt, %34, %35 : vector<16x1xi32>
    %37 = arith.andi %32, %36 : vector<16x1xi1>
    %cst_16 = arith.constant 0.000000e+00 : f32
    %38 = vector.shape_cast %37 : vector<16x1xi1> to vector<16x1xi1>
    %39 = vector.broadcast %38 : vector<16x1xi1> to vector<16x32xi1>
    %40 = vector.broadcast %cst_16 : f32 to vector<16x32xf32>
    %41 = arith.select %39, %28, %40 : vector<16x32xi1>, vector<16x32xf32>
    %42 = arith.truncf %41 : vector<16x32xf32> to vector<16x32xbf16>
    %c2 = arith.constant 2 : index
    %c0_17 = arith.constant 0 : index
    %c0_18 = arith.constant 0 : index
    %43 = vector.load %arg2[%c2, %c0_17, %c0_18] : memref<3x32x32xbf16, #tpu.memory_space<vmem>>, vector<1x32x32xbf16>
    %44 = vector.shape_cast %43 : vector<1x32x32xbf16> to vector<32x32xbf16>
    %cst_19 = arith.constant dense<0.000000e+00> : vector<16x32xf32>
    %45 = tpu.matmul %42, %44, %cst_19 {dimension_numbers = #tpu.dot_dimension_numbers<[1], [0], [0], [1], [0, 0, 1, 1], [], []>} : vector<16x32xbf16>, vector<32x32xbf16>, vector<16x32xf32> -> vector<16x32xf32>
    %46 = arith.addf %27, %45 : vector<16x32xf32>
    %47 = vector.broadcast %3 : vector<1x32xf32> to vector<16x32xf32>
    %48 = arith.addf %46, %47 : vector<16x32xf32>
    %c0_20 = arith.constant 0 : index
    %c0_21 = arith.constant 0 : index
    %49 = vector.load %arg4[%c0_20, %c0_21] : memref<1x32xf32, #tpu.memory_space<vmem>>, vector<1x32xf32>
    %c0_22 = arith.constant 0 : index
    %c0_23 = arith.constant 0 : index
    %50 = vector.load %arg5[%c0_22, %c0_23] : memref<1x32xf32, #tpu.memory_space<vmem>>, vector<1x32xf32>
    %cst_24 = arith.constant dense<0.000000e+00> : vector<16xf32>
    %51 = vector.multi_reduction <add>, %48, %cst_24 [1] : vector<16x32xf32> to vector<16xf32>
    %52 = vector.shape_cast %51 : vector<16xf32> to vector<16x1xf32>
    %cst_25 = arith.constant 3.200000e+01 : f32
    %53 = vector.broadcast %cst_25 : f32 to vector<16x1xf32>
    %54 = arith.divf %52, %53 : vector<16x1xf32>
    %55 = vector.broadcast %54 : vector<16x1xf32> to vector<16x32xf32>
    %56 = arith.subf %48, %55 : vector<16x32xf32>
    %57 = arith.mulf %56, %56 : vector<16x32xf32>
    %cst_26 = arith.constant dense<0.000000e+00> : vector<16xf32>
    %58 = vector.multi_reduction <add>, %57, %cst_26 [1] : vector<16x32xf32> to vector<16xf32>
    %59 = vector.shape_cast %58 : vector<16xf32> to vector<16x1xf32>
    %cst_27 = arith.constant 3.200000e+01 : f32
    %60 = vector.broadcast %cst_27 : f32 to vector<16x1xf32>
    %61 = arith.divf %59, %60 : vector<16x1xf32>
    %62 = vector.broadcast %54 : vector<16x1xf32> to vector<16x32xf32>
    %63 = arith.subf %48, %62 : vector<16x32xf32>
    %cst_28 = arith.constant 9.99999974E-6 : f32
    %64 = vector.broadcast %cst_28 : f32 to vector<16x1xf32>
    %65 = arith.addf %61, %64 : vector<16x1xf32>
    %66 = math.rsqrt %65 : vector<16x1xf32>
    %67 = vector.broadcast %66 : vector<16x1xf32> to vector<16x32xf32>
    %68 = arith.mulf %63, %67 : vector<16x32xf32>
    %69 = vector.broadcast %49 : vector<1x32xf32> to vector<16x32xf32>
    %70 = arith.mulf %68, %69 : vector<16x32xf32>
    %71 = vector.broadcast %50 : vector<1x32xf32> to vector<16x32xf32>
    %72 = arith.addf %70, %71 : vector<16x32xf32>
    %cst_29 = arith.constant 0.000000e+00 : f32
    %73 = vector.broadcast %cst_29 : f32 to vector<16x32xf32>
    %74 = arith.maximumf %72, %73 : vector<16x32xf32>
    %c0_30 = arith.constant 0 : index
    %c0_31 = arith.constant 0 : index
    %75 = vector.load %arg7[%c0_30, %c0_31] : memref<1x32xf32, #tpu.memory_space<vmem>>, vector<1x32xf32>
    %76 = tpu.iota {dimensions = array<i32: 0>} : vector<16x1xi32>
    %c1_i32_32 = arith.constant 1 : i32
    %77 = tpu.dynamic_rotate %74 by %c1_i32_32 dim 0 : vector<16x32xf32>, i32 -> vector<16x32xf32>
    %c-1_i32_33 = arith.constant -1 : i32
    %78 = vector.broadcast %c-1_i32_33 : i32 to vector<16x1xi32>
    %79 = arith.addi %76, %78 : vector<16x1xi32>
    %c0_i32_34 = arith.constant 0 : i32
    %80 = vector.broadcast %c0_i32_34 : i32 to vector<16x1xi32>
    %81 = arith.cmpi sge, %79, %80 : vector<16x1xi32>
    %c-1_i32_35 = arith.constant -1 : i32
    %82 = vector.broadcast %c-1_i32_35 : i32 to vector<16x1xi32>
    %83 = arith.addi %76, %82 : vector<16x1xi32>
    %c16_i32_36 = arith.constant 16 : i32
    %84 = vector.broadcast %c16_i32_36 : i32 to vector<16x1xi32>
    %85 = arith.cmpi slt, %83, %84 : vector<16x1xi32>
    %86 = arith.andi %81, %85 : vector<16x1xi1>
    %cst_37 = arith.constant 0.000000e+00 : f32
    %87 = vector.shape_cast %86 : vector<16x1xi1> to vector<16x1xi1>
    %88 = vector.broadcast %87 : vector<16x1xi1> to vector<16x32xi1>
    %89 = vector.broadcast %cst_37 : f32 to vector<16x32xf32>
    %90 = arith.select %88, %77, %89 : vector<16x32xi1>, vector<16x32xf32>
    %91 = arith.truncf %90 : vector<16x32xf32> to vector<16x32xbf16>
    %c0_38 = arith.constant 0 : index
    %c0_39 = arith.constant 0 : index
    %c0_40 = arith.constant 0 : index
    %92 = vector.load %arg6[%c0_38, %c0_39, %c0_40] : memref<3x32x32xbf16, #tpu.memory_space<vmem>>, vector<1x32x32xbf16>
    %93 = vector.shape_cast %92 : vector<1x32x32xbf16> to vector<32x32xbf16>
    %cst_41 = arith.constant dense<0.000000e+00> : vector<16x32xf32>
    %94 = tpu.matmul %91, %93, %cst_41 {dimension_numbers = #tpu.dot_dimension_numbers<[1], [0], [0], [1], [0, 0, 1, 1], [], []>} : vector<16x32xbf16>, vector<32x32xbf16>, vector<16x32xf32> -> vector<16x32xf32>
    %95 = arith.truncf %74 : vector<16x32xf32> to vector<16x32xbf16>
    %c1_42 = arith.constant 1 : index
    %c0_43 = arith.constant 0 : index
    %c0_44 = arith.constant 0 : index
    %96 = vector.load %arg6[%c1_42, %c0_43, %c0_44] : memref<3x32x32xbf16, #tpu.memory_space<vmem>>, vector<1x32x32xbf16>
    %97 = vector.shape_cast %96 : vector<1x32x32xbf16> to vector<32x32xbf16>
    %cst_45 = arith.constant dense<0.000000e+00> : vector<16x32xf32>
    %98 = tpu.matmul %95, %97, %cst_45 {dimension_numbers = #tpu.dot_dimension_numbers<[1], [0], [0], [1], [0, 0, 1, 1], [], []>} : vector<16x32xbf16>, vector<32x32xbf16>, vector<16x32xf32> -> vector<16x32xf32>
    %99 = arith.addf %94, %98 : vector<16x32xf32>
    %c15_i32_46 = arith.constant 15 : i32
    %100 = tpu.dynamic_rotate %74 by %c15_i32_46 dim 0 : vector<16x32xf32>, i32 -> vector<16x32xf32>
    %c1_i32_47 = arith.constant 1 : i32
    %101 = vector.broadcast %c1_i32_47 : i32 to vector<16x1xi32>
    %102 = arith.addi %76, %101 : vector<16x1xi32>
    %c0_i32_48 = arith.constant 0 : i32
    %103 = vector.broadcast %c0_i32_48 : i32 to vector<16x1xi32>
    %104 = arith.cmpi sge, %102, %103 : vector<16x1xi32>
    %c1_i32_49 = arith.constant 1 : i32
    %105 = vector.broadcast %c1_i32_49 : i32 to vector<16x1xi32>
    %106 = arith.addi %76, %105 : vector<16x1xi32>
    %c16_i32_50 = arith.constant 16 : i32
    %107 = vector.broadcast %c16_i32_50 : i32 to vector<16x1xi32>
    %108 = arith.cmpi slt, %106, %107 : vector<16x1xi32>
    %109 = arith.andi %104, %108 : vector<16x1xi1>
    %cst_51 = arith.constant 0.000000e+00 : f32
    %110 = vector.shape_cast %109 : vector<16x1xi1> to vector<16x1xi1>
    %111 = vector.broadcast %110 : vector<16x1xi1> to vector<16x32xi1>
    %112 = vector.broadcast %cst_51 : f32 to vector<16x32xf32>
    %113 = arith.select %111, %100, %112 : vector<16x32xi1>, vector<16x32xf32>
    %114 = arith.truncf %113 : vector<16x32xf32> to vector<16x32xbf16>
    %c2_52 = arith.constant 2 : index
    %c0_53 = arith.constant 0 : index
    %c0_54 = arith.constant 0 : index
    %115 = vector.load %arg6[%c2_52, %c0_53, %c0_54] : memref<3x32x32xbf16, #tpu.memory_space<vmem>>, vector<1x32x32xbf16>
    %116 = vector.shape_cast %115 : vector<1x32x32xbf16> to vector<32x32xbf16>
    %cst_55 = arith.constant dense<0.000000e+00> : vector<16x32xf32>
    %117 = tpu.matmul %114, %116, %cst_55 {dimension_numbers = #tpu.dot_dimension_numbers<[1], [0], [0], [1], [0, 0, 1, 1], [], []>} : vector<16x32xbf16>, vector<32x32xbf16>, vector<16x32xf32> -> vector<16x32xf32>
    %118 = arith.addf %99, %117 : vector<16x32xf32>
    %119 = vector.broadcast %75 : vector<1x32xf32> to vector<16x32xf32>
    %120 = arith.addf %118, %119 : vector<16x32xf32>
    %c0_56 = arith.constant 0 : index
    %c0_57 = arith.constant 0 : index
    %121 = vector.load %arg8[%c0_56, %c0_57] : memref<1x32xf32, #tpu.memory_space<vmem>>, vector<1x32xf32>
    %c0_58 = arith.constant 0 : index
    %c0_59 = arith.constant 0 : index
    %122 = vector.load %arg9[%c0_58, %c0_59] : memref<1x32xf32, #tpu.memory_space<vmem>>, vector<1x32xf32>
    %cst_60 = arith.constant dense<0.000000e+00> : vector<16xf32>
    %123 = vector.multi_reduction <add>, %120, %cst_60 [1] : vector<16x32xf32> to vector<16xf32>
    %124 = vector.shape_cast %123 : vector<16xf32> to vector<16x1xf32>
    %cst_61 = arith.constant 3.200000e+01 : f32
    %125 = vector.broadcast %cst_61 : f32 to vector<16x1xf32>
    %126 = arith.divf %124, %125 : vector<16x1xf32>
    %127 = vector.broadcast %126 : vector<16x1xf32> to vector<16x32xf32>
    %128 = arith.subf %120, %127 : vector<16x32xf32>
    %129 = arith.mulf %128, %128 : vector<16x32xf32>
    %cst_62 = arith.constant dense<0.000000e+00> : vector<16xf32>
    %130 = vector.multi_reduction <add>, %129, %cst_62 [1] : vector<16x32xf32> to vector<16xf32>
    %131 = vector.shape_cast %130 : vector<16xf32> to vector<16x1xf32>
    %cst_63 = arith.constant 3.200000e+01 : f32
    %132 = vector.broadcast %cst_63 : f32 to vector<16x1xf32>
    %133 = arith.divf %131, %132 : vector<16x1xf32>
    %134 = vector.broadcast %126 : vector<16x1xf32> to vector<16x32xf32>
    %135 = arith.subf %120, %134 : vector<16x32xf32>
    %cst_64 = arith.constant 9.99999974E-6 : f32
    %136 = vector.broadcast %cst_64 : f32 to vector<16x1xf32>
    %137 = arith.addf %133, %136 : vector<16x1xf32>
    %138 = math.rsqrt %137 : vector<16x1xf32>
    %139 = vector.broadcast %138 : vector<16x1xf32> to vector<16x32xf32>
    %140 = arith.mulf %135, %139 : vector<16x32xf32>
    %141 = vector.broadcast %121 : vector<1x32xf32> to vector<16x32xf32>
    %142 = arith.mulf %140, %141 : vector<16x32xf32>
    %143 = vector.broadcast %122 : vector<1x32xf32> to vector<16x32xf32>
    %144 = arith.addf %142, %143 : vector<16x32xf32>
    %cst_65 = arith.constant 0.000000e+00 : f32
    %145 = vector.broadcast %cst_65 : f32 to vector<16x32xf32>
    %146 = arith.maximumf %144, %145 : vector<16x32xf32>
    %c0_66 = arith.constant 0 : index
    %c0_67 = arith.constant 0 : index
    %147 = vector.load %arg10[%c0_66, %c0_67] : memref<1x32xf32, #tpu.memory_space<vmem>>, vector<1x32xf32>
    %148 = vector.broadcast %147 : vector<1x32xf32> to vector<16x32xf32>
    %149 = arith.mulf %146, %148 : vector<16x32xf32>
    %cst_68 = arith.constant dense<0.000000e+00> : vector<16xf32>
    %150 = vector.multi_reduction <add>, %149, %cst_68 [1] : vector<16x32xf32> to vector<16xf32>
    %151 = vector.shape_cast %150 : vector<16xf32> to vector<16x1xf32>
    %c0_69 = arith.constant 0 : index
    %c0_70 = arith.constant 0 : index
    %152 = vector.load %arg11[%c0_69, %c0_70] : memref<1x1xf32, #tpu.memory_space<vmem>>, vector<1x1xf32>
    %153 = vector.broadcast %152 : vector<1x1xf32> to vector<16x1xf32>
    %154 = arith.addf %151, %153 : vector<16x1xf32>
    %cst_71 = arith.constant 0.000000e+00 : f32
    %155 = vector.broadcast %cst_71 : f32 to vector<16x1xf32>
    %156 = arith.maximumf %154, %155 : vector<16x1xf32>
    %c0_72 = arith.constant 0 : index
    %c0_73 = arith.constant 0 : index
    %c0_74 = arith.constant 0 : index
    %157 = vector.load %arg12[%c0_72, %c0_73, %c0_74] : memref<1x16x1xf32, #tpu.memory_space<vmem>>, vector<1x16x1xf32>
    %158 = vector.shape_cast %157 : vector<1x16x1xf32> to vector<16x1xf32>
    %159 = vector.shape_cast %156 : vector<16x1xf32> to vector<1x16x1xf32>
    tpu.vector_store %arg12[%c0_72, %c0_73, %c0_74], %159 {strides = array<i32>} : memref<1x16x1xf32, #tpu.memory_space<vmem>>, vector<1x16x1xf32>,
    return
  }
  func.func @transform_0(%arg0: i32) -> (i32, i32, i32) {
    %c0_i32 = arith.constant 0 : i32
    %c0_i32_0 = arith.constant 0 : i32
    %c0_i32_1 = arith.constant 0 : i32
    return %arg0, %c0_i32, %c0_i32_0 : i32, i32, i32
  }
  func.func @transform_1(%arg0: i32) -> (i32, i32, i32) {
    %c0_i32 = arith.constant 0 : i32
    %c0_i32_0 = arith.constant 0 : i32
    %c0_i32_1 = arith.constant 0 : i32
    %c0_i32_2 = arith.constant 0 : i32
    return %c0_i32, %c0_i32_0, %c0_i32_1 : i32, i32, i32
  }
  func.func @transform_2(%arg0: i32) -> (i32, i32) {
    %c0_i32 = arith.constant 0 : i32
    %c0_i32_0 = arith.constant 0 : i32
    %c0_i32_1 = arith.constant 0 : i32
    return %c0_i32, %c0_i32_0 : i32, i32
  }
  func.func @transform_3(%arg0: i32) -> (i32, i32) {
    %c0_i32 = arith.constant 0 : i32
    %c0_i32_0 = arith.constant 0 : i32
    %c0_i32_1 = arith.constant 0 : i32
    return %c0_i32, %c0_i32_0 : i32, i32
  }
  func.func @transform_4(%arg0: i32) -> (i32, i32) {
    %c0_i32 = arith.constant 0 : i32
    %c0_i32_0 = arith.constant 0 : i32
    %c0_i32_1 = arith.constant 0 : i32
    return %c0_i32, %c0_i32_0 : i32, i32
  }
  func.func @transform_5(%arg0: i32) -> (i32, i32, i32) {
    %c0_i32 = arith.constant 0 : i32
    %c0_i32_0 = arith.constant 0 : i32
    %c0_i32_1 = arith.constant 0 : i32
    %c0_i32_2 = arith.constant 0 : i32
    return %c0_i32, %c0_i32_0, %c0_i32_1 : i32, i32, i32
  }
  func.func @transform_6(%arg0: i32) -> (i32, i32) {
    %c0_i32 = arith.constant 0 : i32
    %c0_i32_0 = arith.constant 0 : i32
    %c0_i32_1 = arith.constant 0 : i32
    return %c0_i32, %c0_i32_0 : i32, i32
  }
  func.func @transform_7(%arg0: i32) -> (i32, i32) {
    %c0_i32 = arith.constant 0 : i32
    %c0_i32_0 = arith.constant 0 : i32
    %c0_i32_1 = arith.constant 0 : i32
    return %c0_i32, %c0_i32_0 : i32, i32
  }
  func.func @transform_8(%arg0: i32) -> (i32, i32) {
    %c0_i32 = arith.constant 0 : i32
    %c0_i32_0 = arith.constant 0 : i32
    %c0_i32_1 = arith.constant 0 : i32
    return %c0_i32, %c0_i32_0 : i32, i32
  }
  func.func @transform_9(%arg0: i32) -> (i32, i32) {
    %c0_i32 = arith.constant 0 : i32
    %c0_i32_0 = arith.constant 0 : i32
    %c0_i32_1 = arith.constant 0 : i32
    return %c0_i32, %c0_i32_0 : i32, i32
  }
  func.func @transform_10(%arg0: i32) -> (i32, i32) {
    %c0_i32 = arith.constant 0 : i32
    %c0_i32_0 = arith.constant 0 : i32
    %c0_i32_1 = arith.constant 0 : i32
    return %c0_i32, %c0_i32_0 : i32, i32
  }
  func.func @transform_11(%arg0: i32) -> (i32, i32, i32) {
    %c0_i32 = arith.constant 0 : i32
    %c0_i32_0 = arith.constant 0 : i32
    %c0_i32_1 = arith.constant 0 : i32
    return %arg0, %c0_i32, %c0_i32_0 : i32, i32, i32
  }
}

module attributes {stable_mosaic.version = 11 : i64} {
  func.func @_mel_kernel(%arg0: i32, %arg1: memref<1x16x32xbf16, #tpu.memory_space<vmem>>, %arg2: memref<32x128xbf16, #tpu.memory_space<vmem>>, %arg3: memref<1x128xf32, #tpu.memory_space<vmem>>, %arg4: memref<1x16x1xf32, #tpu.memory_space<vmem>>, %arg5: memref<1x16x128xf32, #tpu.memory_space<vmem>>) attributes {dimension_semantics = [#tpu.dimension_semantics<parallel>], iteration_bounds = array<i64: 2>, scalar_prefetch = 0 : i64, scratch_operands = 0 : i64, tpu.core_type = #tpu.core_type<tc>, window_params = [{transform_indices = @transform_0, window_bounds = array<i64: 1, 16, 32>}, {pipeline_mode = #tpu.pipeline_mode<synchronous>, transform_indices = @transform_1, window_bounds = array<i64: 32, 128>}, {pipeline_mode = #tpu.pipeline_mode<synchronous>, transform_indices = @transform_2, window_bounds = array<i64: 1, 128>}, {transform_indices = @transform_3, window_bounds = array<i64: 1, 16, 1>}, {transform_indices = @transform_4, window_bounds = array<i64: 1, 16, 128>}]} {
    %c0 = arith.constant 0 : index
    %c0_0 = arith.constant 0 : index
    %c0_1 = arith.constant 0 : index
    %0 = vector.load %arg1[%c0, %c0_0, %c0_1] : memref<1x16x32xbf16, #tpu.memory_space<vmem>>, vector<1x16x32xbf16>
    %1 = vector.shape_cast %0 : vector<1x16x32xbf16> to vector<16x32xbf16>
    %2 = arith.extf %1 : vector<16x32xbf16> to vector<16x32xf32>
    %c0_2 = arith.constant 0 : index
    %c0_3 = arith.constant 0 : index
    %c0_4 = arith.constant 0 : index
    %3 = vector.load %arg4[%c0_2, %c0_3, %c0_4] : memref<1x16x1xf32, #tpu.memory_space<vmem>>, vector<1x16x1xf32>
    %4 = vector.shape_cast %3 : vector<1x16x1xf32> to vector<16x1xf32>
    %5 = vector.broadcast %4 : vector<16x1xf32> to vector<16x32xf32>
    %6 = arith.mulf %2, %5 : vector<16x32xf32>
    %7 = arith.truncf %6 : vector<16x32xf32> to vector<16x32xbf16>
    %c0_5 = arith.constant 0 : index
    %c0_6 = arith.constant 0 : index
    %8 = vector.load %arg2[%c0_5, %c0_6] : memref<32x128xbf16, #tpu.memory_space<vmem>>, vector<32x128xbf16>
    %cst = arith.constant dense<0.000000e+00> : vector<16x128xf32>
    %9 = tpu.matmul %7, %8, %cst {dimension_numbers = #tpu.dot_dimension_numbers<[1], [0], [0], [1], [0, 0, 1, 1], [], []>} : vector<16x32xbf16>, vector<32x128xbf16>, vector<16x128xf32> -> vector<16x128xf32>
    %c0_7 = arith.constant 0 : index
    %c0_8 = arith.constant 0 : index
    %10 = vector.load %arg3[%c0_7, %c0_8] : memref<1x128xf32, #tpu.memory_space<vmem>>, vector<1x128xf32>
    %11 = vector.broadcast %10 : vector<1x128xf32> to vector<16x128xf32>
    %12 = arith.addf %9, %11 : vector<16x128xf32>
    %c0_9 = arith.constant 0 : index
    %c0_10 = arith.constant 0 : index
    %c0_11 = arith.constant 0 : index
    %13 = vector.load %arg5[%c0_9, %c0_10, %c0_11] : memref<1x16x128xf32, #tpu.memory_space<vmem>>, vector<1x16x128xf32>
    %14 = vector.shape_cast %13 : vector<1x16x128xf32> to vector<16x128xf32>
    %15 = vector.shape_cast %12 : vector<16x128xf32> to vector<1x16x128xf32>
    tpu.vector_store %arg5[%c0_9, %c0_10, %c0_11], %15 {strides = array<i32>} : memref<1x16x128xf32, #tpu.memory_space<vmem>>, vector<1x16x128xf32>,
    return
  }
  func.func @transform_0(%arg0: i32) -> (i32, i32, i32) {
    %c0_i32 = arith.constant 0 : i32
    %c0_i32_0 = arith.constant 0 : i32
    %c0_i32_1 = arith.constant 0 : i32
    return %arg0, %c0_i32, %c0_i32_0 : i32, i32, i32
  }
  func.func @transform_1(%arg0: i32) -> (i32, i32) {
    %c0_i32 = arith.constant 0 : i32
    %c0_i32_0 = arith.constant 0 : i32
    %c0_i32_1 = arith.constant 0 : i32
    return %c0_i32, %c0_i32_0 : i32, i32
  }
  func.func @transform_2(%arg0: i32) -> (i32, i32) {
    %c0_i32 = arith.constant 0 : i32
    %c0_i32_0 = arith.constant 0 : i32
    %c0_i32_1 = arith.constant 0 : i32
    return %c0_i32, %c0_i32_0 : i32, i32
  }
  func.func @transform_3(%arg0: i32) -> (i32, i32, i32) {
    %c0_i32 = arith.constant 0 : i32
    %c0_i32_0 = arith.constant 0 : i32
    %c0_i32_1 = arith.constant 0 : i32
    return %arg0, %c0_i32, %c0_i32_0 : i32, i32, i32
  }
  func.func @transform_4(%arg0: i32) -> (i32, i32, i32) {
    %c0_i32 = arith.constant 0 : i32
    %c0_i32_0 = arith.constant 0 : i32
    %c0_i32_1 = arith.constant 0 : i32
    return %arg0, %c0_i32, %c0_i32_0 : i32, i32, i32
  }
}

module attributes {stable_mosaic.version = 11 : i64} {
  func.func @_predictor_kernel(%arg0: i32, %arg1: memref<1x8x32xbf16, #tpu.memory_space<vmem>>, %arg2: memref<3x32x32xbf16, #tpu.memory_space<vmem>>, %arg3: memref<1x32xf32, #tpu.memory_space<vmem>>, %arg4: memref<1x32xf32, #tpu.memory_space<vmem>>, %arg5: memref<1x32xf32, #tpu.memory_space<vmem>>, %arg6: memref<3x32x32xbf16, #tpu.memory_space<vmem>>, %arg7: memref<1x32xf32, #tpu.memory_space<vmem>>, %arg8: memref<1x32xf32, #tpu.memory_space<vmem>>, %arg9: memref<1x32xf32, #tpu.memory_space<vmem>>, %arg10: memref<1x32xf32, #tpu.memory_space<vmem>>, %arg11: memref<1x1xf32, #tpu.memory_space<vmem>>, %arg12: memref<1x8x1xf32, #tpu.memory_space<vmem>>) attributes {dimension_semantics = [#tpu.dimension_semantics<parallel>], iteration_bounds = array<i64: 2>, scalar_prefetch = 0 : i64, scratch_operands = 0 : i64, tpu.core_type = #tpu.core_type<tc>, window_params = [{transform_indices = @transform_0, window_bounds = array<i64: 1, 8, 32>}, {pipeline_mode = #tpu.pipeline_mode<synchronous>, transform_indices = @transform_1, window_bounds = array<i64: 3, 32, 32>}, {pipeline_mode = #tpu.pipeline_mode<synchronous>, transform_indices = @transform_2, window_bounds = array<i64: 1, 32>}, {pipeline_mode = #tpu.pipeline_mode<synchronous>, transform_indices = @transform_3, window_bounds = array<i64: 1, 32>}, {pipeline_mode = #tpu.pipeline_mode<synchronous>, transform_indices = @transform_4, window_bounds = array<i64: 1, 32>}, {pipeline_mode = #tpu.pipeline_mode<synchronous>, transform_indices = @transform_5, window_bounds = array<i64: 3, 32, 32>}, {pipeline_mode = #tpu.pipeline_mode<synchronous>, transform_indices = @transform_6, window_bounds = array<i64: 1, 32>}, {pipeline_mode = #tpu.pipeline_mode<synchronous>, transform_indices = @transform_7, window_bounds = array<i64: 1, 32>}, {pipeline_mode = #tpu.pipeline_mode<synchronous>, transform_indices = @transform_8, window_bounds = array<i64: 1, 32>}, {pipeline_mode = #tpu.pipeline_mode<synchronous>, transform_indices = @transform_9, window_bounds = array<i64: 1, 32>}, {pipeline_mode = #tpu.pipeline_mode<synchronous>, transform_indices = @transform_10, window_bounds = array<i64: 1, 1>}, {transform_indices = @transform_11, window_bounds = array<i64: 1, 8, 1>}]} {
    %c0 = arith.constant 0 : index
    %c0_0 = arith.constant 0 : index
    %c0_1 = arith.constant 0 : index
    %0 = vector.load %arg1[%c0, %c0_0, %c0_1] : memref<1x8x32xbf16, #tpu.memory_space<vmem>>, vector<1x8x32xbf16>
    %1 = vector.shape_cast %0 : vector<1x8x32xbf16> to vector<8x32xbf16>
    %2 = arith.extf %1 : vector<8x32xbf16> to vector<8x32xf32>
    %c0_2 = arith.constant 0 : index
    %c0_3 = arith.constant 0 : index
    %3 = vector.load %arg3[%c0_2, %c0_3] : memref<1x32xf32, #tpu.memory_space<vmem>>, vector<1x32xf32>
    %4 = tpu.iota {dimensions = array<i32: 0>} : vector<8x1xi32>
    %c1_i32 = arith.constant 1 : i32
    %5 = tpu.dynamic_rotate %2 by %c1_i32 dim 0 : vector<8x32xf32>, i32 -> vector<8x32xf32>
    %c-1_i32 = arith.constant -1 : i32
    %6 = vector.broadcast %c-1_i32 : i32 to vector<8x1xi32>
    %7 = arith.addi %4, %6 : vector<8x1xi32>
    %c0_i32 = arith.constant 0 : i32
    %8 = vector.broadcast %c0_i32 : i32 to vector<8x1xi32>
    %9 = arith.cmpi sge, %7, %8 : vector<8x1xi32>
    %c-1_i32_4 = arith.constant -1 : i32
    %10 = vector.broadcast %c-1_i32_4 : i32 to vector<8x1xi32>
    %11 = arith.addi %4, %10 : vector<8x1xi32>
    %c8_i32 = arith.constant 8 : i32
    %12 = vector.broadcast %c8_i32 : i32 to vector<8x1xi32>
    %13 = arith.cmpi slt, %11, %12 : vector<8x1xi32>
    %14 = arith.andi %9, %13 : vector<8x1xi1>
    %cst = arith.constant 0.000000e+00 : f32
    %15 = vector.shape_cast %14 : vector<8x1xi1> to vector<8x1xi1>
    %16 = vector.broadcast %15 : vector<8x1xi1> to vector<8x32xi1>
    %17 = vector.broadcast %cst : f32 to vector<8x32xf32>
    %18 = arith.select %16, %5, %17 : vector<8x32xi1>, vector<8x32xf32>
    %19 = arith.truncf %18 : vector<8x32xf32> to vector<8x32xbf16>
    %c0_5 = arith.constant 0 : index
    %c0_6 = arith.constant 0 : index
    %c0_7 = arith.constant 0 : index
    %20 = vector.load %arg2[%c0_5, %c0_6, %c0_7] : memref<3x32x32xbf16, #tpu.memory_space<vmem>>, vector<1x32x32xbf16>
    %21 = vector.shape_cast %20 : vector<1x32x32xbf16> to vector<32x32xbf16>
    %cst_8 = arith.constant dense<0.000000e+00> : vector<8x32xf32>
    %22 = tpu.matmul %19, %21, %cst_8 {dimension_numbers = #tpu.dot_dimension_numbers<[1], [0], [0], [1], [0, 0, 1, 1], [], []>} : vector<8x32xbf16>, vector<32x32xbf16>, vector<8x32xf32> -> vector<8x32xf32>
    %23 = arith.truncf %2 : vector<8x32xf32> to vector<8x32xbf16>
    %c1 = arith.constant 1 : index
    %c0_9 = arith.constant 0 : index
    %c0_10 = arith.constant 0 : index
    %24 = vector.load %arg2[%c1, %c0_9, %c0_10] : memref<3x32x32xbf16, #tpu.memory_space<vmem>>, vector<1x32x32xbf16>
    %25 = vector.shape_cast %24 : vector<1x32x32xbf16> to vector<32x32xbf16>
    %cst_11 = arith.constant dense<0.000000e+00> : vector<8x32xf32>
    %26 = tpu.matmul %23, %25, %cst_11 {dimension_numbers = #tpu.dot_dimension_numbers<[1], [0], [0], [1], [0, 0, 1, 1], [], []>} : vector<8x32xbf16>, vector<32x32xbf16>, vector<8x32xf32> -> vector<8x32xf32>
    %27 = arith.addf %22, %26 : vector<8x32xf32>
    %c7_i32 = arith.constant 7 : i32
    %28 = tpu.dynamic_rotate %2 by %c7_i32 dim 0 : vector<8x32xf32>, i32 -> vector<8x32xf32>
    %c1_i32_12 = arith.constant 1 : i32
    %29 = vector.broadcast %c1_i32_12 : i32 to vector<8x1xi32>
    %30 = arith.addi %4, %29 : vector<8x1xi32>
    %c0_i32_13 = arith.constant 0 : i32
    %31 = vector.broadcast %c0_i32_13 : i32 to vector<8x1xi32>
    %32 = arith.cmpi sge, %30, %31 : vector<8x1xi32>
    %c1_i32_14 = arith.constant 1 : i32
    %33 = vector.broadcast %c1_i32_14 : i32 to vector<8x1xi32>
    %34 = arith.addi %4, %33 : vector<8x1xi32>
    %c8_i32_15 = arith.constant 8 : i32
    %35 = vector.broadcast %c8_i32_15 : i32 to vector<8x1xi32>
    %36 = arith.cmpi slt, %34, %35 : vector<8x1xi32>
    %37 = arith.andi %32, %36 : vector<8x1xi1>
    %cst_16 = arith.constant 0.000000e+00 : f32
    %38 = vector.shape_cast %37 : vector<8x1xi1> to vector<8x1xi1>
    %39 = vector.broadcast %38 : vector<8x1xi1> to vector<8x32xi1>
    %40 = vector.broadcast %cst_16 : f32 to vector<8x32xf32>
    %41 = arith.select %39, %28, %40 : vector<8x32xi1>, vector<8x32xf32>
    %42 = arith.truncf %41 : vector<8x32xf32> to vector<8x32xbf16>
    %c2 = arith.constant 2 : index
    %c0_17 = arith.constant 0 : index
    %c0_18 = arith.constant 0 : index
    %43 = vector.load %arg2[%c2, %c0_17, %c0_18] : memref<3x32x32xbf16, #tpu.memory_space<vmem>>, vector<1x32x32xbf16>
    %44 = vector.shape_cast %43 : vector<1x32x32xbf16> to vector<32x32xbf16>
    %cst_19 = arith.constant dense<0.000000e+00> : vector<8x32xf32>
    %45 = tpu.matmul %42, %44, %cst_19 {dimension_numbers = #tpu.dot_dimension_numbers<[1], [0], [0], [1], [0, 0, 1, 1], [], []>} : vector<8x32xbf16>, vector<32x32xbf16>, vector<8x32xf32> -> vector<8x32xf32>
    %46 = arith.addf %27, %45 : vector<8x32xf32>
    %47 = vector.broadcast %3 : vector<1x32xf32> to vector<8x32xf32>
    %48 = arith.addf %46, %47 : vector<8x32xf32>
    %c0_20 = arith.constant 0 : index
    %c0_21 = arith.constant 0 : index
    %49 = vector.load %arg4[%c0_20, %c0_21] : memref<1x32xf32, #tpu.memory_space<vmem>>, vector<1x32xf32>
    %c0_22 = arith.constant 0 : index
    %c0_23 = arith.constant 0 : index
    %50 = vector.load %arg5[%c0_22, %c0_23] : memref<1x32xf32, #tpu.memory_space<vmem>>, vector<1x32xf32>
    %cst_24 = arith.constant dense<0.000000e+00> : vector<8xf32>
    %51 = vector.multi_reduction <add>, %48, %cst_24 [1] : vector<8x32xf32> to vector<8xf32>
    %52 = vector.shape_cast %51 : vector<8xf32> to vector<8x1xf32>
    %cst_25 = arith.constant 3.200000e+01 : f32
    %53 = vector.broadcast %cst_25 : f32 to vector<8x1xf32>
    %54 = arith.divf %52, %53 : vector<8x1xf32>
    %55 = vector.broadcast %54 : vector<8x1xf32> to vector<8x32xf32>
    %56 = arith.subf %48, %55 : vector<8x32xf32>
    %57 = arith.mulf %56, %56 : vector<8x32xf32>
    %cst_26 = arith.constant dense<0.000000e+00> : vector<8xf32>
    %58 = vector.multi_reduction <add>, %57, %cst_26 [1] : vector<8x32xf32> to vector<8xf32>
    %59 = vector.shape_cast %58 : vector<8xf32> to vector<8x1xf32>
    %cst_27 = arith.constant 3.200000e+01 : f32
    %60 = vector.broadcast %cst_27 : f32 to vector<8x1xf32>
    %61 = arith.divf %59, %60 : vector<8x1xf32>
    %62 = vector.broadcast %54 : vector<8x1xf32> to vector<8x32xf32>
    %63 = arith.subf %48, %62 : vector<8x32xf32>
    %cst_28 = arith.constant 9.99999974E-6 : f32
    %64 = vector.broadcast %cst_28 : f32 to vector<8x1xf32>
    %65 = arith.addf %61, %64 : vector<8x1xf32>
    %66 = math.rsqrt %65 : vector<8x1xf32>
    %67 = vector.broadcast %66 : vector<8x1xf32> to vector<8x32xf32>
    %68 = arith.mulf %63, %67 : vector<8x32xf32>
    %69 = vector.broadcast %49 : vector<1x32xf32> to vector<8x32xf32>
    %70 = arith.mulf %68, %69 : vector<8x32xf32>
    %71 = vector.broadcast %50 : vector<1x32xf32> to vector<8x32xf32>
    %72 = arith.addf %70, %71 : vector<8x32xf32>
    %cst_29 = arith.constant 0.000000e+00 : f32
    %73 = vector.broadcast %cst_29 : f32 to vector<8x32xf32>
    %74 = arith.maximumf %72, %73 : vector<8x32xf32>
    %c0_30 = arith.constant 0 : index
    %c0_31 = arith.constant 0 : index
    %75 = vector.load %arg7[%c0_30, %c0_31] : memref<1x32xf32, #tpu.memory_space<vmem>>, vector<1x32xf32>
    %76 = tpu.iota {dimensions = array<i32: 0>} : vector<8x1xi32>
    %c1_i32_32 = arith.constant 1 : i32
    %77 = tpu.dynamic_rotate %74 by %c1_i32_32 dim 0 : vector<8x32xf32>, i32 -> vector<8x32xf32>
    %c-1_i32_33 = arith.constant -1 : i32
    %78 = vector.broadcast %c-1_i32_33 : i32 to vector<8x1xi32>
    %79 = arith.addi %76, %78 : vector<8x1xi32>
    %c0_i32_34 = arith.constant 0 : i32
    %80 = vector.broadcast %c0_i32_34 : i32 to vector<8x1xi32>
    %81 = arith.cmpi sge, %79, %80 : vector<8x1xi32>
    %c-1_i32_35 = arith.constant -1 : i32
    %82 = vector.broadcast %c-1_i32_35 : i32 to vector<8x1xi32>
    %83 = arith.addi %76, %82 : vector<8x1xi32>
    %c8_i32_36 = arith.constant 8 : i32
    %84 = vector.broadcast %c8_i32_36 : i32 to vector<8x1xi32>
    %85 = arith.cmpi slt, %83, %84 : vector<8x1xi32>
    %86 = arith.andi %81, %85 : vector<8x1xi1>
    %cst_37 = arith.constant 0.000000e+00 : f32
    %87 = vector.shape_cast %86 : vector<8x1xi1> to vector<8x1xi1>
    %88 = vector.broadcast %87 : vector<8x1xi1> to vector<8x32xi1>
    %89 = vector.broadcast %cst_37 : f32 to vector<8x32xf32>
    %90 = arith.select %88, %77, %89 : vector<8x32xi1>, vector<8x32xf32>
    %91 = arith.truncf %90 : vector<8x32xf32> to vector<8x32xbf16>
    %c0_38 = arith.constant 0 : index
    %c0_39 = arith.constant 0 : index
    %c0_40 = arith.constant 0 : index
    %92 = vector.load %arg6[%c0_38, %c0_39, %c0_40] : memref<3x32x32xbf16, #tpu.memory_space<vmem>>, vector<1x32x32xbf16>
    %93 = vector.shape_cast %92 : vector<1x32x32xbf16> to vector<32x32xbf16>
    %cst_41 = arith.constant dense<0.000000e+00> : vector<8x32xf32>
    %94 = tpu.matmul %91, %93, %cst_41 {dimension_numbers = #tpu.dot_dimension_numbers<[1], [0], [0], [1], [0, 0, 1, 1], [], []>} : vector<8x32xbf16>, vector<32x32xbf16>, vector<8x32xf32> -> vector<8x32xf32>
    %95 = arith.truncf %74 : vector<8x32xf32> to vector<8x32xbf16>
    %c1_42 = arith.constant 1 : index
    %c0_43 = arith.constant 0 : index
    %c0_44 = arith.constant 0 : index
    %96 = vector.load %arg6[%c1_42, %c0_43, %c0_44] : memref<3x32x32xbf16, #tpu.memory_space<vmem>>, vector<1x32x32xbf16>
    %97 = vector.shape_cast %96 : vector<1x32x32xbf16> to vector<32x32xbf16>
    %cst_45 = arith.constant dense<0.000000e+00> : vector<8x32xf32>
    %98 = tpu.matmul %95, %97, %cst_45 {dimension_numbers = #tpu.dot_dimension_numbers<[1], [0], [0], [1], [0, 0, 1, 1], [], []>} : vector<8x32xbf16>, vector<32x32xbf16>, vector<8x32xf32> -> vector<8x32xf32>
    %99 = arith.addf %94, %98 : vector<8x32xf32>
    %c7_i32_46 = arith.constant 7 : i32
    %100 = tpu.dynamic_rotate %74 by %c7_i32_46 dim 0 : vector<8x32xf32>, i32 -> vector<8x32xf32>
    %c1_i32_47 = arith.constant 1 : i32
    %101 = vector.broadcast %c1_i32_47 : i32 to vector<8x1xi32>
    %102 = arith.addi %76, %101 : vector<8x1xi32>
    %c0_i32_48 = arith.constant 0 : i32
    %103 = vector.broadcast %c0_i32_48 : i32 to vector<8x1xi32>
    %104 = arith.cmpi sge, %102, %103 : vector<8x1xi32>
    %c1_i32_49 = arith.constant 1 : i32
    %105 = vector.broadcast %c1_i32_49 : i32 to vector<8x1xi32>
    %106 = arith.addi %76, %105 : vector<8x1xi32>
    %c8_i32_50 = arith.constant 8 : i32
    %107 = vector.broadcast %c8_i32_50 : i32 to vector<8x1xi32>
    %108 = arith.cmpi slt, %106, %107 : vector<8x1xi32>
    %109 = arith.andi %104, %108 : vector<8x1xi1>
    %cst_51 = arith.constant 0.000000e+00 : f32
    %110 = vector.shape_cast %109 : vector<8x1xi1> to vector<8x1xi1>
    %111 = vector.broadcast %110 : vector<8x1xi1> to vector<8x32xi1>
    %112 = vector.broadcast %cst_51 : f32 to vector<8x32xf32>
    %113 = arith.select %111, %100, %112 : vector<8x32xi1>, vector<8x32xf32>
    %114 = arith.truncf %113 : vector<8x32xf32> to vector<8x32xbf16>
    %c2_52 = arith.constant 2 : index
    %c0_53 = arith.constant 0 : index
    %c0_54 = arith.constant 0 : index
    %115 = vector.load %arg6[%c2_52, %c0_53, %c0_54] : memref<3x32x32xbf16, #tpu.memory_space<vmem>>, vector<1x32x32xbf16>
    %116 = vector.shape_cast %115 : vector<1x32x32xbf16> to vector<32x32xbf16>
    %cst_55 = arith.constant dense<0.000000e+00> : vector<8x32xf32>
    %117 = tpu.matmul %114, %116, %cst_55 {dimension_numbers = #tpu.dot_dimension_numbers<[1], [0], [0], [1], [0, 0, 1, 1], [], []>} : vector<8x32xbf16>, vector<32x32xbf16>, vector<8x32xf32> -> vector<8x32xf32>
    %118 = arith.addf %99, %117 : vector<8x32xf32>
    %119 = vector.broadcast %75 : vector<1x32xf32> to vector<8x32xf32>
    %120 = arith.addf %118, %119 : vector<8x32xf32>
    %c0_56 = arith.constant 0 : index
    %c0_57 = arith.constant 0 : index
    %121 = vector.load %arg8[%c0_56, %c0_57] : memref<1x32xf32, #tpu.memory_space<vmem>>, vector<1x32xf32>
    %c0_58 = arith.constant 0 : index
    %c0_59 = arith.constant 0 : index
    %122 = vector.load %arg9[%c0_58, %c0_59] : memref<1x32xf32, #tpu.memory_space<vmem>>, vector<1x32xf32>
    %cst_60 = arith.constant dense<0.000000e+00> : vector<8xf32>
    %123 = vector.multi_reduction <add>, %120, %cst_60 [1] : vector<8x32xf32> to vector<8xf32>
    %124 = vector.shape_cast %123 : vector<8xf32> to vector<8x1xf32>
    %cst_61 = arith.constant 3.200000e+01 : f32
    %125 = vector.broadcast %cst_61 : f32 to vector<8x1xf32>
    %126 = arith.divf %124, %125 : vector<8x1xf32>
    %127 = vector.broadcast %126 : vector<8x1xf32> to vector<8x32xf32>
    %128 = arith.subf %120, %127 : vector<8x32xf32>
    %129 = arith.mulf %128, %128 : vector<8x32xf32>
    %cst_62 = arith.constant dense<0.000000e+00> : vector<8xf32>
    %130 = vector.multi_reduction <add>, %129, %cst_62 [1] : vector<8x32xf32> to vector<8xf32>
    %131 = vector.shape_cast %130 : vector<8xf32> to vector<8x1xf32>
    %cst_63 = arith.constant 3.200000e+01 : f32
    %132 = vector.broadcast %cst_63 : f32 to vector<8x1xf32>
    %133 = arith.divf %131, %132 : vector<8x1xf32>
    %134 = vector.broadcast %126 : vector<8x1xf32> to vector<8x32xf32>
    %135 = arith.subf %120, %134 : vector<8x32xf32>
    %cst_64 = arith.constant 9.99999974E-6 : f32
    %136 = vector.broadcast %cst_64 : f32 to vector<8x1xf32>
    %137 = arith.addf %133, %136 : vector<8x1xf32>
    %138 = math.rsqrt %137 : vector<8x1xf32>
    %139 = vector.broadcast %138 : vector<8x1xf32> to vector<8x32xf32>
    %140 = arith.mulf %135, %139 : vector<8x32xf32>
    %141 = vector.broadcast %121 : vector<1x32xf32> to vector<8x32xf32>
    %142 = arith.mulf %140, %141 : vector<8x32xf32>
    %143 = vector.broadcast %122 : vector<1x32xf32> to vector<8x32xf32>
    %144 = arith.addf %142, %143 : vector<8x32xf32>
    %cst_65 = arith.constant 0.000000e+00 : f32
    %145 = vector.broadcast %cst_65 : f32 to vector<8x32xf32>
    %146 = arith.maximumf %144, %145 : vector<8x32xf32>
    %c0_66 = arith.constant 0 : index
    %c0_67 = arith.constant 0 : index
    %147 = vector.load %arg10[%c0_66, %c0_67] : memref<1x32xf32, #tpu.memory_space<vmem>>, vector<1x32xf32>
    %148 = vector.broadcast %147 : vector<1x32xf32> to vector<8x32xf32>
    %149 = arith.mulf %146, %148 : vector<8x32xf32>
    %cst_68 = arith.constant dense<0.000000e+00> : vector<8xf32>
    %150 = vector.multi_reduction <add>, %149, %cst_68 [1] : vector<8x32xf32> to vector<8xf32>
    %151 = vector.shape_cast %150 : vector<8xf32> to vector<8x1xf32>
    %c0_69 = arith.constant 0 : index
    %c0_70 = arith.constant 0 : index
    %152 = vector.load %arg11[%c0_69, %c0_70] : memref<1x1xf32, #tpu.memory_space<vmem>>, vector<1x1xf32>
    %153 = vector.broadcast %152 : vector<1x1xf32> to vector<8x1xf32>
    %154 = arith.addf %151, %153 : vector<8x1xf32>
    %cst_71 = arith.constant 0.000000e+00 : f32
    %155 = vector.broadcast %cst_71 : f32 to vector<8x1xf32>
    %156 = arith.maximumf %154, %155 : vector<8x1xf32>
    %c0_72 = arith.constant 0 : index
    %c0_73 = arith.constant 0 : index
    %c0_74 = arith.constant 0 : index
    %157 = vector.load %arg12[%c0_72, %c0_73, %c0_74] : memref<1x8x1xf32, #tpu.memory_space<vmem>>, vector<1x8x1xf32>
    %158 = vector.shape_cast %157 : vector<1x8x1xf32> to vector<8x1xf32>
    %159 = vector.shape_cast %156 : vector<8x1xf32> to vector<1x8x1xf32>
    tpu.vector_store %arg12[%c0_72, %c0_73, %c0_74], %159 {strides = array<i32>} : memref<1x8x1xf32, #tpu.memory_space<vmem>>, vector<1x8x1xf32>,
    return
  }
  func.func @transform_0(%arg0: i32) -> (i32, i32, i32) {
    %c0_i32 = arith.constant 0 : i32
    %c0_i32_0 = arith.constant 0 : i32
    %c0_i32_1 = arith.constant 0 : i32
    return %arg0, %c0_i32, %c0_i32_0 : i32, i32, i32
  }
  func.func @transform_1(%arg0: i32) -> (i32, i32, i32) {
    %c0_i32 = arith.constant 0 : i32
    %c0_i32_0 = arith.constant 0 : i32
    %c0_i32_1 = arith.constant 0 : i32
    %c0_i32_2 = arith.constant 0 : i32
    return %c0_i32, %c0_i32_0, %c0_i32_1 : i32, i32, i32
  }
  func.func @transform_2(%arg0: i32) -> (i32, i32) {
    %c0_i32 = arith.constant 0 : i32
    %c0_i32_0 = arith.constant 0 : i32
    %c0_i32_1 = arith.constant 0 : i32
    return %c0_i32, %c0_i32_0 : i32, i32
  }
  func.func @transform_3(%arg0: i32) -> (i32, i32) {
    %c0_i32 = arith.constant 0 : i32
    %c0_i32_0 = arith.constant 0 : i32
    %c0_i32_1 = arith.constant 0 : i32
    return %c0_i32, %c0_i32_0 : i32, i32
  }
  func.func @transform_4(%arg0: i32) -> (i32, i32) {
    %c0_i32 = arith.constant 0 : i32
    %c0_i32_0 = arith.constant 0 : i32
    %c0_i32_1 = arith.constant 0 : i32
    return %c0_i32, %c0_i32_0 : i32, i32
  }
  func.func @transform_5(%arg0: i32) -> (i32, i32, i32) {
    %c0_i32 = arith.constant 0 : i32
    %c0_i32_0 = arith.constant 0 : i32
    %c0_i32_1 = arith.constant 0 : i32
    %c0_i32_2 = arith.constant 0 : i32
    return %c0_i32, %c0_i32_0, %c0_i32_1 : i32, i32, i32
  }
  func.func @transform_6(%arg0: i32) -> (i32, i32) {
    %c0_i32 = arith.constant 0 : i32
    %c0_i32_0 = arith.constant 0 : i32
    %c0_i32_1 = arith.constant 0 : i32
    return %c0_i32, %c0_i32_0 : i32, i32
  }
  func.func @transform_7(%arg0: i32) -> (i32, i32) {
    %c0_i32 = arith.constant 0 : i32
    %c0_i32_0 = arith.constant 0 : i32
    %c0_i32_1 = arith.constant 0 : i32
    return %c0_i32, %c0_i32_0 : i32, i32
  }
  func.func @transform_8(%arg0: i32) -> (i32, i32) {
    %c0_i32 = arith.constant 0 : i32
    %c0_i32_0 = arith.constant 0 : i32
    %c0_i32_1 = arith.constant 0 : i32
    return %c0_i32, %c0_i32_0 : i32, i32
  }
  func.func @transform_9(%arg0: i32) -> (i32, i32) {
    %c0_i32 = arith.constant 0 : i32
    %c0_i32_0 = arith.constant 0 : i32
    %c0_i32_1 = arith.constant 0 : i32
    return %c0_i32, %c0_i32_0 : i32, i32
  }
  func.func @transform_10(%arg0: i32) -> (i32, i32) {
    %c0_i32 = arith.constant 0 : i32
    %c0_i32_0 = arith.constant 0 : i32
    %c0_i32_1 = arith.constant 0 : i32
    return %c0_i32, %c0_i32_0 : i32, i32
  }
  func.func @transform_11(%arg0: i32) -> (i32, i32, i32) {
    %c0_i32 = arith.constant 0 : i32
    %c0_i32_0 = arith.constant 0 : i32
    %c0_i32_1 = arith.constant 0 : i32
    return %arg0, %c0_i32, %c0_i32_0 : i32, i32, i32
  }
}

</mosaic_0001>

<bundles_post_ra>
// kernel: custom-call.2
= control target key start
LH: loop header
LB: loop body
LE: loop exit
PB: predicated region body
PF: predicated region fallthrough
CT: control target
= control target key end

     0   :  { %s6_s0 = inlined_call_operand.vmem [shape: u32[2,16], index: 0, kind: output, shape index: {}]  }

// kernel: ne.10
= control target key start
LH: loop header
LB: loop body
LE: loop exit
PB: predicated region body
PF: predicated region fallthrough
CT: control target
= control target key end

     0   :  { %v15_v2 = vmov 0   ;;  %s40_s0 = inlined_call_operand.vmem [shape: f32[2,16], index: 0, kind: input, shape index: {}, may-alias: {0,1}]   ;;  %s41_s1 = inlined_call_operand.vmem [shape: f32[2,16], index: 1, kind: input, shape index: {}, may-alias: {0,1}]   ;;  %s42_s2 = inlined_call_operand.vmem [shape: pred[2,16], index: 2, kind: output, shape index: {}]  }
   0x1   :  { %v3_v0 = vld [vmem:[%s40_s0] sm:$0x3] }
   0x2   :  { %v4_v1 = vld [vmem:[%s41_s1] sm:$0x3] }
   0x3   :  { %vm7_vm0 = vcmp.ne.f32.partialorder %v3_v0, %v4_v1 }
   0x4   :  { %v8_v3 = vsel %vm7_vm0, 1, %v15_v2 }
   0x5   :  { %v10_v4 = vpack.c.b16 %v15_v2, %v8_v3 }
   0x7   :  { %v11_v5 = vpack.c.b8 %v15_v2, %v10_v4 }
   0x9   :  { %13 = vst [vmem:[%s42_s2] sm:$0x1] %v11_v5 }

// kernel: squeeze.17
= control target key start
LH: loop header
LB: loop body
LE: loop exit
PB: predicated region body
PF: predicated region fallthrough
CT: control target
= control target key end

     0   :  { %vm7_vm0 = vcmask 130048   ;;  %s39_s0 = inlined_call_operand.vmem [shape: f32[32], index: 0, kind: input, shape index: {}]   ;;  %s40_s1 = inlined_call_operand.vmem [shape: f32[2,16], index: 1, kind: output, shape index: {}]  }
   0x1   :  { %v4_v0 = vld [vmem:[%s39_s0] sm:$0x1]  ;;  %s22_s0 = smov 112  }
   0x2   :  { %5 = vst [vmem:[#allocation1] sm:$0x1] %v4_v0 }
   0x9   :  { %v9_v1 = vld [vmem:[#allocation1] sm:$0x1]  }
   0xa   :  { %v6_v2 = vld [vmem:[#allocation1] sm:$0x1]   ;;  %10 = vrot.lane.b32.xlu0 %v9_v1, %s22_s0 }
   0xb   :  { %8 = vst.msk [vmem:[#allocation0] sm:$0x1] %vm7_vm0, %v6_v2  }
  0x7c   :  { %v11_v3 = vpop.permute.xlu0 %10  }
  0x7d   :  { %14 = vst.msk [vmem:[#allocation0 + $0x1] sm:$0x1] %vm7_vm0, %v11_v3  }
  0x84   :  { %v18_v4 = vld [vmem:[#allocation0] sm:$0x3] }
  0x85   :  { %20 = vst [vmem:[%s40_s1] sm:$0x3] %v18_v4 }

// kernel: _lambda_.11
= control target key start
LH: loop header
LB: loop body
LE: loop exit
PB: predicated region body
PF: predicated region fallthrough
CT: control target
= control target key end

     0   :  { %9 = vsyncpa [#allocation3], 0  ;;  %s687_s0 = inlined_call_operand.vmem [shape: bf16[2,16,32], index: 0, kind: input, shape index: {}]   ;;  %s688_s1 = inlined_call_operand.vmem [shape: bf16[32,128], index: 1, kind: input, shape index: {}]   ;;  %s689_s2 = inlined_call_operand.vmem [shape: f32[1,128], index: 2, kind: input, shape index: {}]   ;;  %s690_s3 = inlined_call_operand.vmem [shape: f32[2,16,1], index: 3, kind: input, shape index: {}]   ;;  %s691_s4 = inlined_call_operand.hbm [shape: f32[2,16,128], index: 4, kind: output, shape index: {}]  }
   0x1   :  { %11 = vsyncpa [#allocation3 + $0x1], 0  ;;  %s572_s15 = smov 0   ;;  %s574_s16 = smov 0  }
   0x2   :  { %s576_s17 = smov 0   ;;  %s578_s18 = smov 0  }
   0x3 LB: > { %s593_s19 = sadd.s32 4294967295, %s539_s18   ;;  %s394_s20 = sadd.s32 4294967294, %s539_s18   ;;  %s539_s18 = sphi %s578_s18, %s697_s18   ;;  %s535_s17 = sphi %s576_s17, %s696_s17   ;;  %s531_s16 = sphi %s574_s16, %s695_s16   ;;  %s527_s15 = sphi %s572_s15, %s694_s15  }
   0x4   : > { %s597_s21 = sadd.s32 1, %s539_s18   ;;  %s118_s22 = sadd.s32 1, %s535_s17 }
   0x5   : > { %s115_s23 = ssub.s32 %s539_s18, %s597_s21  ;;  %p128_p0 = scmp.ne.s32.totalorder %s535_s17, %s531_s16 }
   0x6   : > { %p116_p1 = scmp.eq.s32.totalorder %s115_s23, 0  ;;  %p129_p2 = scmp.eq.s32.totalorder %s593_s19, 1 }
   0x7   : > { %p134_p3 = scmp.ne.s32.totalorder %s531_s16, %s527_s15  ;;  %p135_p4 = scmp.eq.s32.totalorder %s394_s20, 1 }
   0x8   : > { %s608_s24 = scalar_select %p116_p1, %s535_s17, %s118_s22  }
   0x9   : > { %p610_p5 = por %p129_p2, %p128_p0  ;;  %p614_p6 = por %p135_p4, %p134_p3 }
   0xa   : > { %p397_p7 = scmp.ge.s32.totalorder %s539_s18, 1  ;;  %p175_p8 = scmp.lt.s32.totalorder %s539_s18, 3 }
   0xc   : > { %p176_p9 = pnand %p397_p7, %p175_p8 }
   0xd   : > { %p206_p10 = scmp.lt.s32.totalorder (!%p176_p9), %s593_s19, 1  ;;  %v541_v0 = vmov (!%p176_p9), 0   ;;  %v542_v2 = vmov (!%p176_p9), 0.0   ;;  %v475_v3 = vld [vmem:[%s688_s1] sm:$0xff] (!%p176_p9)   ;;  %v476_v5 = vld [vmem:[%s688_s1 + $0x8] sm:$0xff] (!%p176_p9)   ;;  %vm543_vm0 = vmmov (!%p176_p9), 0  }
   0xe   : > { %179 = sbr.rel (%p176_p9) target bundleno = 393 (0x189), region = 36  ;;  %474 = vset.pattern.permute.xlu0 (!%p176_p9), %v541_v0  ;;  %422 = vmatprep.subr.bf16.mxu0 (!%p176_p9), %v542_v2  ;;  %vm259_vm1 = vcmask (!%p176_p9), 261120   ;;  %s203_s14 = sand.u32 (!%p176_p9), 1, %s531_s16   ;;  %v403_v14 = vld [vmem:[%s689_s2] ss:$0 sm:$0xff] (!%p176_p9) }
   0xf   : > { %423 = vmatpush3.bf16.msra.mxu0 (!%p176_p9), %v475_v3  ;;  %426 = vmatprep.mubr.msk.bf16.mxu0 (!%p176_p9), %vm543_vm0, %v542_v2  ;;  %s398_s20 = sshll.u32 (!%p176_p9), %s203_s14, 4  ;;  %s414_s29 = sshll.u32 (!%p176_p9), %s593_s19, 8 }
  0x10   : > { %424 = vmatprep.subr.bf16.mxu0 (!%p176_p9), %v542_v2  ;;  %s644_s6 = scalar_lea.hbm (!%p176_p9), %s691_s4, %s414_s29  ;;  %s646_s7 = scalar_lea.sflag (!%p176_p9), [#allocation3], %s203_s14 }
  0x11   : > { %s544_s8 = smov (!%p176_p9), [#allocation2]  }
  0x12   : > { %s481_s9 = sshll.u32 (!%p176_p9), %s544_s8, 4  ;;  %s482_s9 = int_to_ptr.vmem [resolvable:$false] %s481_s9 }
  0x13   : > { %425 = vmatpush3.bf16.msra.mxu0 (!%p176_p9), %v476_v5 }
  0x15   : > { %s207_s27 = scalar_select %p206_p10, %s593_s19, 1 }
  0x17   : > { %s413_s28 = sshll.u32 %s207_s27, 4  ;;  %s412_s10 = sshll.u32 %s207_s27, 3 }
  0x18   : > { %s215_s5 = scalar_lea.vmem %s690_s3, %s413_s28  ;;  %s210_s13 = scalar_lea.vmem %s687_s0, %s412_s10 }
  0x19   : > { %v221_v1 = vld [vmem:[%s215_s5] sm:$0xff]  ;;  %v222_v4 = vld [vmem:[%s215_s5 + $0x8] sm:$0xff]  ;;  %s205_s27 = scalar_lea.vmem [#allocation2], %s398_s20  ;;  %s483_s10 = scalar_lea.vmem %s482_s9, 512 }
  0x1a   : > { %225 = vperm.xlu0 %474, %v221_v1   ;;  %v416_v6 = vld [vmem:[%s210_s13] sm:$0xff]   ;;  %s320_s28 = sshll.u32 %s205_s27, 4  ;;  %s639_s28 = int_to_ptr.vmem [resolvable:$true] %s320_s28 }
  0x1b   : > { %v417_v8 = vunpack.c.l.bf16 %v416_v6  ;;  %v418_v9 = vunpack.c.h.bf16 %v416_v6  ;;  %s477_s19 = scalar_lea.vmem %s639_s28, 256  ;;  %p484_p0 = scmp.lt.s32.totalorder %s639_s28, %s482_s9 }
  0x1c   : > { %p478_p11 = scmp.ne.s32.totalorder %s639_s28, %s477_s19  ;;  %p485_p1 = scmp.lt.s32.totalorder %s483_s10, %s477_s19 }
  0x1e   : > { %230 = vperm.xlu0 %474, %v222_v4   ;;  %p479_p12 = pnand %p478_p11, %p610_p5  ;;  %p486_p2 = por %p485_p1, %p484_p0 }
  0x20   : > { %p480_p13 = pneg %p479_p12 }
  0x22   : > { %p487_p3 = pnand %p486_p2, %p480_p13 }
  0x99   : > { %v226_v7 = vpop.permute.xlu0 %225 }
  0x9a   : > { %v233_v11 = vmul.f32 %v417_v8, %v226_v7 }
  0x9d   : > { %v231_v10 = vpop.permute.xlu0 %230 }
  0x9e   : > { %v234_v12 = vmul.f32 %v418_v9, %v231_v10 }
  0xa0   : > { %v235_v13 = vpack.c.bf16 %v234_v12, %v233_v11 }
  0xa2   : > { %427 = vmatmul.mubr.msk.bf16.vlgmr.msra.gmra.mrb[0].mxu0 %vm259_vm1, %v235_v13 }
 0x175   : > { %v297_v15 = vpop.f32.mrb[0].mxu0 }
 0x176   : > { %v298_v16 = vadd.f32 %v403_v14, %v297_v15  ;;  %v428_v17 = vpop.f32.mrb[1].mxu0 }
 0x177   : > { %v300_v18 = vpop.f32.mrb[2].mxu0 }
 0x178   : > { %304 = vst [vmem:[%s205_s27] sm:$0xff] %v298_v16  ;;  %v301_v19 = vadd.f32 %v403_v14, %v300_v18  ;;  %v429_v20 = vpop.f32.mrb[3].mxu0 }
 0x17a   : > { %305 = vst [vmem:[%s205_s27 + $0x8] sm:$0xff] %v301_v19 }
 0x17b   : > { %490 = shalt.err (!%p487_p3)
}
 0x17c   : > { %s491_s11 = scalar_lea.hbm %s644_s6, 256  ;;  %s495_s14 = scalar_lea.hbm %s691_s4, 512 }
 0x17d   : > { %p492_p4 = scmp.ne.s32.totalorder %s644_s6, %s491_s11  ;;  %p496_p9 = scmp.lt.u32.totalorder %s644_s6, %s691_s4 }
 0x17e   : > { %p497_p10 = scmp.lt.u32.totalorder %s495_s14, %s491_s11  ;;  %p499_p12 = scmp.lt.u32.totalorder %s491_s11, %s644_s6 }
 0x17f   : > { %p493_p7 = pnand %p492_p4, %p610_p5 }
 0x180   : > { %p498_p11 = por %p497_p10, %p496_p9 }
 0x181   : > { %p494_p8 = pneg %p493_p7 }
 0x182   : > { %p500_p13 = por %p499_p12, %p498_p11 }
 0x184   : > { %p501_p0 = pnand %p500_p13, %p494_p8 }
 0x186   : > { %504 = shalt.err (!%p501_p0)
}
 0x187   : > { %s545_s23 = smov 128   ;;  %s546_s27 = smov 8  }
 0x188   : > { %430 = dma.vmem_to_hbm [thread:$0]  (%p610_p5), %s639_s28, 256, %s644_s6, %s646_s7, %s545_s23, %s545_s23, %s546_s27  }
 0x189 PF: > { %p436_p1 = scmp.ge.s32.totalorder %s539_s18, 2  ;;  %s335_s29 = sand.u32 1, %s527_s15  }
 0x18a   : > { %s336_s30 = scalar_lea.sflag [#allocation3], %s335_s29 }
 0x18b   : > { %p433_p2 = pnand %p436_p1, %p614_p6 }
 0x18d   : > { %522 = dma.done.wait (!%p433_p2), %s336_s30, 256  }
 0x18e   : > { %524 = vsyncadd (!%p433_p2), %s336_s30, 4294967040  ;;  %p14_p3 = scmp.ge.s32.totalorder %s597_s21, 4   ;;  %s694_s15 = smov %s531_s16 }
 0x18f   : > { %s695_s16 = smov %s535_s17  ;;  %s696_s17 = smov %s608_s24 }
 0x190   : > { %s697_s18 = smov %s597_s21  ;;  %16 = sbr.rel (!%p14_p3) target bundleno = 3 (0x3), region = 74 }
 0x197   :  { %341 = vsyncpa [#allocation3], 1 }
 0x198   :  { %343 = vsyncpa [#allocation3 + $0x1], 1 }

// kernel: _lambda_.8
= control target key start
LH: loop header
LB: loop body
LE: loop exit
PB: predicated region body
PF: predicated region fallthrough
CT: control target
= control target key end

     0   :  { %s1248_s19 = smov 0   ;;  %s1402_s0 = inlined_call_operand.vmem [shape: bf16[2,16,32], index: 0, kind: input, shape index: {}]   ;;  %s1403_s1 = inlined_call_operand.vmem [shape: bf16[3,32,32], index: 1, kind: input, shape index: {}]   ;;  %s1404_s2 = inlined_call_operand.vmem [shape: f32[1,32], index: 2, kind: input, shape index: {}]   ;;  %s1405_s3 = inlined_call_operand.vmem [shape: f32[1,32], index: 3, kind: input, shape index: {}, may-alias: {3,7}]   ;;  %s1406_s4 = inlined_call_operand.vmem [shape: f32[1,32], index: 4, kind: input, shape index: {}, may-alias: {4,8}]   ;;  %s1407_s5 = inlined_call_operand.vmem [shape: bf16[3,32,32], index: 5, kind: input, shape index: {}]   ;;  %s1408_s6 = inlined_call_operand.vmem [shape: f32[1,32], index: 6, kind: input, shape index: {}]   ;;  %s1409_s7 = inlined_call_operand.vmem [shape: f32[1,32], index: 7, kind: input, shape index: {}, may-alias: {3,7}]   ;;  %s1410_s8 = inlined_call_operand.vmem [shape: f32[1,32], index: 8, kind: input, shape index: {}, may-alias: {4,8}]   ;;  %s1411_s9 = inlined_call_operand.vmem [shape: f32[1,32], index: 9, kind: input, shape index: {}]   ;;  %s1412_s10 = inlined_call_operand.<no memory space> [shape: f32[1,1], index: 10, kind: input, shape index: {}]   ;;  %s1413_s11 = inlined_call_operand.vmem [shape: f32[2,16,1], index: 11, kind: output, shape index: {}]  }
   0x1   :  { %v16_v0 = vstv %s1412_s10 }
   0x2   :  { %17 = vst [vmem:[#allocation2] sm:$0x1] %v16_v0 }
   0x3 LB: > { %s1021_s20 = sadd.s32 4294967295, %s1181_s19   ;;  %p1025_p0 = scmp.ge.s32.totalorder %s1181_s19, 1  ;;  %s1181_s19 = sphi %s1248_s19, %s23_s19  }
   0x4   : > { %p339_p1 = scmp.lt.s32.totalorder %s1181_s19, 3 }
   0x6   : > { %p340_p2 = pnand %p1025_p0, %p339_p1 }
   0x7   : > { %v1153_v1 = vld [vmem:[%s1403_s1 + $0x10] sm:$0xff] (!%p340_p2)   ;;  %v1183_v2 = vmov (!%p340_p2), 0.0   ;;  %v1154_v3 = vld [vmem:[%s1403_s1 + $0x18] sm:$0xff] (!%p340_p2)   ;;  %v395_v4 = vlaneseq (!%p340_p2)  ;;  %v1155_v5 = vld [vmem:[%s1403_s1] sm:$0xff] (!%p340_p2)   ;;  %vm1184_vm0 = vmmov (!%p340_p2), 0   ;;  %p379_p3 = scmp.lt.s32.totalorder (!%p340_p2), %s1021_s20, 1 }
   0x8   : > { %343 = sbr.rel (%p340_p2) target bundleno = 1257 (0x4e9), region = 64  ;;  %1095 = vmatprep.subr.bf16.mxu0 (!%p340_p2), %v1183_v2  ;;  %1103 = vmatprep.subr.bf16.mxu1 (!%p340_p2), %v1183_v2  ;;  %v1158_v6 = vld [vmem:[%s1403_s1 + $0x8] sm:$0xff] (!%p340_p2)   ;;  %vm444_vm1 = vcmask (!%p340_p2), 261120   ;;  %v1157_v8 = vld [vmem:[%s1403_s1 + $0x20] sm:$0xff] (!%p340_p2)   ;;  %v1160_v59 = vld [vmem:[%s1407_s5 + $0x10] sm:$0xff] (!%p340_p2)   ;;  %vm963_vm6 = vcmask (!%p340_p2), 7168  }
   0x9   : > { %1096 = vmatpush3.bf16.msra.mxu0 (!%p340_p2), %v1153_v1  ;;  %1099 = vmatprep.mubr.msk.bf16.mxu0 (!%p340_p2), %vm1184_vm0, %v1183_v2  ;;  %v1278_v7 = vshrl.u32 (!%p340_p2), %v395_v4, 7  ;;  %v1159_v19 = vld [vmem:[%s1403_s1 + $0x28] sm:$0xff] (!%p340_p2)   ;;  %v1048_v37 = vld [vmem:[%s1404_s2] ss:$0 sm:$0xff] (!%p340_p2)  ;;  %v1161_v60 = vld [vmem:[%s1407_s5 + $0x18] sm:$0xff] (!%p340_p2)  }
   0xa   : > { %1097 = vmatprep.subr.bf16.mxu0 (!%p340_p2), %v1183_v2  ;;  %1107 = vmatprep.mubr.msk.bf16.mxu1 (!%p340_p2), %vm1184_vm0, %v1183_v2  ;;  %v1162_v61 = vld [vmem:[%s1407_s5] sm:$0xff] (!%p340_p2)   ;;  %v1163_v62 = vld [vmem:[%s1407_s5 + $0x8] sm:$0xff] (!%p340_p2)  }
   0xb   : > { %1104 = vmatpush3.bf16.msra.mxu1 (!%p340_p2), %v1155_v5  ;;  %v1289_v9 = vadd.s32 (!%p340_p2), 4294967295, %v1278_v7  ;;  %v397_v10 = vadd.s32 (!%p340_p2), 8, %v1278_v7  ;;  %vm400_vm2 = vcmp.lt.s32.totalorder (!%p340_p2), %v1278_v7, 1  ;;  %vm547_vm3 = vcmp.lt.s32.totalorder (!%p340_p2), %v1278_v7, 7 }
   0xc   : > { %1105 = vmatprep.subr.bf16.mxu1 (!%p340_p2), %v1183_v2 }
   0xd   : > { %1098 = vmatpush3.bf16.msra.mxu0 (!%p340_p2), %v1154_v3  ;;  %vm405_vm4 = vcmp.ge.s32.totalorder (!%p340_p2), %v1289_v9, 0  ;;  %v1296_v14 = vadd.s32 (!%p340_p2), 1, %v397_v10 }
   0xe   : > { %1111 = vmatprep.subr.bf16.mxu0 (!%p340_p2), %v1183_v2 }
   0xf   : > { %s1415_s20 = smov (!%p379_p3, %s1021_s20), 1  ;;  %1106 = vmatpush3.bf16.msra.mxu1 %v1158_v6  ;;  %vm555_vm5 = vcmp.lt.s32.totalorder %v1296_v14, 16  ;;  %v1068_v14 = vld [vmem:[%s1408_s6] ss:$0 sm:$0xff] }
  0x10   : > { %s1075_s28 = sshll.u32 %s1415_s20, 3  ;;  %1119 = vmatprep.subr.bf16.mxu1 %v1183_v2  ;;  %s1076_s26 = sshll.u32 %s1415_s20, 4 }
  0x11   : > { %s383_s12 = scalar_lea.vmem %s1402_s0, %s1075_s28  ;;  %s388_s29 = scalar_lea.vmem %s1413_s11, %s1076_s26 }
  0x12   : > { %v390_v11 = vld [vmem:[%s383_s12] sm:$0xff]  }
  0x13   : > { %v392_v12 = vunpack.c.l.bf16 %v390_v11  ;;  %v393_v13 = vunpack.c.h.bf16 %v390_v11  ;;  %1100 = vmatmul.mubr.msk.bf16.vlgmr.msra.gmra.mrb[0].mxu0 %vm444_vm1, %v390_v11  ;;  %v1050_v11 = vld [vmem:[%s1406_s4] ss:$0 sm:$0xff] }
  0x14   : > { %1112 = vmatpush3.bf16.msra.mxu0 %v1157_v8  ;;  %1115 = vmatprep.mubr.msk.bf16.mxu0 %vm1184_vm0, %v1183_v2  ;;  %v1049_v8 = vld [vmem:[%s1405_s3] ss:$0 sm:$0xff] }
  0x15   : > { %v398_v15 = vrot.slane %v392_v12, 7  ;;  %v399_v16 = vrot.slane %v393_v13, 7  ;;  %v545_v17 = vrot.slane %v392_v12, 1  ;;  %v546_v18 = vrot.slane %v393_v13, 1  ;;  %1113 = vmatprep.subr.bf16.mxu0 %v1183_v2 }
  0x17   : > { %v401_v20 = vsel %vm400_vm2, %v398_v15, %v399_v16  ;;  %v402_v21 = vsel %vm400_vm2, %v399_v16, %v398_v15  ;;  %v548_v22 = vsel %vm547_vm3, %v545_v17, %v546_v18  ;;  %v549_v23 = vsel %vm547_vm3, %v546_v18, %v545_v17 }
  0x18   : > { %v415_v24 = vsel %vm405_vm4, %v402_v21, 0.0  ;;  %v563_v25 = vsel %vm555_vm5, %v549_v23, 0.0  ;;  %1114 = vmatpush3.bf16.msra.mxu0 %v1159_v19  ;;  %v1164_v21 = vld [vmem:[%s1407_s5 + $0x20] sm:$0xff]  }
  0x19   : > { %v417_v26 = vpack.c.bf16 %v401_v20, %v415_v24  ;;  %v564_v27 = vpack.c.bf16 %v563_v25, %v548_v22  ;;  %1127 = vmatprep.subr.bf16.mxu0 %v1183_v2 }
  0x1b   : > { %1108 = vmatmul.mubr.msk.bf16.vlgmr.msra.gmra.mrb[0].mxu1 %vm444_vm1, %v417_v26  ;;  %1116 = vmatmul.mubr.msk.bf16.vlgmr.msra.gmra.mrb[4].mxu0 %vm444_vm1, %v564_v27 }
  0x1c   : > { %1123 = vmatprep.mubr.msk.bf16.mxu1 %vm1184_vm0, %v1183_v2  ;;  %1131 = vmatprep.mubr.msk.bf16.mxu0 %vm1184_vm0, %v1183_v2 }
  0x1d   : > { %1120 = vmatpush3.bf16.msra.mxu1 %v1160_v59  ;;  %1128 = vmatpush3.bf16.msra.mxu0 %v1162_v61 }
  0x1e   : > { %1121 = vmatprep.subr.bf16.mxu1 %v1183_v2  ;;  %1129 = vmatprep.subr.bf16.mxu0 %v1183_v2 }
  0x21   : > { %1122 = vmatpush3.bf16.msra.mxu1 %v1161_v60  ;;  %1130 = vmatpush3.bf16.msra.mxu0 %v1163_v62 }
  0x22   : > { %1135 = vmatprep.subr.bf16.mxu1 %v1183_v2 }
  0xe6   : > { %v482_v28 = vpop.f32.mrb[0].mxu0 }
  0xe7   : > { %v1101_v29 = vpop.f32.mrb[1].mxu0 }
  0xe8   : > { %v485_v30 = vpop.f32.mrb[2].mxu0 }
  0xe9   : > { %v1102_v31 = vpop.f32.mrb[3].mxu0 }
  0xea   : > { %v1165_v31 = vld [vmem:[%s1407_s5 + $0x28] sm:$0xff]  }
  0xee   : > { %v538_v32 = vpop.f32.mrb[0].mxu1  ;;  %v619_v36 = vpop.f32.mrb[4].mxu0 }
  0xef   : > { %v539_v33 = vadd.f32 %v538_v32, %v482_v28  ;;  %v1109_v34 = vpop.f32.mrb[1].mxu1  ;;  %v1117_v41 = vpop.f32.mrb[5].mxu0 }
  0xf0   : > { %v541_v35 = vpop.f32.mrb[2].mxu1  ;;  %v622_v42 = vpop.f32.mrb[6].mxu0 }
  0xf1   : > { %v542_v38 = vadd.f32 %v541_v35, %v485_v30  ;;  %v1110_v39 = vpop.f32.mrb[3].mxu1  ;;  %v626_v40 = vadd.f32 %v619_v36, %v539_v33  ;;  %v1118_v44 = vpop.f32.mrb[7].mxu0 }
  0xf3   : > { %v627_v43 = vadd.f32 %v622_v42, %v542_v38  ;;  %v634_v45 = vadd.f32 %v1048_v37, %v626_v40 }
  0xf5   : > { %v638_v46 = vsel %vm444_vm1, %v634_v45, 0.0  ;;  %v635_v47 = vadd.f32 %v1048_v37, %v627_v43 }
  0xf6   : > { %639 = vadd.xlane.f32.xlu0 %v638_v46 }
  0xf7   : > { %v641_v48 = vsel %vm444_vm1, %v635_v47, 0.0 }
  0xfa   : > { %642 = vadd.xlane.f32.xlu0 %v641_v48 }
 0x183   : > { %v640_v49 = vpop.xlane.xlu0 %639 }
 0x184   : > { %v645_v50 = vmul.f32 0.03125, %v640_v49 }
 0x186   : > { %v647_v51 = vsub.f32 %v634_v45, %v645_v50 }
 0x187   : > { %v643_v52 = vpop.xlane.xlu0 %642 }
 0x188   : > { %v646_v53 = vmul.f32 0.03125, %v643_v52  ;;  %v649_v54 = vmul.f32 %v647_v51, %v647_v51 }
 0x18a   : > { %v648_v55 = vsub.f32 %v635_v47, %v646_v53  ;;  %v651_v56 = vsel %vm444_vm1, %v649_v54, 0.0 }
 0x18b   : > { %652 = vadd.xlane.f32.xlu1 %v651_v56 }
 0x18c   : > { %v650_v57 = vmul.f32 %v648_v55, %v648_v55 }
 0x18e   : > { %v654_v58 = vsel %vm444_vm1, %v650_v57, 0.0 }
 0x18f   : > { %655 = vadd.xlane.f32.xlu1 %v654_v58 }
 0x218   : > { %v653_v63 = vpop.xlane.xlu1 %652 }
 0x219   : > { %v657_v0 = vmul.f32 0.03125, %v653_v63 }
 0x21b   : > { %v659_v1 = vadd.f32 1e-05, %v657_v0 }
 0x21c   : > { %v656_v3 = vpop.xlane.xlu1 %655 }
 0x21d   : > { %1167 = vrsqrt.f32 %v659_v1  ;;  %v658_v4 = vmul.f32 0.03125, %v656_v3 }
 0x21f   : > { %v660_v5 = vadd.f32 1e-05, %v658_v4 }
 0x221   : > { %1169 = vrsqrt.f32 %v660_v5 }
 0x227   : > { %v1168_v6 = vpop.eup %1167 }
 0x228   : > { %v663_v10 = vmul.f32 %v1168_v6, %v647_v51 }
 0x22a   : > { %v671_v12 = vmul.f32 %v1049_v8, %v663_v10 }
 0x22b   : > { %v1170_v13 = vpop.eup %1169 }
 0x22c   : > { %v679_v15 = vadd.f32 %v1050_v11, %v671_v12  ;;  %v664_v16 = vmul.f32 %v1170_v13, %v648_v55  ;;  %v1070_v12 = vld [vmem:[%s1410_s8] ss:$0 sm:$0xff] }
 0x22e   : > { %v672_v17 = vmul.f32 %v1049_v8, %v664_v16  ;;  %v681_v18 = vmax.f32 %v679_v15, 0.0  ;;  %v1069_v8 = vld [vmem:[%s1409_s7] ss:$0 sm:$0xff] }
 0x230   : > { %v680_v19 = vadd.f32 %v1050_v11, %v672_v17  ;;  %v684_v22 = vrot.slane %v681_v18, 7  ;;  %v813_v25 = vrot.slane %v681_v18, 1 }
 0x232   : > { %v682_v20 = vmax.f32 %v680_v19, 0.0 }
 0x234   : > { %v695_v23 = vpack.c.bf16 %v682_v20, %v681_v18  ;;  %v685_v24 = vrot.slane %v682_v20, 7  ;;  %v814_v26 = vrot.slane %v682_v20, 1  ;;  %v1071_v18 = vld [vmem:[%s1411_s9] ss:$0 sm:$0xff] }
 0x236   : > { %1124 = vmatmul.mubr.msk.bf16.vlgmr.msra.gmra.mrb[4].mxu1 %vm444_vm1, %v695_v23  ;;  %v686_v27 = vsel %vm400_vm2, %v684_v22, %v685_v24  ;;  %v687_v28 = vsel %vm400_vm2, %v685_v24, %v684_v22  ;;  %v816_v29 = vsel %vm547_vm3, %v814_v26, %v813_v25  ;;  %v815_v33 = vsel %vm547_vm3, %v813_v25, %v814_v26  ;;  %v1072_v26 = vld [vmem:[#allocation2] ss:$0 sm:$0xff] }
 0x237   : > { %1136 = vmatpush3.bf16.msra.mxu1 %v1164_v21  ;;  %v688_v30 = vsel %vm405_vm4, %v687_v28, 0.0  ;;  %1139 = vmatprep.mubr.msk.bf16.mxu1 %vm1184_vm0, %v1183_v2  ;;  %v818_v34 = vsel %vm555_vm5, %v816_v29, 0.0 }
 0x238   : > { %v690_v32 = vpack.c.bf16 %v686_v27, %v688_v30  ;;  %1137 = vmatprep.subr.bf16.mxu1 %v1183_v2  ;;  %v819_v9 = vpack.c.bf16 %v818_v34, %v815_v33 }
 0x23a   : > { %1132 = vmatmul.mubr.msk.bf16.vlgmr.msra.gmra.mrb[8].mxu0 %vm444_vm1, %v690_v32 }
 0x23b   : > { %1138 = vmatpush3.bf16.msra.mxu1 %v1165_v31 }
 0x23e   : > { %1140 = vmatmul.mubr.msk.bf16.vlgmr.msra.gmra.mrb[8].mxu1 %vm444_vm1, %v819_v9 }
 0x309   : > { %v750_v35 = vpop.f32.mrb[4].mxu1 }
 0x30a   : > { %v1125_v36 = vpop.f32.mrb[5].mxu1 }
 0x30b   : > { %v753_v37 = vpop.f32.mrb[6].mxu1 }
 0x30c   : > { %v1126_v38 = vpop.f32.mrb[7].mxu1 }
 0x30d   : > { %v806_v39 = vpop.f32.mrb[8].mxu0 }
 0x30e   : > { %v807_v40 = vadd.f32 %v806_v39, %v750_v35  ;;  %v1133_v41 = vpop.f32.mrb[9].mxu0 }
 0x30f   : > { %v809_v2 = vpop.f32.mrb[10].mxu0 }
 0x310   : > { %v810_v42 = vadd.f32 %v809_v2, %v753_v37  ;;  %v1134_v7 = vpop.f32.mrb[11].mxu0 }
 0x311   : > { %v874_v43 = vpop.f32.mrb[8].mxu1 }
 0x312   : > { %v881_v44 = vadd.f32 %v874_v43, %v807_v40  ;;  %v1141_v45 = vpop.f32.mrb[9].mxu1 }
 0x313   : > { %v877_v46 = vpop.f32.mrb[10].mxu1 }
 0x314   : > { %v882_v47 = vadd.f32 %v877_v46, %v810_v42  ;;  %v1142_v48 = vpop.f32.mrb[11].mxu1  ;;  %v889_v49 = vadd.f32 %v1068_v14, %v881_v44 }
 0x316   : > { %v893_v50 = vsel %vm444_vm1, %v889_v49, 0.0  ;;  %v890_v51 = vadd.f32 %v1068_v14, %v882_v47 }
 0x317   : > { %894 = vadd.xlane.f32.xlu0 %v893_v50 }
 0x318   : > { %v896_v52 = vsel %vm444_vm1, %v890_v51, 0.0 }
 0x319   : > { %897 = vadd.xlane.f32.xlu1 %v896_v52 }
 0x3a4   : > { %v895_v53 = vpop.xlane.xlu0 %894 }
 0x3a5   : > { %v899_v54 = vmul.f32 0.03125, %v895_v53 }
 0x3a6   : > { %v898_v55 = vpop.xlane.xlu1 %897 }
 0x3a7   : > { %v901_v56 = vsub.f32 %v889_v49, %v899_v54  ;;  %v900_v57 = vmul.f32 0.03125, %v898_v55 }
 0x3a9   : > { %v902_v58 = vsub.f32 %v890_v51, %v900_v57  ;;  %v903_v59 = vmul.f32 %v901_v56, %v901_v56 }
 0x3ab   : > { %v905_v60 = vsel %vm444_vm1, %v903_v59, 0.0  ;;  %v904_v61 = vmul.f32 %v902_v58, %v902_v58 }
 0x3ac   : > { %906 = vadd.xlane.f32.xlu0 %v905_v60 }
 0x3ad   : > { %v908_v62 = vsel %vm444_vm1, %v904_v61, 0.0 }
 0x3ae   : > { %909 = vadd.xlane.f32.xlu1 %v908_v62 }
 0x439   : > { %v907_v63 = vpop.xlane.xlu0 %906 }
 0x43a   : > { %v911_v0 = vmul.f32 0.03125, %v907_v63 }
 0x43b   : > { %v910_v1 = vpop.xlane.xlu1 %909 }
 0x43c   : > { %v913_v3 = vadd.f32 1e-05, %v911_v0  ;;  %v912_v4 = vmul.f32 0.03125, %v910_v1 }
 0x43e   : > { %1171 = vrsqrt.f32 %v913_v3  ;;  %v914_v5 = vadd.f32 1e-05, %v912_v4 }
 0x440   : > { %1173 = vrsqrt.f32 %v914_v5 }
 0x448   : > { %v1172_v6 = vpop.eup %1171 }
 0x449   : > { %v917_v10 = vmul.f32 %v1172_v6, %v901_v56 }
 0x44a   : > { %v1174_v11 = vpop.eup %1173 }
 0x44b   : > { %v925_v13 = vmul.f32 %v1069_v8, %v917_v10  ;;  %v918_v15 = vmul.f32 %v1174_v11, %v902_v58 }
 0x44d   : > { %v933_v16 = vadd.f32 %v1070_v12, %v925_v13  ;;  %v926_v17 = vmul.f32 %v1069_v8, %v918_v15 }
 0x44f   : > { %v935_v19 = vmax.f32 %v933_v16, 0.0  ;;  %v934_v20 = vadd.f32 %v1070_v12, %v926_v17 }
 0x451   : > { %v944_v21 = vmul.f32 %v1071_v18, %v935_v19  ;;  %v936_v22 = vmax.f32 %v934_v20, 0.0 }
 0x453   : > { %v946_v23 = vsel %vm444_vm1, %v944_v21, 0.0  ;;  %v945_v24 = vmul.f32 %v1071_v18, %v936_v22 }
 0x454   : > { %947 = vadd.xlane.f32.xlu0 %v946_v23 }
 0x455   : > { %v949_v25 = vsel %vm444_vm1, %v945_v24, 0.0 }
 0x456   : > { %950 = vadd.xlane.f32.xlu1 %v949_v25 }
 0x4e1   : > { %v948_v27 = vpop.xlane.xlu0 %947 }
 0x4e2   : > { %v959_v28 = vadd.f32 %v1072_v26, %v948_v27 }
 0x4e3   : > { %v951_v29 = vpop.xlane.xlu1 %950 }
 0x4e4   : > { %v961_v30 = vmax.f32 %v959_v28, 0.0  ;;  %v960_v31 = vadd.f32 %v1072_v26, %v951_v29 }
 0x4e6   : > { %964 = vst.msk [vmem:[%s388_s29] sm:$0xff] %vm963_vm6, %v961_v30  ;;  %v962_v32 = vmax.f32 %v960_v31, 0.0 }
 0x4e8   : > { %965 = vst.msk [vmem:[%s388_s29 + $0x8] sm:$0xff] %vm963_vm6, %v962_v32 }
 0x4e9 PF: > { %s23_s19 = sadd.s32 1, %s1181_s19  }
 0x4ea   : > { %p20_p4 = scmp.ge.s32.totalorder %s23_s19, 4  }
 0x4ec   :  { %22 = sbr.rel (!%p20_p4) target bundleno = 3 (0x3), region = 98 }

// kernel: _lambda_.6
= control target key start
LH: loop header
LB: loop body
LE: loop exit
PB: predicated region body
PF: predicated region fallthrough
CT: control target
= control target key end

     0   :  { %s3196_s0 = inlined_call_operand.vmem [shape: bf16[2,8,32], index: 0, kind: input, shape index: {}]   ;;  %s3197_s1 = inlined_call_operand.vmem [shape: f32[2,1,8], index: 1, kind: input, shape index: {}]   ;;  %s3198_s2 = inlined_call_operand.vmem [shape: f32[2,8,1], index: 2, kind: input, shape index: {}]   ;;  %s3199_s3 = inlined_call_operand.vmem [shape: bf16[2,32,16], index: 3, kind: input, shape index: {}]   ;;  %s3200_s4 = inlined_call_operand.vmem [shape: f32[2,1,16], index: 4, kind: input, shape index: {}]   ;;  %s3201_s5 = inlined_call_operand.vmem [shape: bf16[2,32,16], index: 5, kind: input, shape index: {}]   ;;  %s3202_s6 = inlined_call_operand.vmem [shape: f32[2,1,16], index: 6, kind: input, shape index: {}]   ;;  %s3203_s7 = inlined_call_operand.vmem [shape: bf16[2,32,16], index: 7, kind: input, shape index: {}]   ;;  %s3204_s8 = inlined_call_operand.vmem [shape: f32[2,1,16], index: 8, kind: input, shape index: {}]   ;;  %s3205_s9 = inlined_call_operand.vmem [shape: bf16[2,16,32], index: 9, kind: input, shape index: {}]   ;;  %s3206_s10 = inlined_call_operand.vmem [shape: f32[1,32], index: 10, kind: input, shape index: {}]   ;;  %s3207_s11 = inlined_call_operand.vmem [shape: f32[1,32], index: 11, kind: input, shape index: {}, may-alias: {11,17}]   ;;  %s3208_s12 = inlined_call_operand.vmem [shape: f32[1,32], index: 12, kind: input, shape index: {}, may-alias: {12,18}]   ;;  %s3209_s13 = inlined_call_operand.vmem [shape: bf16[9,32,64], index: 13, kind: input, shape index: {}]   ;;  %s3210_s14 = inlined_call_operand.vmem [shape: f32[1,64], index: 14, kind: input, shape index: {}]   ;;  %s3211_s15 = inlined_call_operand.vmem [shape: bf16[1,64,32], index: 15, kind: input, shape index: {}]   ;;  %s3212_s16 = inlined_call_operand.vmem [shape: f32[1,32], index: 16, kind: input, shape index: {}]   ;;  %s3213_s17 = inlined_call_operand.vmem [shape: f32[1,32], index: 17, kind: input, shape index: {}, may-alias: {11,17}]   ;;  %s3214_s18 = inlined_call_operand.vmem [shape: f32[1,32], index: 18, kind: input, shape index: {}, may-alias: {12,18}]   ;;  %s3215_s19 = inlined_call_operand.vmem [shape: bf16[2,8,32], index: 19, kind: output, shape index: {}]  }
   0x1   :  { %3217 = sst [smem:[#allocation2_spill]] %s3196_s0  ;;  %s2855_s0 = smov 0  }
   0x2   :  { %3218 = sst [smem:[#allocation3_spill]] %s3197_s1 }
   0x3   :  { %3219 = sst [smem:[#allocation4_spill]] %s3198_s2 }
   0x4   :  { %3220 = sst [smem:[#allocation5_spill]] %s3199_s3 }
   0x5 LB: > { %s2326_s30 = sadd.s32 4294967295, %s2750_s0   ;;  %p2330_p0 = scmp.ge.s32.totalorder %s2750_s0, 1  ;;  %s2750_s0 = sphi %s2855_s0, %s29_s0  }
   0x6   : > { %p553_p1 = scmp.lt.s32.totalorder %s2750_s0, 3 }
   0x8   : > { %p554_p2 = pnand %p2330_p0, %p553_p1 }
   0x9   : > { %s3221_s1 = sld [smem:[#allocation5_spill]] (!%p554_p2)  ;;  %v2752_v1 = vmov (!%p554_p2), 0.0   ;;  %vm2753_vm0 = vmmov (!%p554_p2), 0   ;;  %p614_p3 = scmp.lt.s32.totalorder (!%p554_p2), %s2326_s30, 1  ;;  %vm657_vm1 = vcmask (!%p554_p2), 261120   ;;  %v2698_v3 = vld [vmem:[%s3201_s5] sm:$0xff] (!%p554_p2)   ;;  %v907_v21 = vlaneseq (!%p554_p2) }
   0xa   : > { %557 = sbr.rel (%p554_p2) target bundleno = 3069 (0xbfd), region = 96  ;;  %2520 = vmatprep.subr.bf16.mxu1 (!%p554_p2), %v2752_v1  ;;  %2536 = vmatprep.subr.bf16.mxu0 (!%p554_p2), %v2752_v1  ;;  %s3222_s27 = sld [smem:[#allocation2_spill]] (!%p554_p2)  ;;  %v2699_v5 = vld [vmem:[%s3201_s5 + $0x8] sm:$0xff] (!%p554_p2)   ;;  %v2338_v10 = vld [vmem:[%s3202_s6] ss:$0 sm:$0xff] (!%p554_p2)  ;;  %vm827_vm2 = vcmask (!%p554_p2), 130048  }
   0xb   : > { %2524 = vmatprep.mubr.msk.bf16.mxu1 (!%p554_p2), %vm2753_vm0, %v2752_v1  ;;  %2540 = vmatprep.mubr.msk.bf16.mxu0 (!%p554_p2), %vm2753_vm0, %v2752_v1  ;;  %v2334_v12 = vld [vmem:[%s3200_s4] ss:$0 sm:$0xff] (!%p554_p2)  ;;  %v2754_v18 = vmov (!%p554_p2), 0   ;;  %v2701_v20 = vld [vmem:[%s3203_s7 + $0x8] sm:$0xff] (!%p554_p2)   ;;  %s3223_s20 = sld [smem:[#allocation3_spill]] (!%p554_p2)  ;;  %v2930_v23 = vshrl.u32 (!%p554_p2), %v907_v21, 7 }
   0xc   : > { %2695 = vset.pattern.permute.xlu0 (!%p554_p2), %v2754_v18  ;;  %v2700_v19 = vld [vmem:[%s3203_s7] sm:$0xff] (!%p554_p2)   ;;  %vm913_vm5 = vcmask (!%p554_p2), 64512   ;;  %v2702_v47 = vld [vmem:[%s3201_s5 + $0x10] sm:$0xff] (!%p554_p2)   ;;  %v2704_v49 = vld [vmem:[%s3201_s5 + $0x18] sm:$0xff] (!%p554_p2)   ;;  %vm2174_vm14 = vcmask (!%p554_p2), 523264   ;;  %vm2250_vm15 = vcmask (!%p554_p2), 257024  }
   0xd   : > { %2537 = vmatpush3.bf16.msra.mxu0 (!%p554_p2), %v2700_v19  ;;  %v909_v24 = vsub.s32 (!%p554_p2), 0, %v2930_v23  ;;  %v2342_v40 = vld [vmem:[%s3204_s8] ss:$0 sm:$0xff] (!%p554_p2)  ;;  %v2363_v56 = vld [vmem:[%s3202_s6 + $0x1] ss:$0 sm:$0xff] (!%p554_p2) }
   0xe   : > { %2538 = vmatprep.subr.bf16.mxu0 (!%p554_p2), %v2752_v1  ;;  %v2354_v57 = vld [vmem:[%s3200_s4 + $0x1] ss:$0 sm:$0xff] (!%p554_p2) }
   0xf   : > { %v2696_v0 = vld [vmem:[%s3221_s1] sm:$0xff] (!%p554_p2)   ;;  %v2697_v2 = vld [vmem:[%s3221_s1 + $0x8] sm:$0xff] (!%p554_p2)   ;;  %v2703_v43 = vld [vmem:[%s3221_s1 + $0x10] sm:$0xff] (!%p554_p2)  }
  0x10   : > { %2521 = vmatpush3.bf16.msra.mxu1 (!%p554_p2), %v2696_v0  ;;  %v2705_v44 = vld [vmem:[%s3221_s1 + $0x18] sm:$0xff] (!%p554_p2)   ;;  %v2706_v0 = vld [vmem:[%s3203_s7 + $0x10] sm:$0xff] (!%p554_p2)  }
  0x11   : > { %2522 = vmatprep.subr.bf16.mxu1 %v2752_v1  ;;  %s3226_s30 = smov (!%p614_p3, %s2326_s30), 1  ;;  %2539 = vmatpush3.bf16.msra.mxu0 %v2701_v20 }
  0x12   : > { %s2331_s23 = sshll.u32 %s3226_s30, 2  ;;  %2554 = vmatprep.subr.bf16.mxu0 %v2752_v1  ;;  %s620_s21 = scalar_lea.vmem %s3223_s20, %s3226_s30 }
  0x13   : > { %s617_s28 = scalar_lea.vmem %s3222_s27, %s2331_s23  ;;  %v632_v22 = vld [vmem:[%s620_s21] sm:$0x1]  ;;  %s2332_s3 = sshll.u32 %s3226_s30, 3 }
  0x14   : > { %2523 = vmatpush3.bf16.msra.mxu1 %v2697_v2  ;;  %v2888_v4 = vld [vmem:[%s617_s28] sm:$0xf]  ;;  %vm905_vm3 = vcmp.gt.f32.partialorder %v632_v22, 0.0  ;;  %v2707_v2 = vld [vmem:[%s3203_s7 + $0x18] sm:$0xff]   ;;  %s3224_s28 = sld [smem:[#allocation4_spill]]  ;;  %s628_s2 = scalar_lea.vmem %s3215_s19, %s2331_s23 }
  0x15   : > { %2528 = vmatprep.subr.bf16.mxu1 %v2752_v1  ;;  %2541 = vmatmul.mubr.msk.bf16.vlgmr.msra.gmra.mrb[0].mxu0 %vm657_vm1, %v2888_v4  ;;  %v906_v25 = vsel %vm905_vm3, 1, %v2754_v18  ;;  %v2708_v22 = vld [vmem:[%s3205_s9] sm:$0xff]  }
  0x16   : > { %2558 = vmatprep.mubr.msk.bf16.mxu0 %vm2753_vm0, %v2752_v1  ;;  %v2933_v26 = vrot.slane %v906_v25, %v909_v24  ;;  %2555 = vmatpush3.bf16.msra.mxu0 %v2703_v43 }
  0x17   : > { %2525 = vmatmul.mubr.msk.bf16.vlgmr.msra.gmra.mrb[0].mxu1 %vm657_vm1, %v2888_v4  ;;  %2556 = vmatprep.subr.bf16.mxu0 %v2752_v1 }
  0x18   : > { %2529 = vmatpush3.bf16.msra.mxu1 %v2698_v3  ;;  %2532 = vmatprep.mubr.msk.bf16.mxu1 %vm2753_vm0, %v2752_v1  ;;  %vm911_vm4 = vcmp.eq.s32.totalorder %v2933_v26, 1  ;;  %v2709_v26 = vld [vmem:[%s3205_s9 + $0x8] sm:$0xff]  }
  0x19   : > { %2530 = vmatprep.subr.bf16.mxu1 %v2752_v1 }
  0x1a   : > { %2557 = vmatpush3.bf16.msra.mxu0 %v2705_v44  ;;  %s624_s29 = scalar_lea.vmem %s3224_s28, %s2332_s3 }
  0x1b   : > { %2570 = vmatprep.subr.bf16.mxu0 %v2752_v1  ;;  %v633_v44 = vld [vmem:[%s624_s29] sm:$0xff] }
  0x1c   : > { %2531 = vmatpush3.bf16.msra.mxu1 %v2699_v5 }
  0x1d   : > { %2544 = vmatprep.subr.mxu1 %v2752_v1  ;;  %2559 = vmatmul.mubr.msk.bf16.vlgmr.msra.gmra.mrb[4].mxu0 %vm657_vm1, %v2888_v4 }
  0x1e   : > { %2574 = vmatprep.mubr.msk.bf16.mxu0 %vm2753_vm0, %v2752_v1  ;;  %2571 = vmatpush3.bf16.msra.mxu0 %v2706_v0 }
  0x1f   : > { %2533 = vmatmul.mubr.msk.bf16.vlgmr.msra.gmra.mrb[4].mxu1 %vm657_vm1, %v2888_v4  ;;  %2572 = vmatprep.subr.bf16.mxu0 %v2752_v1 }
  0x20   : > { %2546 = vmatprep.mubr.msk.f32.mxu1 %vm2753_vm0, %v2752_v1 }
  0x22   : > { %2573 = vmatpush3.bf16.msra.mxu0 %v2707_v2 }
  0x23   : > { %2583 = vmatprep.subr.mxu0 %v2752_v1 }
  0x25   : > { %2575 = vmatmul.mubr.msk.bf16.vlgmr.msra.gmra.mrb[8].mxu0 %vm657_vm1, %v2888_v4 }
  0x26   : > { %2585 = vmatprep.mubr.msk.f32.mxu0 %vm2753_vm0, %v2752_v1 }
  0xe8   : > { %v821_v37 = vpop.f32.mrb[0].mxu0 }
  0xe9   : > { %v2542_v38 = vpop.f32.mrb[1].mxu0  ;;  %v822_v42 = vadd.f32 %v2342_v40, %v821_v37 }
  0xea   : > { %v695_v6 = vpop.f32.mrb[0].mxu1  ;;  %v824_v39 = vpop.f32.mrb[2].mxu0  ;;  %v631_v38 = vunpack.c.l.bf16 %v2888_v4 }
  0xeb   : > { %v2526_v7 = vpop.f32.mrb[1].mxu1  ;;  %v696_v17 = vadd.f32 %v2334_v12, %v695_v6  ;;  %v2543_v41 = vpop.f32.mrb[3].mxu0 }
  0xec   : > { %v698_v8 = vpop.f32.mrb[2].mxu1 }
  0xed   : > { %v2527_v9 = vpop.f32.mrb[3].mxu1 }
  0xf0   : > { %v1060_v50 = vpop.f32.mrb[4].mxu0 }
  0xf1   : > { %v2560_v51 = vpop.f32.mrb[5].mxu0  ;;  %v1061_v62 = vadd.f32 %v2354_v57, %v1060_v50  ;;  %v2711_v50 = vld [vmem:[%s3209_s13] sm:$0xff]  }
  0xf2   : > { %v758_v11 = vpop.f32.mrb[4].mxu1  ;;  %v1063_v52 = vpop.f32.mrb[6].mxu0  ;;  %v2712_v51 = vld [vmem:[%s3209_s13 + $0x18] sm:$0xff]   ;;  %v2386_v57 = vld [vmem:[%s3207_s11] ss:$0 sm:$0xff] }
  0xf3   : > { %v759_v13 = vadd.f32 %v2338_v10, %v758_v11  ;;  %v2534_v14 = vpop.f32.mrb[5].mxu1  ;;  %v2561_v53 = vpop.f32.mrb[7].mxu0  ;;  %v2713_v52 = vld [vmem:[%s3209_s13 + $0x8] sm:$0xff]  }
  0xf4   : > { %v761_v15 = vpop.f32.mrb[6].mxu1 }
  0xf5   : > { %v2535_v16 = vpop.f32.mrb[7].mxu1  ;;  %2545 = vmatpush3.xpose.msk.msra.mxu1 %vm827_vm2, %v759_v13 }
  0xf6   : > { %2549 = vmatprep.subr.mxu1 %v2752_v1 }
  0xf8   : > { %2547 = vmatmul.mubr.msk.f32.vlgmr.msra.gmra.mrb[8].mxu1 %vm827_vm2, %v696_v17  ;;  %v1190_v14 = vpop.f32.mrb[8].mxu0  ;;  %v2372_v17 = vld [vmem:[%s3204_s8 + $0x1] ss:$0 sm:$0xff] }
  0xf9   : > { %2551 = vmatprep.mubr.msk.f32.mxu1 %vm2753_vm0, %v2752_v1  ;;  %2550 = vmatpush3.msra.mxu1 %v822_v42  ;;  %v2576_v15 = vpop.f32.mrb[9].mxu0  ;;  %v1191_v19 = vadd.f32 %v2372_v17, %v1190_v14  ;;  %v2717_v17 = vld [vmem:[%s3209_s13 + $0x38] sm:$0xff]  }
  0xfa   : > { %2562 = vmatprep.subr.bf16.mxu1 %v2752_v1  ;;  %v1193_v16 = vpop.f32.mrb[10].mxu0 }
  0xfb   : > { %v2577_v18 = vpop.f32.mrb[11].mxu0  ;;  %2584 = vmatpush3.msra.mxu0 %v1191_v19  ;;  %v2716_v16 = vld [vmem:[%s3209_s13 + $0x28] sm:$0xff]  }
  0xfc   : > { %2594 = vmatprep.subr.bf16.mxu0 %v2752_v1 }
 0x1cb   : > { %v900_v27 = vpop.f32.mrb[8].mxu1 }
 0x1cc   : > { %v904_v28 = vmul.f32 0.25, %v900_v27  ;;  %v2548_v29 = vpop.f32.mrb[9].mxu1 }
 0x1ce   : > { %v912_v30 = vsel %vm911_vm4, %v904_v28, -1e+09 }
 0x1cf   : > { %v914_v31 = vsel %vm913_vm5, %v912_v30, -inf }
 0x1d0   : > { %915 = vmax.xlane.f32.xlu0 %v914_v31 }
 0x25d   : > { %v916_v32 = vpop.xlane.xlu0 %915 }
 0x25e   : > { %v917_v33 = vsub.f32 %v912_v30, %v916_v32 }
 0x260   : > { %v918_v34 = vmul.f32 1.442695, %v917_v33 }
 0x262   : > { %2732 = vpow2.f32 %v918_v34 }
 0x26c   : > { %v2733_v35 = vpop.eup %2732 }
 0x26d   : > { %v920_v36 = vsel %vm913_vm5, %v2733_v35, 0.0 }
 0x26e   : > { %921 = vadd.xlane.f32.xlu0 %v920_v36 }
 0x2fb   : > { %v922_v45 = vpop.xlane.xlu0 %921 }
 0x2fc   : > { %2734 = vrcp.f32 %v922_v45 }
 0x306   : > { %v2735_v46 = vpop.eup %2734 }
 0x307   : > { %v924_v48 = vmul.f32 %v2735_v46, %v2733_v35  ;;  %v2385_v35 = vld [vmem:[%s3206_s10] ss:$0 sm:$0xff] }
 0x309   : > { %2552 = vmatmul.mubr.msk.f32.vlgmr.msra.gmra.mrb[10].mxu1 %vm913_vm5, %v924_v48 }
 0x30a   : > { %2563 = vmatpush3.bf16.msra.mxu1 %v2702_v47  ;;  %2566 = vmatprep.mubr.msk.bf16.mxu1 %vm2753_vm0, %v2752_v1 }
 0x30b   : > { %2564 = vmatprep.subr.bf16.mxu1 %v2752_v1 }
 0x30e   : > { %2565 = vmatpush3.bf16.msra.mxu1 %v2704_v49  ;;  %v2710_v49 = vld [vmem:[%s3209_s13 + $0x10] sm:$0xff]  }
 0x30f   : > { %2578 = vmatprep.subr.mxu1 %v2752_v1 }
 0x311   : > { %2567 = vmatmul.mubr.msk.bf16.vlgmr.msra.gmra.mrb[12].mxu1 %vm657_vm1, %v2888_v4 }
 0x312   : > { %2580 = vmatprep.mubr.msk.f32.mxu1 %vm2753_vm0, %v2752_v1 }
 0x3dc   : > { %v994_v54 = vpop.f32.mrb[10].mxu1 }
 0x3dd   : > { %v2553_v55 = vpop.f32.mrb[11].mxu1  ;;  %v998_v25 = vpack.c.bf16 %v994_v54, %v994_v54 }
 0x3e4   : > { %v1125_v58 = vpop.f32.mrb[12].mxu1 }
 0x3e5   : > { %v1126_v59 = vadd.f32 %v2363_v56, %v1125_v58  ;;  %v2568_v60 = vpop.f32.mrb[13].mxu1 }
 0x3e6   : > { %v1128_v61 = vpop.f32.mrb[14].mxu1 }
 0x3e7   : > { %v2569_v63 = vpop.f32.mrb[15].mxu1  ;;  %2579 = vmatpush3.xpose.msk.msra.mxu1 %vm827_vm2, %v1126_v59  ;;  %v2387_v59 = vld [vmem:[%s3208_s12] ss:$0 sm:$0xff] }
 0x3e8   : > { %2588 = vmatprep.subr.bf16.mxu1 %v2752_v1  ;;  %v1509_v63 = vadd.s32 4294967292, %v2930_v23 }
 0x3ea   : > { %2581 = vmatmul.mubr.msk.f32.vlgmr.msra.gmra.mrb[16].mxu1 %vm827_vm2, %v1061_v62  ;;  %v1522_v62 = vadd.s32 4294967293, %v2930_v23  ;;  %vm1510_vm7 = vcmp.ge.s32.totalorder %v1509_v63, 0 }
 0x3eb   : > { %2590 = vmatprep.mubr.msk.bf16.mxu1 %vm2753_vm0, %v2752_v1  ;;  %2589 = vmatpush3.bf16.msra.mxu1 %v2709_v26 }
 0x3ec   : > { %2600 = vmatprep.subr.bf16.mxu1 %v2752_v1  ;;  %vm1523_vm6 = vcmp.ge.s32.totalorder %v1522_v62, 0 }
 0x4bd   : > { %v1268_v3 = vpop.f32.mrb[16].mxu1 }
 0x4be   : > { %v1272_v5 = vmul.f32 0.25, %v1268_v3  ;;  %v2582_v6 = vpop.f32.mrb[17].mxu1 }
 0x4bf   : > { %v1646_v6 = vadd.s32 4294967294, %v2930_v23 }
 0x4c0   : > { %v1273_v7 = vsel %vm911_vm4, %v1272_v5, -1e+09 }
 0x4c1   : > { %v1274_v8 = vsel %vm913_vm5, %v1273_v7, -inf  ;;  %vm1647_vm8 = vcmp.ge.s32.totalorder %v1646_v6, 0 }
 0x4c2   : > { %1275 = vmax.xlane.f32.xlu1 %v1274_v8 }
 0x54f   : > { %v1276_v9 = vpop.xlane.xlu1 %1275 }
 0x550   : > { %v1277_v10 = vsub.f32 %v1273_v7, %v1276_v9  ;;  %v1716_v7 = vadd.s32 4294967295, %v2930_v23 }
 0x552   : > { %v1278_v11 = vmul.f32 1.442695, %v1277_v10  ;;  %v2714_v10 = vld [vmem:[%s3209_s13 + $0x20] sm:$0xff]   ;;  %vm1717_vm9 = vcmp.ge.s32.totalorder %v1716_v7, 0 }
 0x554   : > { %2736 = vpow2.f32 %v1278_v11  ;;  %v2715_v11 = vld [vmem:[%s3209_s13 + $0x30] sm:$0xff]  }
 0x55e   : > { %v2737_v12 = vpop.eup %2736 }
 0x55f   : > { %v1280_v13 = vsel %vm913_vm5, %v2737_v12, 0.0 }
 0x560   : > { %1281 = vadd.xlane.f32.xlu1 %v1280_v13 }
 0x5ed   : > { %v1282_v20 = vpop.xlane.xlu1 %1281 }
 0x5ee   : > { %2738 = vrcp.f32 %v1282_v20  ;;  %v1848_v20 = vadd.s32 1, %v2930_v23 }
 0x5f0   : > { %vm1850_vm10 = vcmp.lt.s32.totalorder %v1848_v20, 8 }
 0x5f8   : > { %v2739_v21 = vpop.eup %2738 }
 0x5f9   : > { %v1284_v24 = vmul.f32 %v2739_v21, %v2737_v12  ;;  %v2718_v21 = vld [vmem:[%s3209_s13 + $0x40] sm:$0xff]  }
 0x5fb   : > { %2586 = vmatmul.mubr.msk.f32.vlgmr.msra.gmra.mrb[12].mxu0 %vm913_vm5, %v1284_v24 }
 0x5fc   : > { %2595 = vmatpush3.bf16.msra.mxu0 %v2708_v22  ;;  %2596 = vmatprep.mubr.msk.bf16.mxu0 %vm2753_vm0, %v2752_v1  ;;  %v2719_v22 = vld [vmem:[%s3209_s13 + $0x50] sm:$0xff]  }
 0x5fd   : > { %2608 = vmatprep.subr.bf16.mxu0 %v2752_v1 }
 0x5ff   : > { %2597 = vmatmul.mubr.msk.bf16.vlgmr.msra.gmra.mrb[16].mxu0 %vm827_vm2, %v998_v25 }
 0x600   : > { %2612 = vmatprep.mubr.msk.bf16.mxu0 %vm2753_vm0, %v2752_v1  ;;  %2609 = vmatpush3.bf16.msra.mxu0 %v2711_v50  ;;  %v2731_v50 = vld [vmem:[%s3211_s15 + $0x18] sm:$0xff]  }
 0x601   : > { %2610 = vmatprep.subr.bf16.mxu0 %v2752_v1 }
 0x604   : > { %2611 = vmatpush3.bf16.msra.mxu0 %v2713_v52 }
 0x605   : > { %2624 = vmatprep.subr.bf16.mxu0 %v2752_v1 }
 0x6ce   : > { %v1354_v27 = vpop.f32.mrb[12].mxu0 }
 0x6cf   : > { %v1358_v28 = vpack.c.bf16 %v1354_v27, %v1354_v27  ;;  %v2587_v29 = vpop.f32.mrb[13].mxu0  ;;  %v2720_v27 = vld [vmem:[%s3209_s13 + $0x48] sm:$0xff]  }
 0x6d1   : > { %2591 = vmatmul.mubr.msk.bf16.vlgmr.msra.gmra.mrb[20].mxu1 %vm827_vm2, %v1358_v28  ;;  %v2721_v28 = vld [vmem:[%s3209_s13 + $0x58] sm:$0xff]  }
 0x6d2   : > { %v1454_v30 = vpop.f32.mrb[16].mxu0  ;;  %2604 = vmatprep.mubr.msk.bf16.mxu1 %vm2753_vm0, %v2752_v1  ;;  %2601 = vmatpush3.bf16.msra.mxu1 %v2710_v49  ;;  %v2730_v49 = vld [vmem:[%s3211_s15 + $0x10] sm:$0xff]  }
 0x6d3   : > { %v2598_v31 = vpop.f32.mrb[17].mxu0  ;;  %2602 = vmatprep.subr.bf16.mxu1 %v2752_v1 }
 0x6d4   : > { %v1457_v32 = vpop.f32.mrb[18].mxu0  ;;  %v1988_v31 = vadd.s32 3, %v2930_v23 }
 0x6d5   : > { %v2599_v33 = vpop.f32.mrb[19].mxu0  ;;  %v2722_v32 = vld [vmem:[%s3209_s13 + $0x60] sm:$0xff]  }
 0x6d6   : > { %2603 = vmatpush3.bf16.msra.mxu1 %v2712_v51  ;;  %v2723_v33 = vld [vmem:[%s3209_s13 + $0x70] sm:$0xff]   ;;  %vm1990_vm12 = vcmp.lt.s32.totalorder %v1988_v31, 8 }
 0x6d7   : > { %2616 = vmatprep.subr.bf16.mxu1 %v2752_v1 }
 0x7a4   : > { %v1405_v34 = vpop.f32.mrb[20].mxu1 }
 0x7a5   : > { %v1455_v36 = vadd.f32 %v1454_v30, %v1405_v34  ;;  %v2592_v37 = vpop.f32.mrb[21].mxu1  ;;  %v1918_v30 = vadd.s32 2, %v2930_v23 }
 0x7a6   : > { %v1408_v39 = vpop.f32.mrb[22].mxu1 }
 0x7a7   : > { %v1467_v40 = vadd.f32 %v2385_v35, %v1455_v36  ;;  %v2593_v41 = vpop.f32.mrb[23].mxu1  ;;  %vm1920_vm11 = vcmp.lt.s32.totalorder %v1918_v30, 8  ;;  %v2725_v39 = vld [vmem:[%s3209_s13 + $0x78] sm:$0xff]   ;;  %v2447_v30 = vld [vmem:[%s3210_s14] ss:$0 sm:$0xff] }
 0x7a9   : > { %v1468_v42 = vadd.f32 %v1467_v40, %v631_v38  ;;  %v2724_v38 = vld [vmem:[%s3209_s13 + $0x68] sm:$0xff]  }
 0x7ab   : > { %v1471_v43 = vsel %vm657_vm1, %v1468_v42, 0.0 }
 0x7ac   : > { %1472 = vadd.xlane.f32.xlu0 %v1471_v43  ;;  %v2726_v43 = vld [vmem:[%s3209_s13 + $0x80] sm:$0xff]  }
 0x7c2   : > { %1501 = vperm.xlu0 %2695, %v633_v44  }
 0x839   : > { %v1473_v45 = vpop.xlane.xlu0 %1472 }
 0x83a   : > { %v1475_v46 = vmul.f32 0.03125, %v1473_v45 }
 0x83c   : > { %v1476_v47 = vsub.f32 %v1468_v42, %v1475_v46  ;;  %v2057_v42 = vadd.s32 4, %v2930_v23  ;;  %v2727_v23 = vld [vmem:[%s3209_s13 + $0x88] sm:$0xff]  }
 0x83e   : > { %v1477_v48 = vmul.f32 %v1476_v47, %v1476_v47  ;;  %vm2059_vm13 = vcmp.lt.s32.totalorder %v2057_v42, 8 }
 0x840   : > { %v1478_v4 = vsel %vm657_vm1, %v1477_v48, 0.0  ;;  %v2728_v48 = vld [vmem:[%s3211_s15] sm:$0xff]  }
 0x841   : > { %1479 = vadd.xlane.f32.xlu1 %v1478_v4  ;;  %v3051_v61 = vpop.permute.xlu0 %1501  ;;  %v2729_v4 = vld [vmem:[%s3211_s15 + $0x8] sm:$0xff]  }
 0x8ce   : > { %v1480_v53 = vpop.xlane.xlu1 %1479 }
 0x8cf   : > { %v1481_v54 = vmul.f32 0.03125, %v1480_v53 }
 0x8d1   : > { %v1482_v55 = vadd.f32 1e-05, %v1481_v54 }
 0x8d3   : > { %2740 = vrsqrt.f32 %v1482_v55 }
 0x8dd   : > { %v2741_v56 = vpop.eup %2740 }
 0x8de   : > { %v1484_v58 = vmul.f32 %v2741_v56, %v1476_v47 }
 0x8e0   : > { %v1491_v60 = vmul.f32 %v2386_v57, %v1484_v58 }
 0x8e2   : > { %v1498_v0 = vadd.f32 %v2387_v59, %v1491_v60 }
 0x8e4   : > { %v3056_v2 = vmul.f32 %v3051_v61, %v1498_v0 }
 0x8e6   : > { %v1521_v3 = vrot.slane %v3056_v2, 5  ;;  %v1508_v5 = vrot.slane %v3056_v2, 4  ;;  %v1645_v14 = vrot.slane %v3056_v2, 6  ;;  %v1715_v15 = vrot.slane %v3056_v2, 7 }
 0x8e7   : > { %v1847_v26 = vrot.slane %v3056_v2, 1  ;;  %v1785_v34 = vpack.c.bf16 %v3056_v2, %v3056_v2  ;;  %v1917_v36 = vrot.slane %v3056_v2, 2  ;;  %v1987_v37 = vrot.slane %v3056_v2, 3 }
 0x8e8   : > { %v1528_v8 = vsel %vm1523_vm6, %v1521_v3, 0.0  ;;  %v1515_v9 = vsel %vm1510_vm7, %v1508_v5, 0.0  ;;  %v1652_v18 = vsel %vm1647_vm8, %v1645_v14, 0.0  ;;  %v1722_v19 = vsel %vm1717_vm9, %v1715_v15, 0.0 }
 0x8e9   : > { %v1529_v12 = vpack.c.bf16 %v1528_v8, %v1528_v8  ;;  %v1516_v13 = vpack.c.bf16 %v1515_v9, %v1515_v9  ;;  %v1653_v24 = vpack.c.bf16 %v1652_v18, %v1652_v18  ;;  %v1723_v25 = vpack.c.bf16 %v1722_v19, %v1722_v19 }
 0x8ea   : > { %v1854_v29 = vsel %vm1850_vm10, %v1847_v26, 0.0  ;;  %v1924_v40 = vsel %vm1920_vm11, %v1917_v36, 0.0  ;;  %v1994_v41 = vsel %vm1990_vm12, %v1987_v37, 0.0  ;;  %v2063_v46 = vsel %vm2059_vm13, %v1508_v5, 0.0 }
 0x8eb   : > { %2605 = vmatmul.mubr.msk.bf16.vlgmr.msra.gmra.mrb[24].mxu1 %vm657_vm1, %v1529_v12  ;;  %2613 = vmatmul.mubr.msk.bf16.vlgmr.msra.gmra.mrb[20].mxu0 %vm657_vm1, %v1516_v13  ;;  %v1855_v35 = vpack.c.bf16 %v1854_v29, %v1854_v29  ;;  %v1925_v44 = vpack.c.bf16 %v1924_v40, %v1924_v40  ;;  %v1995_v45 = vpack.c.bf16 %v1994_v41, %v1994_v41 }
 0x8ec   : > { %2617 = vmatpush3.bf16.msra.mxu1 %v2714_v10  ;;  %2625 = vmatpush3.bf16.msra.mxu0 %v2715_v11  ;;  %v2064_v47 = vpack.c.bf16 %v2063_v46, %v2063_v46 }
 0x8ed   : > { %2618 = vmatprep.subr.bf16.mxu1 %v2752_v1  ;;  %2626 = vmatprep.subr.bf16.mxu0 %v2752_v1 }
 0x8ee   : > { %2620 = vmatprep.mubr.msk.bf16.mxu1 %vm2753_vm0, %v2752_v1  ;;  %2628 = vmatprep.mubr.msk.bf16.mxu0 %vm2753_vm0, %v2752_v1 }
 0x8f0   : > { %2619 = vmatpush3.bf16.msra.mxu1 %v2716_v16  ;;  %2627 = vmatpush3.bf16.msra.mxu0 %v2717_v17 }
 0x8f1   : > { %2632 = vmatprep.subr.bf16.mxu1 %v2752_v1  ;;  %2640 = vmatprep.subr.bf16.mxu0 %v2752_v1 }
 0x8f3   : > { %2621 = vmatmul.mubr.msk.bf16.vlgmr.msra.gmra.mrb[28].mxu1 %vm657_vm1, %v1653_v24  ;;  %2629 = vmatmul.mubr.msk.bf16.vlgmr.msra.gmra.mrb[24].mxu0 %vm657_vm1, %v1723_v25 }
 0x8f4   : > { %2633 = vmatpush3.bf16.msra.mxu1 %v2718_v21  ;;  %2641 = vmatpush3.bf16.msra.mxu0 %v2719_v22 }
 0x8f5   : > { %2634 = vmatprep.subr.bf16.mxu1 %v2752_v1  ;;  %2642 = vmatprep.subr.bf16.mxu0 %v2752_v1 }
 0x8f6   : > { %2636 = vmatprep.mubr.msk.bf16.mxu1 %vm2753_vm0, %v2752_v1  ;;  %2644 = vmatprep.mubr.msk.bf16.mxu0 %vm2753_vm0, %v2752_v1 }
 0x8f8   : > { %2635 = vmatpush3.bf16.msra.mxu1 %v2720_v27  ;;  %2643 = vmatpush3.bf16.msra.mxu0 %v2721_v28 }
 0x8f9   : > { %2648 = vmatprep.subr.bf16.mxu1 %v2752_v1  ;;  %2656 = vmatprep.subr.bf16.mxu0 %v2752_v1 }
 0x8fb   : > { %2637 = vmatmul.mubr.msk.bf16.vlgmr.msra.gmra.mrb[32].mxu1 %vm657_vm1, %v1785_v34  ;;  %2645 = vmatmul.mubr.msk.bf16.vlgmr.msra.gmra.mrb[28].mxu0 %vm657_vm1, %v1855_v35 }
 0x8fc   : > { %2649 = vmatpush3.bf16.msra.mxu1 %v2722_v32  ;;  %2657 = vmatpush3.bf16.msra.mxu0 %v2723_v33 }
 0x8fd   : > { %2650 = vmatprep.subr.bf16.mxu1 %v2752_v1  ;;  %2658 = vmatprep.subr.bf16.mxu0 %v2752_v1 }
 0x8fe   : > { %2652 = vmatprep.mubr.msk.bf16.mxu1 %vm2753_vm0, %v2752_v1  ;;  %2660 = vmatprep.mubr.msk.bf16.mxu0 %vm2753_vm0, %v2752_v1 }
 0x900   : > { %2651 = vmatpush3.bf16.msra.mxu1 %v2724_v38  ;;  %2659 = vmatpush3.bf16.msra.mxu0 %v2725_v39  ;;  %v2448_v39 = vld [vmem:[%s3212_s16] ss:$0 sm:$0xff] }
 0x901   : > { %2664 = vmatprep.subr.bf16.mxu1 %v2752_v1  ;;  %2672 = vmatprep.subr.bf16.mxu0 %v2752_v1 }
 0x903   : > { %2653 = vmatmul.mubr.msk.bf16.vlgmr.msra.gmra.mrb[36].mxu1 %vm657_vm1, %v1925_v44  ;;  %2661 = vmatmul.mubr.msk.bf16.vlgmr.msra.gmra.mrb[32].mxu0 %vm657_vm1, %v1995_v45 }
 0x904   : > { %2665 = vmatpush3.bf16.msra.mxu1 %v2726_v43  ;;  %2668 = vmatprep.mubr.msk.bf16.mxu1 %vm2753_vm0, %v2752_v1 }
 0x905   : > { %2666 = vmatprep.subr.bf16.mxu1 %v2752_v1  ;;  %2680 = vmatprep.mubr.msk.bf16.mxu0 %vm2753_vm0, %v2752_v1 }
 0x906   : > { %2673 = vmatpush3.bf16.msra.mxu0 %v2728_v48 }
 0x907   : > { %2674 = vmatprep.subr.bf16.mxu0 %v2752_v1 }
 0x908   : > { %2667 = vmatpush3.bf16.msra.mxu1 %v2727_v23 }
 0x90a   : > { %2675 = vmatpush3.bf16.msra.mxu0 %v2729_v4 }
 0x90b   : > { %2669 = vmatmul.mubr.msk.bf16.vlgmr.msra.gmra.mrb[40].mxu1 %vm657_vm1, %v2064_v47  ;;  %2676 = vmatprep.subr.bf16.mxu0 %v2752_v1 }
 0x90e   : > { %2677 = vmatpush3.bf16.msra.mxu0 %v2730_v49 }
 0x90f   : > { %2678 = vmatprep.subr.bf16.mxu0 %v2752_v1 }
 0x912   : > { %2679 = vmatpush3.bf16.msra.mxu0 %v2731_v50 }
 0x9be   : > { %v1584_v51 = vpop.f32.mrb[24].mxu1  ;;  %v1639_v52 = vpop.f32.mrb[20].mxu0 }
 0x9bf   : > { %v1640_v53 = vadd.f32 %v1639_v52, %v1584_v51  ;;  %v2606_v54 = vpop.f32.mrb[25].mxu1  ;;  %v2614_v55 = vpop.f32.mrb[21].mxu0 }
 0x9c0   : > { %v1587_v56 = vpop.f32.mrb[26].mxu1  ;;  %v1642_v57 = vpop.f32.mrb[22].mxu0  ;;  %v2455_v55 = vld [vmem:[%s3214_s18] ss:$0 sm:$0xff] }
 0x9c1   : > { %v2607_v58 = vpop.f32.mrb[27].mxu1  ;;  %v2615_v59 = vpop.f32.mrb[23].mxu0 }
 0x9c6   : > { %v1708_v60 = vpop.f32.mrb[28].mxu1  ;;  %v1778_v62 = vpop.f32.mrb[24].mxu0 }
 0x9c7   : > { %v1714_v63 = vadd.f32 %v1708_v60, %v1640_v53  ;;  %v2622_v0 = vpop.f32.mrb[29].mxu1  ;;  %v2630_v3 = vpop.f32.mrb[25].mxu0 }
 0x9c8   : > { %v1711_v1 = vpop.f32.mrb[30].mxu1  ;;  %v1781_v5 = vpop.f32.mrb[26].mxu0 }
 0x9c9   : > { %v1784_v6 = vadd.f32 %v1778_v62, %v1714_v63  ;;  %v2623_v7 = vpop.f32.mrb[31].mxu1  ;;  %v2631_v8 = vpop.f32.mrb[27].mxu0 }
 0x9ce   : > { %v1840_v9 = vpop.f32.mrb[32].mxu1  ;;  %v1910_v10 = vpop.f32.mrb[28].mxu0 }
 0x9cf   : > { %v1846_v11 = vadd.f32 %v1840_v9, %v1784_v6  ;;  %v2638_v12 = vpop.f32.mrb[33].mxu1  ;;  %v2646_v13 = vpop.f32.mrb[29].mxu0 }
 0x9d0   : > { %v1843_v14 = vpop.f32.mrb[34].mxu1  ;;  %v1913_v15 = vpop.f32.mrb[30].mxu0 }
 0x9d1   : > { %v1916_v16 = vadd.f32 %v1910_v10, %v1846_v11  ;;  %v2639_v17 = vpop.f32.mrb[35].mxu1  ;;  %v2647_v18 = vpop.f32.mrb[31].mxu0 }
 0x9d6   : > { %v1980_v19 = vpop.f32.mrb[36].mxu1  ;;  %v2050_v20 = vpop.f32.mrb[32].mxu0 }
 0x9d7   : > { %v1986_v21 = vadd.f32 %v1980_v19, %v1916_v16  ;;  %v2654_v22 = vpop.f32.mrb[37].mxu1  ;;  %v2662_v24 = vpop.f32.mrb[33].mxu0 }
 0x9d8   : > { %v1983_v25 = vpop.f32.mrb[38].mxu1  ;;  %v2053_v26 = vpop.f32.mrb[34].mxu0 }
 0x9d9   : > { %v2056_v27 = vadd.f32 %v2050_v20, %v1986_v21  ;;  %v2655_v28 = vpop.f32.mrb[39].mxu1  ;;  %v2663_v29 = vpop.f32.mrb[35].mxu0 }
 0x9de   : > { %v2119_v31 = vpop.f32.mrb[40].mxu1 }
 0x9df   : > { %v2125_v32 = vadd.f32 %v2119_v31, %v2056_v27  ;;  %v2670_v33 = vpop.f32.mrb[41].mxu1 }
 0x9e0   : > { %v2122_v34 = vpop.f32.mrb[42].mxu1 }
 0x9e1   : > { %v2132_v35 = vadd.f32 %v2447_v30, %v2125_v32  ;;  %v2671_v36 = vpop.f32.mrb[43].mxu1 }
 0x9e3   : > { %v2133_v37 = vmax.f32 %v2132_v35, 0.0 }
 0x9e5   : > { %v2135_v38 = vpack.c.bf16 %v2133_v37, %v2133_v37 }
 0x9e7   : > { %2681 = vmatmul.mubr.msk.bf16.vlgmr.msra.gmra.mrb[36].mxu0 %vm2174_vm14, %v2135_v38 }
 0xaba   : > { %v2212_v40 = vpop.f32.mrb[36].mxu0 }
 0xabb   : > { %v2213_v41 = vadd.f32 %v2448_v39, %v2212_v40  ;;  %v2682_v42 = vpop.f32.mrb[37].mxu0 }
 0xabc   : > { %v2215_v43 = vpop.f32.mrb[38].mxu0 }
 0xabd   : > { %v2683_v44 = vpop.f32.mrb[39].mxu0  ;;  %v2218_v45 = vadd.f32 %v2213_v41, %v3056_v2  ;;  %v2454_v2 = vld [vmem:[%s3213_s17] ss:$0 sm:$0xff] }
 0xabf   : > { %v2221_v23 = vsel %vm657_vm1, %v2218_v45, 0.0 }
 0xac0   : > { %2222 = vadd.xlane.f32.xlu1 %v2221_v23 }
 0xb4d   : > { %v2223_v46 = vpop.xlane.xlu1 %2222 }
 0xb4e   : > { %v2224_v47 = vmul.f32 0.03125, %v2223_v46 }
 0xb50   : > { %v2225_v48 = vsub.f32 %v2218_v45, %v2224_v47 }
 0xb52   : > { %v2226_v4 = vmul.f32 %v2225_v48, %v2225_v48 }
 0xb54   : > { %v2227_v49 = vsel %vm657_vm1, %v2226_v4, 0.0 }
 0xb55   : > { %2228 = vadd.xlane.f32.xlu1 %v2227_v49 }
 0xbe2   : > { %v2229_v50 = vpop.xlane.xlu1 %2228 }
 0xbe3   : > { %v2230_v51 = vmul.f32 0.03125, %v2229_v50 }
 0xbe5   : > { %v2231_v52 = vadd.f32 1e-05, %v2230_v51 }
 0xbe7   : > { %2742 = vrsqrt.f32 %v2231_v52 }
 0xbf1   : > { %v2743_v53 = vpop.eup %2742 }
 0xbf2   : > { %v2233_v54 = vmul.f32 %v2743_v53, %v2225_v48 }
 0xbf4   : > { %v2240_v56 = vmul.f32 %v2454_v2, %v2233_v54 }
 0xbf6   : > { %v2247_v57 = vadd.f32 %v2455_v55, %v2240_v56 }
 0xbf8   : > { %v2248_v58 = vmul.f32 %v2247_v57, %v3051_v61 }
 0xbfa   : > { %v2249_v59 = vpack.c.bf16 %v2248_v58, %v2248_v58 }
 0xbfc   : > { %2251 = vst.msk [vmem:[%s628_s2] sm:$0xf] %vm2250_vm15, %v2249_v59 }
 0xbfd PF: > { %s29_s0 = sadd.s32 1, %s2750_s0  }
 0xbfe   : > { %p26_p4 = scmp.ge.s32.totalorder %s29_s0, 4  }
 0xc00   :  { %28 = sbr.rel (!%p26_p4) target bundleno = 5 (0x5), region = 147 }

// kernel: _lambda_.10
= control target key start
LH: loop header
LB: loop body
LE: loop exit
PB: predicated region body
PF: predicated region fallthrough
CT: control target
= control target key end

     0   :  { %s3579_s0 = inlined_call_operand.vmem [shape: bf16[2,16,32], index: 0, kind: input, shape index: {}]   ;;  %s3580_s1 = inlined_call_operand.vmem [shape: f32[2,1,16], index: 1, kind: input, shape index: {}]   ;;  %s3581_s2 = inlined_call_operand.vmem [shape: f32[2,16,1], index: 2, kind: input, shape index: {}]   ;;  %s3582_s3 = inlined_call_operand.vmem [shape: bf16[2,32,16], index: 3, kind: input, shape index: {}]   ;;  %s3583_s4 = inlined_call_operand.vmem [shape: f32[2,1,16], index: 4, kind: input, shape index: {}]   ;;  %s3584_s5 = inlined_call_operand.vmem [shape: bf16[2,32,16], index: 5, kind: input, shape index: {}]   ;;  %s3585_s6 = inlined_call_operand.vmem [shape: f32[2,1,16], index: 6, kind: input, shape index: {}]   ;;  %s3586_s7 = inlined_call_operand.vmem [shape: bf16[2,32,16], index: 7, kind: input, shape index: {}]   ;;  %s3587_s8 = inlined_call_operand.vmem [shape: f32[2,1,16], index: 8, kind: input, shape index: {}]   ;;  %s3588_s9 = inlined_call_operand.vmem [shape: bf16[2,16,32], index: 9, kind: input, shape index: {}]   ;;  %s3589_s10 = inlined_call_operand.vmem [shape: f32[1,32], index: 10, kind: input, shape index: {}]   ;;  %s3590_s11 = inlined_call_operand.vmem [shape: f32[1,32], index: 11, kind: input, shape index: {}, may-alias: {11,17}]   ;;  %s3591_s12 = inlined_call_operand.vmem [shape: f32[1,32], index: 12, kind: input, shape index: {}, may-alias: {12,18}]   ;;  %s3592_s13 = inlined_call_operand.vmem [shape: bf16[9,32,64], index: 13, kind: input, shape index: {}]   ;;  %s3593_s14 = inlined_call_operand.vmem [shape: f32[1,64], index: 14, kind: input, shape index: {}]   ;;  %s3594_s15 = inlined_call_operand.vmem [shape: bf16[1,64,32], index: 15, kind: input, shape index: {}]   ;;  %s3595_s16 = inlined_call_operand.vmem [shape: f32[1,32], index: 16, kind: input, shape index: {}]   ;;  %s3596_s17 = inlined_call_operand.vmem [shape: f32[1,32], index: 17, kind: input, shape index: {}, may-alias: {11,17}]   ;;  %s3597_s18 = inlined_call_operand.vmem [shape: f32[1,32], index: 18, kind: input, shape index: {}, may-alias: {12,18}]   ;;  %s3598_s19 = inlined_call_operand.vmem [shape: bf16[2,16,32], index: 19, kind: output, shape index: {}]  }
   0x1   :  { %3600 = sst [smem:[#allocation2_spill]] %s3579_s0  ;;  %s3164_s0 = smov 0  }
   0x2   :  { %3601 = sst [smem:[#allocation3_spill]] %s3580_s1 }
   0x3   :  { %3602 = sst [smem:[#allocation4_spill]] %s3581_s2 }
   0x4   :  { %3603 = sst [smem:[#allocation5_spill]] %s3582_s3 }
   0x5 LB: > { %s2567_s30 = sadd.s32 4294967295, %s3059_s0   ;;  %p2571_p0 = scmp.ge.s32.totalorder %s3059_s0, 1  ;;  %s3059_s0 = sphi %s3164_s0, %s29_s0  }
   0x6   : > { %p555_p1 = scmp.lt.s32.totalorder %s3059_s0, 3 }
   0x8   : > { %p556_p2 = pnand %p2571_p0, %p555_p1 }
   0x9   : > { %s3604_s1 = sld [smem:[#allocation5_spill]] (!%p556_p2)  ;;  %v3061_v1 = vmov (!%p556_p2), 0.0   ;;  %vm3062_vm0 = vmmov (!%p556_p2), 0   ;;  %p619_p3 = scmp.lt.s32.totalorder (!%p556_p2), %s2567_s30, 1  ;;  %v2994_v3 = vld [vmem:[%s3584_s5] sm:$0xff] (!%p556_p2)   ;;  %vm673_vm1 = vcmask (!%p556_p2), 261120   ;;  %v938_v25 = vlaneseq (!%p556_p2) }
   0xa   : > { %559 = sbr.rel (%p556_p2) target bundleno = 3104 (0xc20), region = 96  ;;  %2786 = vmatprep.subr.bf16.mxu1 (!%p556_p2), %v3061_v1  ;;  %2802 = vmatprep.subr.bf16.mxu0 (!%p556_p2), %v3061_v1  ;;  %s3605_s27 = sld [smem:[#allocation2_spill]] (!%p556_p2)  ;;  %v2995_v5 = vld [vmem:[%s3584_s5 + $0x8] sm:$0xff] (!%p556_p2)   ;;  %v2578_v6 = vld [vmem:[%s3583_s4] ss:$0 sm:$0xff] (!%p556_p2)  ;;  %vm846_vm2 = vcmask (!%p556_p2), 130048  }
   0xb   : > { %2790 = vmatprep.mubr.msk.bf16.mxu1 (!%p556_p2), %vm3062_vm0, %v3061_v1  ;;  %2806 = vmatprep.mubr.msk.bf16.mxu0 (!%p556_p2), %vm3062_vm0, %v3061_v1  ;;  %v2583_v12 = vld [vmem:[%s3585_s6] ss:$0 sm:$0xff] (!%p556_p2)  ;;  %vm3218_vm3 = vmpackc.low (!%p556_p2), %vm846_vm2, %vm846_vm2  ;;  %v3063_v22 = vmov (!%p556_p2), 0   ;;  %v2997_v24 = vld [vmem:[%s3586_s7 + $0x8] sm:$0xff] (!%p556_p2)   ;;  %s3608_s20 = sld [smem:[#allocation3_spill]] (!%p556_p2)  ;;  %v3243_v27 = vshrl.u32 (!%p556_p2), %v938_v25, 7 }
   0xc   : > { %2989 = vset.pattern.permute.xlu0 (!%p556_p2), %v3063_v22  ;;  %2990 = vset.pattern.permute.xlu1 (!%p556_p2), %v3063_v22  ;;  %v2996_v23 = vld [vmem:[%s3586_s7] sm:$0xff] (!%p556_p2)   ;;  %v3003_v25 = vld [vmem:[%s3586_s7 + $0x18] sm:$0xff] (!%p556_p2)  }
   0xd   : > { %2803 = vmatpush3.bf16.msra.mxu0 (!%p556_p2), %v2996_v23  ;;  %v940_v28 = vsub.s32 (!%p556_p2), 0, %v3243_v27  ;;  %v2587_v49 = vld [vmem:[%s3587_s8] ss:$0 sm:$0xff] (!%p556_p2)  ;;  %vm1645_vm6 = vcmp.lt.s32.totalorder (!%p556_p2), %v3243_v27, 3  ;;  %vm1621_vm8 = vcmp.lt.s32.totalorder (!%p556_p2), %v3243_v27, 4  ;;  %vm1782_vm10 = vcmp.lt.s32.totalorder (!%p556_p2), %v3243_v27, 2 }
   0xe   : > { %2804 = vmatprep.subr.bf16.mxu0 (!%p556_p2), %v3061_v1  ;;  %vm1865_vm11 = vcmp.lt.s32.totalorder (!%p556_p2), %v3243_v27, 1  ;;  %vm2012_vm14 = vcmp.lt.s32.totalorder (!%p556_p2), %v3243_v27, 7 }
   0xf   : > { %v2991_v0 = vld [vmem:[%s3604_s1] sm:$0xff] (!%p556_p2)   ;;  %v2992_v2 = vld [vmem:[%s3604_s1 + $0x8] sm:$0xff] (!%p556_p2)   ;;  %v3000_v57 = vld [vmem:[%s3604_s1 + $0x10] sm:$0xff] (!%p556_p2)  }
  0x10   : > { %2787 = vmatpush3.bf16.msra.mxu1 (!%p556_p2), %v2991_v0  ;;  %v3001_v58 = vld [vmem:[%s3604_s1 + $0x18] sm:$0xff] (!%p556_p2)   ;;  %v2998_v0 = vld [vmem:[%s3584_s5 + $0x10] sm:$0xff] (!%p556_p2)  }
  0x11   : > { %2788 = vmatprep.subr.bf16.mxu1 %v3061_v1  ;;  %s3611_s30 = smov (!%p619_p3, %s2567_s30), 1  ;;  %2805 = vmatpush3.bf16.msra.mxu0 %v2997_v24  ;;  %v3002_v24 = vld [vmem:[%s3586_s7 + $0x10] sm:$0xff]  }
  0x12   : > { %s2711_s23 = sshll.u32 %s3611_s30, 3  ;;  %2824 = vmatprep.subr.bf16.mxu0 %v3061_v1  ;;  %s626_s21 = scalar_lea.vmem %s3608_s20, %s3611_s30 }
  0x13   : > { %s623_s28 = scalar_lea.vmem %s3605_s27, %s2711_s23  ;;  %v642_v26 = vld [vmem:[%s626_s21] sm:$0x1]  ;;  %s2712_s3 = sshll.u32 %s3611_s30, 4 }
  0x14   : > { %2789 = vmatpush3.bf16.msra.mxu1 %v2992_v2  ;;  %v3197_v4 = vld [vmem:[%s623_s28] sm:$0xff]   ;;  %vm936_vm4 = vcmp.gt.f32.partialorder %v642_v26, 0.0  ;;  %s3609_s28 = sld [smem:[#allocation4_spill]]  ;;  %s636_s2 = scalar_lea.vmem %s3598_s19, %s2711_s23 }
  0x15   : > { %2794 = vmatprep.subr.bf16.mxu1 %v3061_v1  ;;  %2807 = vmatmul.mubr.msk.bf16.vlgmr.msra.gmra.mrb[0].mxu0 %vm673_vm1, %v3197_v4  ;;  %v937_v29 = vsel %vm936_vm4, 1, %v3063_v22 }
  0x16   : > { %2828 = vmatprep.mubr.msk.bf16.mxu0 %vm3062_vm0, %v3061_v1  ;;  %v3246_v30 = vrot.slane %v937_v29, %v940_v28  ;;  %2825 = vmatpush3.bf16.msra.mxu0 %v3000_v57  ;;  %v3004_v57 = vld [vmem:[%s3588_s9] sm:$0xff]  }
  0x17   : > { %2791 = vmatmul.mubr.msk.bf16.vlgmr.msra.gmra.mrb[0].mxu1 %vm673_vm1, %v3197_v4  ;;  %2826 = vmatprep.subr.bf16.mxu0 %v3061_v1 }
  0x18   : > { %2795 = vmatpush3.bf16.msra.mxu1 %v2994_v3  ;;  %2798 = vmatprep.mubr.msk.bf16.mxu1 %vm3062_vm0, %v3061_v1  ;;  %vm942_vm5 = vcmp.eq.s32.totalorder %v3246_v30, 1  ;;  %v2999_v3 = vld [vmem:[%s3584_s5 + $0x18] sm:$0xff]  }
  0x19   : > { %2796 = vmatprep.subr.bf16.mxu1 %v3061_v1 }
  0x1a   : > { %2827 = vmatpush3.bf16.msra.mxu0 %v3001_v58  ;;  %s631_s29 = scalar_lea.vmem %s3609_s28, %s2712_s3 }
  0x1b   : > { %2840 = vmatprep.subr.bf16.mxu0 %v3061_v1 }
  0x1c   : > { %2797 = vmatpush3.bf16.msra.mxu1 %v2995_v5  ;;  %v2602_v5 = vld [vmem:[%s3583_s4 + $0x1] ss:$0 sm:$0xff] }
  0x1d   : > { %2829 = vmatmul.mubr.msk.bf16.vlgmr.msra.gmra.mrb[4].mxu0 %vm673_vm1, %v3197_v4 }
  0x1e   : > { %2844 = vmatprep.mubr.msk.bf16.mxu0 %vm3062_vm0, %v3061_v1  ;;  %2841 = vmatpush3.bf16.msra.mxu0 %v3002_v24 }
  0x1f   : > { %2799 = vmatmul.mubr.msk.bf16.vlgmr.msra.gmra.mrb[4].mxu1 %vm673_vm1, %v3197_v4  ;;  %2842 = vmatprep.subr.bf16.mxu0 %v3061_v1 }
  0x22   : > { %2843 = vmatpush3.bf16.msra.mxu0 %v3003_v25 }
  0x25   : > { %2845 = vmatmul.mubr.msk.bf16.vlgmr.msra.gmra.mrb[8].mxu0 %vm673_vm1, %v3197_v4 }
  0xe8   : > { %v839_v50 = vpop.f32.mrb[0].mxu0 }
  0xe9   : > { %v2808_v51 = vpop.f32.mrb[1].mxu0  ;;  %v840_v52 = vadd.f32 %v2587_v49, %v839_v50 }
  0xea   : > { %v711_v7 = vpop.f32.mrb[0].mxu1  ;;  %v842_v53 = vpop.f32.mrb[2].mxu0 }
  0xeb   : > { %v712_v8 = vadd.f32 %v2578_v6, %v711_v7  ;;  %v2792_v9 = vpop.f32.mrb[1].mxu1  ;;  %v843_v54 = vadd.f32 %v2587_v49, %v842_v53  ;;  %v2809_v55 = vpop.f32.mrb[3].mxu0 }
  0xec   : > { %v714_v10 = vpop.f32.mrb[2].mxu1 }
  0xed   : > { %v2793_v11 = vpop.f32.mrb[3].mxu1  ;;  %2814 = vmatprep.mubr.msk.f32.mxu1 %vm846_vm2, %v712_v8  ;;  %v715_v21 = vadd.f32 %v2578_v6, %v714_v10  ;;  %v2964_v56 = vpack.c.bf16 %v843_v54, %v840_v52 }
  0xf0   : > { %v1110_v6 = vpop.f32.mrb[4].mxu0 }
  0xf1   : > { %v1111_v7 = vadd.f32 %v2602_v5, %v1110_v6  ;;  %v2830_v8 = vpop.f32.mrb[5].mxu0  ;;  %v2636_v6 = vld [vmem:[%s3589_s10] ss:$0 sm:$0xff] }
  0xf2   : > { %v775_v13 = vpop.f32.mrb[4].mxu1  ;;  %v1113_v9 = vpop.f32.mrb[6].mxu0 }
  0xf3   : > { %v2800_v14 = vpop.f32.mrb[5].mxu1  ;;  %v776_v16 = vadd.f32 %v2583_v12, %v775_v13  ;;  %v1114_v10 = vadd.f32 %v2602_v5, %v1113_v9  ;;  %v2831_v11 = vpop.f32.mrb[7].mxu0  ;;  %v640_v9 = vunpack.c.l.bf16 %v3197_v4 }
  0xf4   : > { %v778_v15 = vpop.f32.mrb[6].mxu1 }
  0xf5   : > { %v779_v17 = vadd.f32 %v2583_v12, %v778_v15  ;;  %v2801_v18 = vpop.f32.mrb[7].mxu1  ;;  %v2611_v15 = vld [vmem:[%s3585_s6 + $0x1] ss:$0 sm:$0xff] }
  0xf7   : > { %v2958_v20 = vpack.c.bf16 %v779_v17, %v776_v16 }
  0xf9   : > { %2960 = vmatprep.subr.msk.bf16.mxu1 %vm3218_vm3, %v2958_v20 }
  0xfa   : > { %2963 = vmatpush3.bf16.xpose.msk.msra.mxu1 %vm3218_vm3, %v2958_v20 }
  0xfb   : > { %2965 = vmatprep.subr.bf16.mxu1 %v2964_v56 }
 0x101   : > { %2815 = vmatmul.mubr.msk.f32.vlgmr.msra.gmra.mrb[8].mxu1 %vm846_vm2, %v715_v21 }
 0x102   : > { %2967 = vmatpush3.bf16.msra.mxu1 %v2964_v56 }
 0x103   : > { %2832 = vmatprep.subr.bf16.mxu1 %v3061_v1 }
 0x1d4   : > { %v2816_v31 = vpop.f32.mrb[8].mxu1 }
 0x1d5   : > { %v925_v32 = vpop.f32.mrb[9].mxu1  ;;  %v935_v33 = vmul.f32 0.25, %v2816_v31 }
 0x1d6   : > { %v934_v34 = vmul.f32 0.25, %v925_v32 }
 0x1d7   : > { %v944_v37 = vsel %vm942_vm5, %v935_v33, -1e+09 }
 0x1d8   : > { %v943_v35 = vsel %vm942_vm5, %v934_v34, -1e+09  ;;  %v948_v38 = vsel %vm846_vm2, %v944_v37, -inf }
 0x1d9   : > { %v945_v36 = vsel %vm846_vm2, %v943_v35, -inf }
 0x1da   : > { %946 = vmax.xlane.f32.xlu0 %v945_v36  ;;  %v1242_v36 = vpop.f32.mrb[8].mxu0 }
 0x1de   : > { %949 = vmax.xlane.f32.xlu0 %v948_v38  ;;  %v2846_v38 = vpop.f32.mrb[9].mxu0 }
 0x267   : > { %v947_v39 = vpop.xlane.xlu0 %946 }
 0x268   : > { %v951_v40 = vsub.f32 %v943_v35, %v947_v39  ;;  %v2620_v35 = vld [vmem:[%s3587_s8 + $0x1] ss:$0 sm:$0xff]  ;;  %v1245_v39 = vpop.f32.mrb[10].mxu0 }
 0x26a   : > { %v953_v41 = vmul.f32 1.442695, %v951_v40  ;;  %v1246_v40 = vadd.f32 %v2620_v35, %v1245_v39 }
 0x26b   : > { %v950_v42 = vpop.xlane.xlu0 %949 }
 0x26c   : > { %3029 = vpow2.f32 %v953_v41  ;;  %v952_v43 = vsub.f32 %v944_v37, %v950_v42  ;;  %v1243_v37 = vadd.f32 %v2620_v35, %v1242_v36  ;;  %v2847_v41 = vpop.f32.mrb[11].mxu0  ;;  %v3008_v35 = vld [vmem:[%s3592_s13 + $0x18] sm:$0xff]   ;;  %v3009_v36 = vld [vmem:[%s3592_s13 + $0x8] sm:$0xff]  }
 0x26e   : > { %v955_v44 = vmul.f32 1.442695, %v952_v43  ;;  %v2974_v42 = vpack.c.bf16 %v1246_v40, %v1243_v37 }
 0x270   : > { %3031 = vpow2.f32 %v955_v44  ;;  %2975 = vmatprep.subr.bf16.mxu0 %v2974_v42 }
 0x271   : > { %2977 = vmatpush3.bf16.msra.mxu0 %v2974_v42 }
 0x272   : > { %2868 = vmatprep.subr.bf16.mxu0 %v3061_v1 }
 0x276   : > { %v3030_v45 = vpop.eup %3029 }
 0x277   : > { %v957_v46 = vsel %vm846_vm2, %v3030_v45, 0.0 }
 0x278   : > { %958 = vadd.xlane.f32.xlu1 %v957_v46 }
 0x27a   : > { %v3032_v47 = vpop.eup %3031 }
 0x27b   : > { %v960_v48 = vsel %vm846_vm2, %v3032_v47, 0.0 }
 0x27c   : > { %961 = vadd.xlane.f32.xlu1 %v960_v48 }
 0x305   : > { %v959_v59 = vpop.xlane.xlu1 %958 }
 0x306   : > { %3033 = vrcp.f32 %v959_v59  ;;  %v3005_v59 = vld [vmem:[%s3588_s9 + $0x8] sm:$0xff]  }
 0x309   : > { %v962_v60 = vpop.xlane.xlu1 %961 }
 0x30a   : > { %3035 = vrcp.f32 %v962_v60 }
 0x310   : > { %v3034_v61 = vpop.eup %3033 }
 0x311   : > { %v965_v62 = vmul.f32 %v3034_v61, %v3030_v45 }
 0x313   : > { %2821 = vmatprep.mubr.msk.f32.mxu1 %vm846_vm2, %v965_v62 }
 0x314   : > { %v3036_v63 = vpop.eup %3035 }
 0x315   : > { %v966_v2 = vmul.f32 %v3036_v63, %v3032_v47 }
 0x317   : > { %2822 = vmatmul.mubr.msk.f32.vlgmr.msra.gmra.mrb[10].mxu1 %vm846_vm2, %v966_v2 }
 0x318   : > { %2833 = vmatpush3.bf16.msra.mxu1 %v2998_v0  ;;  %2836 = vmatprep.mubr.msk.bf16.mxu1 %vm3062_vm0, %v3061_v1 }
 0x319   : > { %2834 = vmatprep.subr.bf16.mxu1 %v3061_v1 }
 0x31c   : > { %2835 = vmatpush3.bf16.msra.mxu1 %v2999_v3 }
 0x31f   : > { %2837 = vmatmul.mubr.msk.bf16.vlgmr.msra.gmra.mrb[12].mxu1 %vm673_vm1, %v3197_v4 }
 0x320   : > { %2852 = vmatprep.mubr.msk.f32.mxu1 %vm846_vm2, %v1111_v7 }
 0x3ea   : > { %v3290_v12 = vpop.f32.mrb[10].mxu1 }
 0x3eb   : > { %v3292_v13 = vpop.f32.mrb[11].mxu1 }
 0x3ec   : > { %v1048_v14 = vpack.c.bf16 %v3290_v12, %v3292_v13 }
 0x3f2   : > { %v1176_v16 = vpop.f32.mrb[12].mxu1 }
 0x3f3   : > { %v2838_v17 = vpop.f32.mrb[13].mxu1  ;;  %v1177_v20 = vadd.f32 %v2611_v15, %v1176_v16 }
 0x3f4   : > { %v1179_v18 = vpop.f32.mrb[14].mxu1 }
 0x3f5   : > { %v1180_v21 = vadd.f32 %v2611_v15, %v1179_v18  ;;  %v2839_v22 = vpop.f32.mrb[15].mxu1 }
 0x3f7   : > { %v2968_v23 = vpack.c.bf16 %v1180_v21, %v1177_v20 }
 0x3f9   : > { %2970 = vmatprep.subr.msk.bf16.mxu1 %vm3218_vm3, %v2968_v23 }
 0x3fa   : > { %2973 = vmatpush3.bf16.xpose.msk.msra.mxu1 %vm3218_vm3, %v2968_v23  ;;  %vm2178_vm3 = vcmp.lt.s32.totalorder %v3243_v27, 5 }
 0x3fb   : > { %2862 = vmatprep.subr.bf16.mxu1 %v3061_v1 }
 0x401   : > { %2853 = vmatmul.mubr.msk.f32.vlgmr.msra.gmra.mrb[16].mxu1 %vm846_vm2, %v1114_v10 }
 0x402   : > { %2864 = vmatprep.mubr.msk.bf16.mxu1 %vm3062_vm0, %v3061_v1  ;;  %2863 = vmatpush3.bf16.msra.mxu1 %v3005_v59 }
 0x403   : > { %2874 = vmatprep.subr.bf16.mxu1 %v3061_v1 }
 0x4d4   : > { %v2854_v19 = vpop.f32.mrb[16].mxu1 }
 0x4d5   : > { %v1337_v26 = vmul.f32 0.25, %v2854_v19  ;;  %v1327_v28 = vpop.f32.mrb[17].mxu1 }
 0x4d6   : > { %v1336_v29 = vmul.f32 0.25, %v1327_v28 }
 0x4d7   : > { %v1339_v31 = vsel %vm942_vm5, %v1337_v26, -1e+09 }
 0x4d8   : > { %v1343_v32 = vsel %vm846_vm2, %v1339_v31, -inf  ;;  %v1338_v33 = vsel %vm942_vm5, %v1336_v29, -1e+09 }
 0x4d9   : > { %1344 = vmax.xlane.f32.xlu1 %v1343_v32  ;;  %v1340_v34 = vsel %vm846_vm2, %v1338_v33, -inf  ;;  %v643_v32 = vld [vmem:[%s631_s29] sm:$0xff] }
 0x4da   : > { %1341 = vmax.xlane.f32.xlu0 %v1340_v34  ;;  %v3007_v34 = vld [vmem:[%s3592_s13] sm:$0xff]  }
 0x566   : > { %v1345_v30 = vpop.xlane.xlu1 %1344 }
 0x567   : > { %v1347_v43 = vsub.f32 %v1339_v31, %v1345_v30  ;;  %v1342_v44 = vpop.xlane.xlu0 %1341  ;;  %v644_v31 = vld [vmem:[%s631_s29 + $0x8] sm:$0xff] }
 0x568   : > { %v1346_v45 = vsub.f32 %v1338_v33, %v1342_v44  ;;  %v3006_v33 = vld [vmem:[%s3592_s13 + $0x10] sm:$0xff]  }
 0x569   : > { %v1350_v46 = vmul.f32 1.442695, %v1347_v43  ;;  %v2637_v43 = vld [vmem:[%s3590_s11] ss:$0 sm:$0xff] }
 0x56a   : > { %v1348_v47 = vmul.f32 1.442695, %v1346_v45 }
 0x56b   : > { %3037 = vpow2.f32 %v1350_v46  ;;  %v2638_v46 = vld [vmem:[%s3591_s12] ss:$0 sm:$0xff] }
 0x56c   : > { %3039 = vpow2.f32 %v1348_v47 }
 0x575   : > { %v3038_v48 = vpop.eup %3037 }
 0x576   : > { %v3040_v49 = vpop.eup %3039  ;;  %v1355_v50 = vsel %vm846_vm2, %v3038_v48, 0.0 }
 0x577   : > { %1356 = vadd.xlane.f32.xlu1 %v1355_v50  ;;  %v1352_v51 = vsel %vm846_vm2, %v3040_v49, 0.0 }
 0x578   : > { %1353 = vadd.xlane.f32.xlu0 %v1352_v51 }
 0x604   : > { %v1357_v52 = vpop.xlane.xlu1 %1356 }
 0x605   : > { %3041 = vrcp.f32 %v1357_v52  ;;  %v1354_v53 = vpop.xlane.xlu0 %1353 }
 0x606   : > { %3043 = vrcp.f32 %v1354_v53  ;;  %v1648_v53 = vadd.s32 4294967293, %v3243_v27 }
 0x608   : > { %vm1650_vm7 = vcmp.ge.s32.totalorder %v1648_v53, 0 }
 0x60f   : > { %v3042_v54 = vpop.eup %3041 }
 0x610   : > { %v3044_v55 = vpop.eup %3043  ;;  %v1361_v58 = vmul.f32 %v3042_v54, %v3038_v48  ;;  %v1624_v54 = vadd.s32 4294967292, %v3243_v27 }
 0x611   : > { %v1360_v56 = vmul.f32 %v3044_v55, %v3040_v49 }
 0x612   : > { %vm1626_vm9 = vcmp.ge.s32.totalorder %v1624_v54, 0 }
 0x613   : > { %2859 = vmatprep.mubr.msk.f32.mxu0 %vm846_vm2, %v1360_v56 }
 0x614   : > { %2860 = vmatmul.mubr.msk.f32.vlgmr.msra.gmra.mrb[12].mxu0 %vm846_vm2, %v1361_v58 }
 0x615   : > { %2869 = vmatpush3.bf16.msra.mxu0 %v3004_v57  ;;  %2870 = vmatprep.mubr.msk.bf16.mxu0 %vm3062_vm0, %v3061_v1 }
 0x616   : > { %2882 = vmatprep.subr.bf16.mxu0 %v3061_v1 }
 0x618   : > { %2871 = vmatmul.mubr.msk.bf16.vlgmr.msra.gmra.mrb[16].mxu0 %vm846_vm2, %v1048_v14  ;;  %v641_v14 = vunpack.c.h.bf16 %v3197_v4 }
 0x619   : > { %2886 = vmatprep.mubr.msk.bf16.mxu0 %vm3062_vm0, %v3061_v1  ;;  %2883 = vmatpush3.bf16.msra.mxu0 %v3007_v34  ;;  %v3016_v34 = vld [vmem:[%s3592_s13 + $0x48] sm:$0xff]  }
 0x61a   : > { %2884 = vmatprep.subr.bf16.mxu0 %v3061_v1 }
 0x61d   : > { %2885 = vmatpush3.bf16.msra.mxu0 %v3009_v36 }
 0x61e   : > { %2898 = vmatprep.subr.bf16.mxu0 %v3061_v1 }
 0x6e7   : > { %v2861_v60 = vpop.f32.mrb[12].mxu0 }
 0x6e8   : > { %v1434_v61 = vpop.f32.mrb[13].mxu0 }
 0x6e9   : > { %v1443_v62 = vpack.c.bf16 %v2861_v60, %v1434_v61 }
 0x6eb   : > { %2865 = vmatmul.mubr.msk.bf16.vlgmr.msra.gmra.mrb[20].mxu1 %vm846_vm2, %v1443_v62  ;;  %v1540_v63 = vpop.f32.mrb[16].mxu0  ;;  %vm2095_vm2 = vcmp.lt.s32.totalorder %v3243_v27, 6 }
 0x6ec   : > { %v2872_v0 = vpop.f32.mrb[17].mxu0  ;;  %2878 = vmatprep.mubr.msk.bf16.mxu1 %vm3062_vm0, %v3061_v1  ;;  %2875 = vmatpush3.bf16.msra.mxu1 %v3006_v33 }
 0x6ed   : > { %v1543_v2 = vpop.f32.mrb[18].mxu0  ;;  %2876 = vmatprep.subr.bf16.mxu1 %v3061_v1 }
 0x6ee   : > { %v2873_v3 = vpop.f32.mrb[19].mxu0 }
 0x6f0   : > { %2877 = vmatpush3.bf16.msra.mxu1 %v3008_v35  ;;  %v3017_v35 = vld [vmem:[%s3592_s13 + $0x58] sm:$0xff]  }
 0x6f1   : > { %2890 = vmatprep.subr.bf16.mxu1 %v3061_v1 }
 0x7be   : > { %v1490_v5 = vpop.f32.mrb[20].mxu1 }
 0x7bf   : > { %v1541_v7 = vadd.f32 %v1540_v63, %v1490_v5  ;;  %v2866_v8 = vpop.f32.mrb[21].mxu1  ;;  %v1785_v63 = vadd.s32 4294967294, %v3243_v27 }
 0x7c0   : > { %v1493_v10 = vpop.f32.mrb[22].mxu1 }
 0x7c1   : > { %v1554_v11 = vadd.f32 %v2636_v6, %v1541_v7  ;;  %v1544_v12 = vadd.f32 %v1543_v2, %v1493_v10  ;;  %v2867_v13 = vpop.f32.mrb[23].mxu1  ;;  %v1868_v2 = vadd.s32 4294967295, %v3243_v27  ;;  %v3010_v10 = vld [vmem:[%s3592_s13 + $0x20] sm:$0xff]   ;;  %vm1787_vm12 = vcmp.ge.s32.totalorder %v1785_v63, 0 }
 0x7c3   : > { %v1555_v15 = vadd.f32 %v2636_v6, %v1544_v12  ;;  %v1556_v16 = vadd.f32 %v1554_v11, %v640_v9  ;;  %v3011_v11 = vld [vmem:[%s3592_s13 + $0x30] sm:$0xff]   ;;  %vm1870_vm13 = vcmp.ge.s32.totalorder %v1868_v2, 0  ;;  %v3024_v2 = vld [vmem:[%s3594_s15] sm:$0xff]  }
 0x7c5   : > { %v1560_v17 = vsel %vm673_vm1, %v1556_v16, 0.0  ;;  %v1557_v18 = vadd.f32 %v1555_v15, %v641_v14 }
 0x7c6   : > { %1561 = vadd.xlane.f32.xlu0 %v1560_v17 }
 0x7c7   : > { %v1563_v20 = vsel %vm673_vm1, %v1557_v18, 0.0 }
 0x7c8   : > { %1564 = vadd.xlane.f32.xlu1 %v1563_v20  ;;  %v3012_v20 = vld [vmem:[%s3592_s13 + $0x28] sm:$0xff]  }
 0x853   : > { %v1562_v21 = vpop.xlane.xlu0 %1561 }
 0x854   : > { %v1567_v22 = vmul.f32 0.03125, %v1562_v21  ;;  %v3013_v21 = vld [vmem:[%s3592_s13 + $0x38] sm:$0xff]  }
 0x855   : > { %v1565_v23 = vpop.xlane.xlu1 %1564 }
 0x856   : > { %v1569_v24 = vsub.f32 %v1556_v16, %v1567_v22  ;;  %v1568_v25 = vmul.f32 0.03125, %v1565_v23  ;;  %v3423_v16 = vadd.s32 8, %v3243_v27  ;;  %v3023_v27 = vld [vmem:[%s3592_s13 + $0x88] sm:$0xff]  }
 0x858   : > { %v1570_v19 = vsub.f32 %v1557_v18, %v1568_v25  ;;  %v1571_v26 = vmul.f32 %v1569_v24, %v1569_v24 }
 0x85a   : > { %v1573_v28 = vsel %vm673_vm1, %v1571_v26, 0.0  ;;  %v1572_v4 = vmul.f32 %v1570_v19, %v1570_v19  ;;  %v2016_v26 = vadd.s32 1, %v3423_v16 }
 0x85b   : > { %1574 = vadd.xlane.f32.xlu0 %v1573_v28  ;;  %v3014_v28 = vld [vmem:[%s3592_s13 + $0x40] sm:$0xff]  }
 0x85c   : > { %v1576_v29 = vsel %vm673_vm1, %v1572_v4, 0.0  ;;  %v3015_v4 = vld [vmem:[%s3592_s13 + $0x50] sm:$0xff]   ;;  %vm2020_vm15 = vcmp.lt.s32.totalorder %v2016_v26, 16 }
 0x85d   : > { %1577 = vadd.xlane.f32.xlu1 %v1576_v29 }
 0x86e   : > { %1610 = vperm.xlu1 %2990, %v644_v31  }
 0x871   : > { %1605 = vperm.xlu0 %2989, %v643_v32  }
 0x8e8   : > { %v1575_v37 = vpop.xlane.xlu0 %1574 }
 0x8e9   : > { %v1579_v38 = vmul.f32 0.03125, %v1575_v37 }
 0x8ea   : > { %v1578_v39 = vpop.xlane.xlu1 %1577 }
 0x8eb   : > { %v1581_v40 = vadd.f32 1e-05, %v1579_v38  ;;  %v1580_v41 = vmul.f32 0.03125, %v1578_v39  ;;  %v2099_v39 = vadd.s32 2, %v3423_v16 }
 0x8ed   : > { %3045 = vrsqrt.f32 %v1581_v40  ;;  %v1582_v42 = vadd.f32 1e-05, %v1580_v41  ;;  %v2182_v41 = vadd.s32 3, %v3423_v16  ;;  %vm2103_vm4 = vcmp.lt.s32.totalorder %v2099_v39, 16 }
 0x8ee   : > { %v3386_v52 = vpop.permute.xlu1 %1610 }
 0x8ef   : > { %3047 = vrsqrt.f32 %v1582_v42  ;;  %v3018_v42 = vld [vmem:[%s3592_s13 + $0x60] sm:$0xff]   ;;  %vm2186_vm5 = vcmp.lt.s32.totalorder %v2182_v41, 16 }
 0x8f0   : > { %v3384_v49 = vpop.permute.xlu0 %1605 }
 0x8f7   : > { %v3046_v30 = vpop.eup %3045 }
 0x8f8   : > { %v1585_v44 = vmul.f32 %v3046_v30, %v1569_v24  ;;  %v3019_v30 = vld [vmem:[%s3592_s13 + $0x70] sm:$0xff]  }
 0x8f9   : > { %v3048_v45 = vpop.eup %3047 }
 0x8fa   : > { %v1593_v47 = vmul.f32 %v2637_v43, %v1585_v44  ;;  %v1586_v48 = vmul.f32 %v3048_v45, %v1570_v19 }
 0x8fc   : > { %v1601_v50 = vadd.f32 %v2638_v46, %v1593_v47  ;;  %v1594_v51 = vmul.f32 %v2637_v43, %v1586_v48 }
 0x8fe   : > { %v3391_v55 = vmul.f32 %v3384_v49, %v1601_v50  ;;  %v1602_v56 = vadd.f32 %v2638_v46, %v1594_v51  ;;  %v3020_v50 = vld [vmem:[%s3592_s13 + $0x68] sm:$0xff]   ;;  %v3021_v51 = vld [vmem:[%s3592_s13 + $0x78] sm:$0xff]  }
 0x900   : > { %v3394_v57 = vmul.f32 %v3386_v52, %v1602_v56  ;;  %v1643_v58 = vrot.slane %v3391_v55, 5  ;;  %v1619_v60 = vrot.slane %v3391_v55, 4  ;;  %v1780_v14 = vrot.slane %v3391_v55, 6 }
 0x901   : > { %v1863_v15 = vrot.slane %v3391_v55, 7  ;;  %v2010_v32 = vrot.slane %v3391_v55, 1  ;;  %v2093_v45 = vrot.slane %v3391_v55, 2  ;;  %v2176_v46 = vrot.slane %v3391_v55, 3 }
 0x902   : > { %v1644_v59 = vrot.slane %v3394_v57, 5  ;;  %v1620_v61 = vrot.slane %v3394_v57, 4  ;;  %v1781_v62 = vrot.slane %v3394_v57, 6  ;;  %v1864_v0 = vrot.slane %v3394_v57, 7 }
 0x903   : > { %v2011_v19 = vrot.slane %v3394_v57, 1  ;;  %v2094_v38 = vrot.slane %v3394_v57, 2  ;;  %v2177_v40 = vrot.slane %v3394_v57, 3  ;;  %v1946_v43 = vpack.c.bf16 %v3394_v57, %v3391_v55 }
 0x904   : > { %v1646_v3 = vsel %vm1645_vm6, %v1643_v58, %v1644_v59  ;;  %v1647_v5 = vsel %vm1645_vm6, %v1644_v59, %v1643_v58  ;;  %v3406_v6 = vsel %vm1621_vm8, %v1619_v60, %v1620_v61  ;;  %v3408_v7 = vsel %vm1621_vm8, %v1620_v61, %v1619_v60  ;;  %v3022_v60 = vld [vmem:[%s3592_s13 + $0x80] sm:$0xff]  }
 0x905   : > { %v1660_v8 = vsel %vm1650_vm7, %v1647_v5, 0.0  ;;  %v1636_v9 = vsel %vm1626_vm9, %v3408_v7, 0.0  ;;  %v1784_v17 = vsel %vm1782_vm10, %v1781_v62, %v1780_v14  ;;  %v1867_v18 = vsel %vm1865_vm11, %v1864_v0, %v1863_v15  ;;  %v3026_v5 = vld [vmem:[%s3594_s15 + $0x10] sm:$0xff]  }
 0x906   : > { %v1662_v12 = vpack.c.bf16 %v1646_v3, %v1660_v8  ;;  %v1638_v13 = vpack.c.bf16 %v3406_v6, %v1636_v9  ;;  %v1783_v22 = vsel %vm1782_vm10, %v1780_v14, %v1781_v62  ;;  %v1797_v23 = vsel %vm1787_vm12, %v1784_v17, 0.0  ;;  %v3025_v3 = vld [vmem:[%s3594_s15 + $0x8] sm:$0xff]  }
 0x907   : > { %v1866_v24 = vsel %vm1865_vm11, %v1863_v15, %v1864_v0  ;;  %v1880_v25 = vsel %vm1870_vm13, %v1867_v18, 0.0  ;;  %v1799_v29 = vpack.c.bf16 %v1783_v22, %v1797_v23  ;;  %v2014_v33 = vsel %vm2012_vm14, %v2011_v19, %v2010_v32 }
 0x908   : > { %2879 = vmatmul.mubr.msk.bf16.vlgmr.msra.gmra.mrb[24].mxu1 %vm673_vm1, %v1662_v12  ;;  %2887 = vmatmul.mubr.msk.bf16.vlgmr.msra.gmra.mrb[20].mxu0 %vm673_vm1, %v1638_v13  ;;  %v1882_v31 = vpack.c.bf16 %v1866_v24, %v1880_v25  ;;  %v2013_v36 = vsel %vm2012_vm14, %v2010_v32, %v2011_v19  ;;  %v2028_v37 = vsel %vm2020_vm15, %v2014_v33, 0.0  ;;  %v2097_v47 = vsel %vm2095_vm2, %v2094_v38, %v2093_v45 }
 0x909   : > { %2891 = vmatpush3.bf16.msra.mxu1 %v3010_v10  ;;  %2899 = vmatpush3.bf16.msra.mxu0 %v3011_v11  ;;  %v2029_v44 = vpack.c.bf16 %v2028_v37, %v2013_v36  ;;  %v2180_v48 = vsel %vm2178_vm3, %v2177_v40, %v2176_v46  ;;  %v2096_v53 = vsel %vm2095_vm2, %v2093_v45, %v2094_v38  ;;  %v2111_v54 = vsel %vm2103_vm4, %v2097_v47, 0.0 }
 0x90a   : > { %2892 = vmatprep.subr.bf16.mxu1 %v3061_v1  ;;  %2900 = vmatprep.subr.bf16.mxu0 %v3061_v1  ;;  %v2179_v56 = vsel %vm2178_vm3, %v2176_v46, %v2177_v40  ;;  %v2194_v58 = vsel %vm2186_vm5, %v2180_v48, 0.0  ;;  %v2260_v59 = vadd.s32 4, %v3423_v16  ;;  %v2112_v61 = vpack.c.bf16 %v2111_v54, %v2096_v53  ;;  %v2698_v54 = vld [vmem:[%s3593_s14] ss:$0 sm:$0xff] }
 0x90b   : > { %2894 = vmatprep.mubr.msk.bf16.mxu1 %vm3062_vm0, %v3061_v1  ;;  %2902 = vmatprep.mubr.msk.bf16.mxu0 %vm3062_vm0, %v3061_v1  ;;  %v2195_v62 = vpack.c.bf16 %v2194_v58, %v2179_v56 }
 0x90c   : > { %vm2264_vm6 = vcmp.lt.s32.totalorder %v2260_v59, 16 }
 0x90d   : > { %2893 = vmatpush3.bf16.msra.mxu1 %v3012_v20  ;;  %2901 = vmatpush3.bf16.msra.mxu0 %v3013_v21  ;;  %v2272_v63 = vsel %vm2264_vm6, %v3408_v7, 0.0 }
 0x90e   : > { %2906 = vmatprep.subr.bf16.mxu1 %v3061_v1  ;;  %2914 = vmatprep.subr.bf16.mxu0 %v3061_v1  ;;  %v2273_v0 = vpack.c.bf16 %v2272_v63, %v3406_v6  ;;  %v3027_v6 = vld [vmem:[%s3594_s15 + $0x18] sm:$0xff]  }
 0x910   : > { %2895 = vmatmul.mubr.msk.bf16.vlgmr.msra.gmra.mrb[28].mxu1 %vm673_vm1, %v1799_v29  ;;  %2903 = vmatmul.mubr.msk.bf16.vlgmr.msra.gmra.mrb[24].mxu0 %vm673_vm1, %v1882_v31 }
 0x911   : > { %2907 = vmatpush3.bf16.msra.mxu1 %v3014_v28  ;;  %2915 = vmatpush3.bf16.msra.mxu0 %v3015_v4 }
 0x912   : > { %2908 = vmatprep.subr.bf16.mxu1 %v3061_v1  ;;  %2916 = vmatprep.subr.bf16.mxu0 %v3061_v1 }
 0x913   : > { %2910 = vmatprep.mubr.msk.bf16.mxu1 %vm3062_vm0, %v3061_v1  ;;  %2918 = vmatprep.mubr.msk.bf16.mxu0 %vm3062_vm0, %v3061_v1 }
 0x915   : > { %2909 = vmatpush3.bf16.msra.mxu1 %v3016_v34  ;;  %2917 = vmatpush3.bf16.msra.mxu0 %v3017_v35 }
 0x916   : > { %2922 = vmatprep.subr.bf16.mxu1 %v3061_v1  ;;  %2930 = vmatprep.subr.bf16.mxu0 %v3061_v1 }
 0x918   : > { %2911 = vmatmul.mubr.msk.bf16.vlgmr.msra.gmra.mrb[32].mxu1 %vm673_vm1, %v1946_v43  ;;  %2919 = vmatmul.mubr.msk.bf16.vlgmr.msra.gmra.mrb[28].mxu0 %vm673_vm1, %v2029_v44 }
 0x919   : > { %2923 = vmatpush3.bf16.msra.mxu1 %v3018_v42  ;;  %2931 = vmatpush3.bf16.msra.mxu0 %v3019_v30 }
 0x91a   : > { %2924 = vmatprep.subr.bf16.mxu1 %v3061_v1  ;;  %2932 = vmatprep.subr.bf16.mxu0 %v3061_v1 }
 0x91b   : > { %2926 = vmatprep.mubr.msk.bf16.mxu1 %vm3062_vm0, %v3061_v1  ;;  %2934 = vmatprep.mubr.msk.bf16.mxu0 %vm3062_vm0, %v3061_v1 }
 0x91d   : > { %2925 = vmatpush3.bf16.msra.mxu1 %v3020_v50  ;;  %2933 = vmatpush3.bf16.msra.mxu0 %v3021_v51 }
 0x91e   : > { %2938 = vmatprep.subr.bf16.mxu1 %v3061_v1  ;;  %2946 = vmatprep.subr.bf16.mxu0 %v3061_v1 }
 0x920   : > { %2927 = vmatmul.mubr.msk.bf16.vlgmr.msra.gmra.mrb[36].mxu1 %vm673_vm1, %v2112_v61  ;;  %2935 = vmatmul.mubr.msk.bf16.vlgmr.msra.gmra.mrb[32].mxu0 %vm673_vm1, %v2195_v62 }
 0x921   : > { %2939 = vmatpush3.bf16.msra.mxu1 %v3022_v60  ;;  %2942 = vmatprep.mubr.msk.bf16.mxu1 %vm3062_vm0, %v3061_v1 }
 0x922   : > { %2940 = vmatprep.subr.bf16.mxu1 %v3061_v1  ;;  %2954 = vmatprep.mubr.msk.bf16.mxu0 %vm3062_vm0, %v3061_v1  ;;  %vm2387_vm0 = vcmask 523264  }
 0x923   : > { %2947 = vmatpush3.bf16.msra.mxu0 %v3024_v2 }
 0x924   : > { %2948 = vmatprep.subr.bf16.mxu0 %v3061_v1 }
 0x925   : > { %2941 = vmatpush3.bf16.msra.mxu1 %v3023_v27 }
 0x927   : > { %2949 = vmatpush3.bf16.msra.mxu0 %v3025_v3 }
 0x928   : > { %2943 = vmatmul.mubr.msk.bf16.vlgmr.msra.gmra.mrb[40].mxu1 %vm673_vm1, %v2273_v0  ;;  %2950 = vmatprep.subr.bf16.mxu0 %v3061_v1 }
 0x92b   : > { %2951 = vmatpush3.bf16.msra.mxu0 %v3026_v5  ;;  %v2699_v5 = vld [vmem:[%s3595_s16] ss:$0 sm:$0xff] }
 0x92c   : > { %2952 = vmatprep.subr.bf16.mxu0 %v3061_v1 }
 0x92f   : > { %2953 = vmatpush3.bf16.msra.mxu0 %v3027_v6 }
 0x9db   : > { %v1717_v7 = vpop.f32.mrb[24].mxu1  ;;  %v1773_v8 = vpop.f32.mrb[20].mxu0 }
 0x9dc   : > { %v1774_v9 = vadd.f32 %v1773_v8, %v1717_v7  ;;  %v2880_v10 = vpop.f32.mrb[25].mxu1  ;;  %v2888_v11 = vpop.f32.mrb[21].mxu0 }
 0x9dd   : > { %v1720_v12 = vpop.f32.mrb[26].mxu1  ;;  %v1776_v13 = vpop.f32.mrb[22].mxu0 }
 0x9de   : > { %v1777_v14 = vadd.f32 %v1776_v13, %v1720_v12  ;;  %v2881_v15 = vpop.f32.mrb[27].mxu1  ;;  %v2889_v16 = vpop.f32.mrb[23].mxu0 }
 0x9e3   : > { %v1854_v17 = vpop.f32.mrb[28].mxu1  ;;  %v1937_v18 = vpop.f32.mrb[24].mxu0 }
 0x9e4   : > { %v1861_v20 = vadd.f32 %v1854_v17, %v1774_v9  ;;  %v2896_v21 = vpop.f32.mrb[29].mxu1  ;;  %v2904_v22 = vpop.f32.mrb[25].mxu0 }
 0x9e5   : > { %v1857_v23 = vpop.f32.mrb[30].mxu1  ;;  %v1940_v24 = vpop.f32.mrb[26].mxu0 }
 0x9e6   : > { %v1944_v25 = vadd.f32 %v1937_v18, %v1861_v20  ;;  %v1862_v1 = vadd.f32 %v1857_v23, %v1777_v14  ;;  %v2897_v19 = vpop.f32.mrb[31].mxu1  ;;  %v2905_v26 = vpop.f32.mrb[27].mxu0 }
 0x9e8   : > { %v1945_v28 = vadd.f32 %v1940_v24, %v1862_v1 }
 0x9eb   : > { %v2001_v4 = vpop.f32.mrb[32].mxu1  ;;  %v2084_v29 = vpop.f32.mrb[28].mxu0 }
 0x9ec   : > { %v2008_v31 = vadd.f32 %v2001_v4, %v1944_v25  ;;  %v2912_v32 = vpop.f32.mrb[33].mxu1  ;;  %v2920_v33 = vpop.f32.mrb[29].mxu0 }
 0x9ed   : > { %v2004_v34 = vpop.f32.mrb[34].mxu1  ;;  %v2087_v35 = vpop.f32.mrb[30].mxu0  ;;  %v2706_v33 = vld [vmem:[%s3597_s18] ss:$0 sm:$0xff] }
 0x9ee   : > { %v2091_v36 = vadd.f32 %v2084_v29, %v2008_v31  ;;  %v2009_v37 = vadd.f32 %v2004_v34, %v1945_v28  ;;  %v2913_v38 = vpop.f32.mrb[35].mxu1  ;;  %v2921_v39 = vpop.f32.mrb[31].mxu0  ;;  %v2705_v31 = vld [vmem:[%s3596_s17] ss:$0 sm:$0xff] }
 0x9f0   : > { %v2092_v40 = vadd.f32 %v2087_v35, %v2009_v37 }
 0x9f3   : > { %v2167_v41 = vpop.f32.mrb[36].mxu1  ;;  %v2250_v42 = vpop.f32.mrb[32].mxu0 }
 0x9f4   : > { %v2174_v30 = vadd.f32 %v2167_v41, %v2091_v36  ;;  %v2928_v43 = vpop.f32.mrb[37].mxu1  ;;  %v2936_v44 = vpop.f32.mrb[33].mxu0 }
 0x9f5   : > { %v2170_v45 = vpop.f32.mrb[38].mxu1  ;;  %v2253_v46 = vpop.f32.mrb[34].mxu0 }
 0x9f6   : > { %v2257_v47 = vadd.f32 %v2250_v42, %v2174_v30  ;;  %v2175_v48 = vadd.f32 %v2170_v45, %v2092_v40  ;;  %v2929_v50 = vpop.f32.mrb[39].mxu1  ;;  %v2937_v51 = vpop.f32.mrb[35].mxu0 }
 0x9f8   : > { %v2258_v53 = vadd.f32 %v2253_v46, %v2175_v48 }
 0x9fb   : > { %v2328_v56 = vpop.f32.mrb[40].mxu1 }
 0x9fc   : > { %v2335_v58 = vadd.f32 %v2328_v56, %v2257_v47  ;;  %v2944_v59 = vpop.f32.mrb[41].mxu1 }
 0x9fd   : > { %v2331_v60 = vpop.f32.mrb[42].mxu1 }
 0x9fe   : > { %v2343_v61 = vadd.f32 %v2698_v54, %v2335_v58  ;;  %v2336_v62 = vadd.f32 %v2331_v60, %v2258_v53  ;;  %v2945_v27 = vpop.f32.mrb[43].mxu1 }
 0xa00   : > { %v2344_v63 = vadd.f32 %v2698_v54, %v2336_v62  ;;  %v2345_v0 = vmax.f32 %v2343_v61, 0.0 }
 0xa02   : > { %v2346_v2 = vmax.f32 %v2344_v63, 0.0 }
 0xa04   : > { %v2348_v3 = vpack.c.bf16 %v2346_v2, %v2345_v0 }
 0xa06   : > { %2955 = vmatmul.mubr.msk.bf16.vlgmr.msra.gmra.mrb[36].mxu0 %vm2387_vm0, %v2348_v3 }
 0xad9   : > { %v2425_v6 = vpop.f32.mrb[36].mxu0 }
 0xada   : > { %v2426_v7 = vadd.f32 %v2699_v5, %v2425_v6  ;;  %v2956_v8 = vpop.f32.mrb[37].mxu0 }
 0xadb   : > { %v2428_v9 = vpop.f32.mrb[38].mxu0 }
 0xadc   : > { %v2429_v10 = vadd.f32 %v2699_v5, %v2428_v9  ;;  %v2957_v11 = vpop.f32.mrb[39].mxu0  ;;  %v2432_v12 = vadd.f32 %v2426_v7, %v3391_v55 }
 0xade   : > { %v2436_v13 = vsel %vm673_vm1, %v2432_v12, 0.0  ;;  %v2433_v14 = vadd.f32 %v2429_v10, %v3394_v57 }
 0xadf   : > { %2437 = vadd.xlane.f32.xlu1 %v2436_v13 }
 0xae0   : > { %v2439_v15 = vsel %vm673_vm1, %v2433_v14, 0.0 }
 0xae1   : > { %2440 = vadd.xlane.f32.xlu0 %v2439_v15 }
 0xb6c   : > { %v2438_v16 = vpop.xlane.xlu1 %2437 }
 0xb6d   : > { %v2442_v17 = vmul.f32 0.03125, %v2438_v16 }
 0xb6e   : > { %v2441_v18 = vpop.xlane.xlu0 %2440 }
 0xb6f   : > { %v2444_v20 = vsub.f32 %v2432_v12, %v2442_v17  ;;  %v2443_v21 = vmul.f32 0.03125, %v2441_v18 }
 0xb71   : > { %v2445_v22 = vsub.f32 %v2433_v14, %v2443_v21  ;;  %v2446_v23 = vmul.f32 %v2444_v20, %v2444_v20 }
 0xb73   : > { %v2448_v24 = vsel %vm673_vm1, %v2446_v23, 0.0  ;;  %v2447_v25 = vmul.f32 %v2445_v22, %v2445_v22 }
 0xb74   : > { %2449 = vadd.xlane.f32.xlu1 %v2448_v24 }
 0xb75   : > { %v2451_v55 = vsel %vm673_vm1, %v2447_v25, 0.0  ;;  %vm2488_vm1 = vcmask 257024  }
 0xb78   : > { %2452 = vadd.xlane.f32.xlu1 %v2451_v55 }
 0xc01   : > { %v2450_v1 = vpop.xlane.xlu1 %2449 }
 0xc02   : > { %v2454_v57 = vmul.f32 0.03125, %v2450_v1 }
 0xc04   : > { %v2456_v19 = vadd.f32 1e-05, %v2454_v57 }
 0xc05   : > { %v2453_v26 = vpop.xlane.xlu1 %2452 }
 0xc06   : > { %3049 = vrsqrt.f32 %v2456_v19  ;;  %v2455_v28 = vmul.f32 0.03125, %v2453_v26 }
 0xc08   : > { %v2457_v4 = vadd.f32 1e-05, %v2455_v28 }
 0xc0a   : > { %3051 = vrsqrt.f32 %v2457_v4 }
 0xc10   : > { %v3050_v29 = vpop.eup %3049 }
 0xc11   : > { %v2460_v32 = vmul.f32 %v3050_v29, %v2444_v20 }
 0xc13   : > { %v2468_v34 = vmul.f32 %v2705_v31, %v2460_v32 }
 0xc14   : > { %v3052_v35 = vpop.eup %3051 }
 0xc15   : > { %v2476_v36 = vadd.f32 %v2706_v33, %v2468_v34  ;;  %v2461_v37 = vmul.f32 %v3052_v35, %v2445_v22 }
 0xc17   : > { %v2478_v38 = vmul.f32 %v2476_v36, %v3384_v49  ;;  %v2469_v39 = vmul.f32 %v2705_v31, %v2461_v37 }
 0xc19   : > { %v2714_v40 = vpack.c.bf16 %v2478_v38, %v2478_v38  ;;  %v2477_v41 = vadd.f32 %v2706_v33, %v2469_v39 }
 0xc1b   : > { %2489 = vst.msk [vmem:[%s636_s2] sm:$0xf] %vm2488_vm1, %v2714_v40  ;;  %v2479_v42 = vmul.f32 %v2477_v41, %v3386_v52 }
 0xc1d   : > { %v2715_v30 = vpack.c.bf16 %v2479_v42, %v2479_v42 }
 0xc1f   : > { %2490 = vst.msk [vmem:[%s636_s2 + $0x4] sm:$0xf] %vm2488_vm1, %v2715_v30 }
 0xc20 PF: > { %s29_s0 = sadd.s32 1, %s3059_s0  }
 0xc21   : > { %p26_p4 = scmp.ge.s32.totalorder %s29_s0, 4  }
 0xc23   :  { %28 = sbr.rel (!%p26_p4) target bundleno = 5 (0x5), region = 147 }

// kernel: _lambda_.7
= control target key start
LH: loop header
LB: loop body
LE: loop exit
PB: predicated region body
PF: predicated region fallthrough
CT: control target
= control target key end

     0   :  { %s1143_s19 = smov 0   ;;  %s1270_s0 = inlined_call_operand.vmem [shape: bf16[2,8,32], index: 0, kind: input, shape index: {}]   ;;  %s1271_s1 = inlined_call_operand.vmem [shape: bf16[3,32,32], index: 1, kind: input, shape index: {}]   ;;  %s1272_s2 = inlined_call_operand.vmem [shape: f32[1,32], index: 2, kind: input, shape index: {}]   ;;  %s1273_s3 = inlined_call_operand.vmem [shape: f32[1,32], index: 3, kind: input, shape index: {}, may-alias: {3,7}]   ;;  %s1274_s4 = inlined_call_operand.vmem [shape: f32[1,32], index: 4, kind: input, shape index: {}, may-alias: {4,8}]   ;;  %s1275_s5 = inlined_call_operand.vmem [shape: bf16[3,32,32], index: 5, kind: input, shape index: {}]   ;;  %s1276_s6 = inlined_call_operand.vmem [shape: f32[1,32], index: 6, kind: input, shape index: {}]   ;;  %s1277_s7 = inlined_call_operand.vmem [shape: f32[1,32], index: 7, kind: input, shape index: {}, may-alias: {3,7}]   ;;  %s1278_s8 = inlined_call_operand.vmem [shape: f32[1,32], index: 8, kind: input, shape index: {}, may-alias: {4,8}]   ;;  %s1279_s9 = inlined_call_operand.vmem [shape: f32[1,32], index: 9, kind: input, shape index: {}]   ;;  %s1280_s10 = inlined_call_operand.<no memory space> [shape: f32[1,1], index: 10, kind: input, shape index: {}]   ;;  %s1281_s11 = inlined_call_operand.vmem [shape: f32[2,8,1], index: 11, kind: output, shape index: {}]  }
   0x1   :  { %v16_v0 = vstv %s1280_s10 }
   0x2   :  { %17 = vst [vmem:[#allocation2] sm:$0x1] %v16_v0 }
   0x3 LB: > { %s927_s20 = sadd.s32 4294967295, %s1076_s19   ;;  %p931_p0 = scmp.ge.s32.totalorder %s1076_s19, 1  ;;  %s1076_s19 = sphi %s1143_s19, %s23_s19  }
   0x4   : > { %p338_p1 = scmp.lt.s32.totalorder %s1076_s19, 3 }
   0x6   : > { %p339_p2 = pnand %p931_p0, %p338_p1 }
   0x7   : > { %v1054_v1 = vld [vmem:[%s1271_s1 + $0x10] sm:$0xff] (!%p339_p2)   ;;  %v388_v2 = vlaneseq (!%p339_p2)  ;;  %v1078_v3 = vmov (!%p339_p2), 0.0   ;;  %v1055_v4 = vld [vmem:[%s1271_s1 + $0x18] sm:$0xff] (!%p339_p2)   ;;  %v1056_v5 = vld [vmem:[%s1271_s1] sm:$0xff] (!%p339_p2)   ;;  %vm1079_vm0 = vmmov (!%p339_p2), 0   ;;  %p376_p3 = scmp.lt.s32.totalorder (!%p339_p2), %s927_s20, 1 }
   0x8   : > { %342 = sbr.rel (%p339_p2) target bundleno = 1250 (0x4e2), region = 64  ;;  %996 = vmatprep.subr.bf16.mxu0 (!%p339_p2), %v1078_v3  ;;  %1004 = vmatprep.subr.bf16.mxu1 (!%p339_p2), %v1078_v3  ;;  %v1057_v7 = vld [vmem:[%s1271_s1 + $0x8] sm:$0xff] (!%p339_p2)   ;;  %vm420_vm1 = vcmask (!%p339_p2), 261120   ;;  %v1058_v10 = vld [vmem:[%s1271_s1 + $0x20] sm:$0xff] (!%p339_p2)   ;;  %v1060_v42 = vld [vmem:[%s1275_s5 + $0x10] sm:$0xff] (!%p339_p2)   ;;  %vm872_vm4 = vcmask (!%p339_p2), 7168  }
   0x9   : > { %997 = vmatpush3.bf16.msra.mxu0 (!%p339_p2), %v1054_v1  ;;  %1000 = vmatprep.mubr.msk.bf16.mxu0 (!%p339_p2), %vm1079_vm0, %v1078_v3  ;;  %v389_v6 = vshrl.u32 (!%p339_p2), %v388_v2, 7  ;;  %v1059_v12 = vld [vmem:[%s1271_s1 + $0x28] sm:$0xff] (!%p339_p2)   ;;  %v951_v30 = vld [vmem:[%s1272_s2] ss:$0 sm:$0xff] (!%p339_p2)  ;;  %v1062_v44 = vld [vmem:[%s1275_s5 + $0x18] sm:$0xff] (!%p339_p2)  }
   0xa   : > { %998 = vmatprep.subr.bf16.mxu0 (!%p339_p2), %v1078_v3  ;;  %1008 = vmatprep.mubr.msk.bf16.mxu1 (!%p339_p2), %vm1079_vm0, %v1078_v3  ;;  %v1061_v43 = vld [vmem:[%s1275_s5] sm:$0xff] (!%p339_p2)   ;;  %v1063_v45 = vld [vmem:[%s1275_s5 + $0x8] sm:$0xff] (!%p339_p2)  }
   0xb   : > { %1005 = vmatpush3.bf16.msra.mxu1 (!%p339_p2), %v1056_v5  ;;  %v1172_v8 = vadd.s32 (!%p339_p2), 1, %v389_v6  ;;  %v1175_v9 = vadd.s32 (!%p339_p2), 4294967295, %v389_v6  ;;  %v952_v50 = vld [vmem:[%s1273_s3] ss:$0 sm:$0xff] (!%p339_p2)  ;;  %v1065_v62 = vld [vmem:[%s1275_s5 + $0x28] sm:$0xff] (!%p339_p2)  }
   0xc   : > { %1006 = vmatprep.subr.bf16.mxu1 (!%p339_p2), %v1078_v3  ;;  %v953_v52 = vld [vmem:[%s1274_s4] ss:$0 sm:$0xff] (!%p339_p2) }
   0xd   : > { %999 = vmatpush3.bf16.msra.mxu0 (!%p339_p2), %v1055_v4  ;;  %vm522_vm2 = vcmp.lt.s32.totalorder (!%p339_p2), %v1172_v8, 8  ;;  %vm392_vm3 = vcmp.ge.s32.totalorder (!%p339_p2), %v1175_v9, 0  ;;  %v1064_v56 = vld [vmem:[%s1275_s5 + $0x20] sm:$0xff] (!%p339_p2)  }
   0xe   : > { %1012 = vmatprep.subr.bf16.mxu0 (!%p339_p2), %v1078_v3 }
   0xf   : > { %s1283_s20 = smov (!%p376_p3, %s927_s20), 1  ;;  %1007 = vmatpush3.bf16.msra.mxu1 %v1057_v7 }
  0x10   : > { %s932_s28 = sshll.u32 %s1283_s20, 2  ;;  %1020 = vmatprep.subr.bf16.mxu1 %v1078_v3  ;;  %s933_s26 = sshll.u32 %s1283_s20, 3 }
  0x11   : > { %s379_s14 = scalar_lea.vmem %s1270_s0, %s932_s28  ;;  %s383_s29 = scalar_lea.vmem %s1281_s11, %s933_s26 }
  0x12   : > { %v385_v11 = vld [vmem:[%s379_s14] sm:$0xf] }
  0x13   : > { %v386_v13 = vunpack.c.l.bf16 %v385_v11  ;;  %1001 = vmatmul.mubr.msk.bf16.vlgmr.msra.gmra.mrb[0].mxu0 %vm420_vm1, %v385_v11 }
  0x14   : > { %1013 = vmatpush3.bf16.msra.mxu0 %v1058_v10  ;;  %1016 = vmatprep.mubr.msk.bf16.mxu0 %vm1079_vm0, %v1078_v3 }
  0x15   : > { %v390_v14 = vrot.slane %v386_v13, 7  ;;  %v519_v15 = vrot.slane %v386_v13, 1  ;;  %1014 = vmatprep.subr.bf16.mxu0 %v1078_v3 }
  0x17   : > { %v526_v16 = vsel %vm522_vm2, %v519_v15, 0.0  ;;  %v397_v17 = vsel %vm392_vm3, %v390_v14, 0.0 }
  0x18   : > { %v527_v18 = vpack.c.bf16 %v526_v16, %v526_v16  ;;  %v398_v19 = vpack.c.bf16 %v397_v17, %v397_v17  ;;  %1015 = vmatpush3.bf16.msra.mxu0 %v1059_v12 }
  0x19   : > { %1028 = vmatprep.subr.bf16.mxu0 %v1078_v3 }
  0x1a   : > { %1009 = vmatmul.mubr.msk.bf16.vlgmr.msra.gmra.mrb[0].mxu1 %vm420_vm1, %v398_v19 }
  0x1b   : > { %1017 = vmatmul.mubr.msk.bf16.vlgmr.msra.gmra.mrb[4].mxu0 %vm420_vm1, %v527_v18  ;;  %1024 = vmatprep.mubr.msk.bf16.mxu1 %vm1079_vm0, %v1078_v3 }
  0x1c   : > { %1032 = vmatprep.mubr.msk.bf16.mxu0 %vm1079_vm0, %v1078_v3  ;;  %1021 = vmatpush3.bf16.msra.mxu1 %v1060_v42 }
  0x1d   : > { %1022 = vmatprep.subr.bf16.mxu1 %v1078_v3  ;;  %1029 = vmatpush3.bf16.msra.mxu0 %v1061_v43 }
  0x1e   : > { %1030 = vmatprep.subr.bf16.mxu0 %v1078_v3 }
  0x20   : > { %1023 = vmatpush3.bf16.msra.mxu1 %v1062_v44 }
  0x21   : > { %1036 = vmatprep.subr.bf16.mxu1 %v1078_v3  ;;  %1031 = vmatpush3.bf16.msra.mxu0 %v1063_v45 }
  0xe6   : > { %v458_v20 = vpop.f32.mrb[0].mxu0 }
  0xe7   : > { %v1002_v21 = vpop.f32.mrb[1].mxu0 }
  0xe8   : > { %v461_v22 = vpop.f32.mrb[2].mxu0 }
  0xe9   : > { %v1003_v23 = vpop.f32.mrb[3].mxu0 }
  0xed   : > { %v513_v24 = vpop.f32.mrb[0].mxu1 }
  0xee   : > { %v514_v25 = vadd.f32 %v513_v24, %v458_v20  ;;  %v1010_v26 = vpop.f32.mrb[1].mxu1  ;;  %v582_v27 = vpop.f32.mrb[4].mxu0 }
  0xef   : > { %v516_v28 = vpop.f32.mrb[2].mxu1  ;;  %v1018_v29 = vpop.f32.mrb[5].mxu0 }
  0xf0   : > { %v1011_v31 = vpop.f32.mrb[3].mxu1  ;;  %v588_v32 = vadd.f32 %v582_v27, %v514_v25  ;;  %v585_v33 = vpop.f32.mrb[6].mxu0  ;;  %v972_v27 = vld [vmem:[%s1277_s7] ss:$0 sm:$0xff] }
  0xf1   : > { %v1019_v34 = vpop.f32.mrb[7].mxu0  ;;  %v973_v29 = vld [vmem:[%s1278_s8] ss:$0 sm:$0xff] }
  0xf2   : > { %v595_v35 = vadd.f32 %v951_v30, %v588_v32  ;;  %v974_v32 = vld [vmem:[%s1279_s9] ss:$0 sm:$0xff] }
  0xf4   : > { %v598_v36 = vsel %vm420_vm1, %v595_v35, 0.0 }
  0xf5   : > { %599 = vadd.xlane.f32.xlu0 %v598_v36  ;;  %v975_v36 = vld [vmem:[#allocation2] ss:$0 sm:$0xff] }
 0x182   : > { %v600_v37 = vpop.xlane.xlu0 %599 }
 0x183   : > { %v602_v38 = vmul.f32 0.03125, %v600_v37 }
 0x185   : > { %v603_v39 = vsub.f32 %v595_v35, %v602_v38 }
 0x187   : > { %v604_v40 = vmul.f32 %v603_v39, %v603_v39 }
 0x189   : > { %v605_v41 = vsel %vm420_vm1, %v604_v40, 0.0 }
 0x18a   : > { %606 = vadd.xlane.f32.xlu0 %v605_v41 }
 0x217   : > { %v607_v46 = vpop.xlane.xlu0 %606 }
 0x218   : > { %v608_v47 = vmul.f32 0.03125, %v607_v46 }
 0x21a   : > { %v609_v48 = vadd.f32 1e-05, %v608_v47 }
 0x21c   : > { %1066 = vrsqrt.f32 %v609_v48 }
 0x226   : > { %v1067_v49 = vpop.eup %1066 }
 0x227   : > { %v611_v51 = vmul.f32 %v1067_v49, %v603_v39 }
 0x229   : > { %v618_v53 = vmul.f32 %v952_v50, %v611_v51 }
 0x22b   : > { %v625_v54 = vadd.f32 %v953_v52, %v618_v53 }
 0x22d   : > { %v626_v55 = vmax.f32 %v625_v54, 0.0 }
 0x22f   : > { %v635_v57 = vpack.c.bf16 %v626_v55, %v626_v55  ;;  %v628_v58 = vrot.slane %v626_v55, 7  ;;  %v751_v59 = vrot.slane %v626_v55, 1 }
 0x231   : > { %1025 = vmatmul.mubr.msk.bf16.vlgmr.msra.gmra.mrb[4].mxu1 %vm420_vm1, %v635_v57  ;;  %v629_v60 = vsel %vm392_vm3, %v628_v58, 0.0  ;;  %v752_v63 = vsel %vm522_vm2, %v751_v59, 0.0 }
 0x232   : > { %1037 = vmatpush3.bf16.msra.mxu1 %v1064_v56  ;;  %v630_v61 = vpack.c.bf16 %v629_v60, %v629_v60  ;;  %1040 = vmatprep.mubr.msk.bf16.mxu1 %vm1079_vm0, %v1078_v3  ;;  %v753_v0 = vpack.c.bf16 %v752_v63, %v752_v63 }
 0x233   : > { %1038 = vmatprep.subr.bf16.mxu1 %v1078_v3  ;;  %v971_v3 = vld [vmem:[%s1276_s6] ss:$0 sm:$0xff] }
 0x234   : > { %1033 = vmatmul.mubr.msk.bf16.vlgmr.msra.gmra.mrb[8].mxu0 %vm420_vm1, %v630_v61 }
 0x236   : > { %1039 = vmatpush3.bf16.msra.mxu1 %v1065_v62 }
 0x239   : > { %1041 = vmatmul.mubr.msk.bf16.vlgmr.msra.gmra.mrb[8].mxu1 %vm420_vm1, %v753_v0 }
 0x304   : > { %v690_v1 = vpop.f32.mrb[4].mxu1 }
 0x305   : > { %v1026_v2 = vpop.f32.mrb[5].mxu1 }
 0x306   : > { %v693_v4 = vpop.f32.mrb[6].mxu1 }
 0x307   : > { %v1027_v5 = vpop.f32.mrb[7].mxu1  ;;  %v745_v6 = vpop.f32.mrb[8].mxu0 }
 0x308   : > { %v746_v7 = vadd.f32 %v745_v6, %v690_v1  ;;  %v1034_v9 = vpop.f32.mrb[9].mxu0 }
 0x309   : > { %v748_v10 = vpop.f32.mrb[10].mxu0 }
 0x30a   : > { %v1035_v11 = vpop.f32.mrb[11].mxu0 }
 0x30c   : > { %v808_v12 = vpop.f32.mrb[8].mxu1 }
 0x30d   : > { %v814_v8 = vadd.f32 %v808_v12, %v746_v7  ;;  %v1042_v13 = vpop.f32.mrb[9].mxu1 }
 0x30e   : > { %v811_v14 = vpop.f32.mrb[10].mxu1 }
 0x30f   : > { %v1043_v15 = vpop.f32.mrb[11].mxu1  ;;  %v821_v16 = vadd.f32 %v971_v3, %v814_v8 }
 0x311   : > { %v824_v17 = vsel %vm420_vm1, %v821_v16, 0.0 }
 0x312   : > { %825 = vadd.xlane.f32.xlu1 %v824_v17 }
 0x39f   : > { %v826_v18 = vpop.xlane.xlu1 %825 }
 0x3a0   : > { %v827_v19 = vmul.f32 0.03125, %v826_v18 }
 0x3a2   : > { %v828_v20 = vsub.f32 %v821_v16, %v827_v19 }
 0x3a4   : > { %v829_v21 = vmul.f32 %v828_v20, %v828_v20 }
 0x3a6   : > { %v830_v22 = vsel %vm420_vm1, %v829_v21, 0.0 }
 0x3a7   : > { %831 = vadd.xlane.f32.xlu1 %v830_v22 }
 0x434   : > { %v832_v23 = vpop.xlane.xlu1 %831 }
 0x435   : > { %v833_v24 = vmul.f32 0.03125, %v832_v23 }
 0x437   : > { %v834_v25 = vadd.f32 1e-05, %v833_v24 }
 0x439   : > { %1068 = vrsqrt.f32 %v834_v25 }
 0x443   : > { %v1069_v26 = vpop.eup %1068 }
 0x444   : > { %v836_v28 = vmul.f32 %v1069_v26, %v828_v20 }
 0x446   : > { %v843_v30 = vmul.f32 %v972_v27, %v836_v28 }
 0x448   : > { %v850_v31 = vadd.f32 %v973_v29, %v843_v30 }
 0x44a   : > { %v851_v33 = vmax.f32 %v850_v31, 0.0 }
 0x44c   : > { %v859_v34 = vmul.f32 %v974_v32, %v851_v33 }
 0x44e   : > { %v860_v35 = vsel %vm420_vm1, %v859_v34, 0.0 }
 0x44f   : > { %861 = vadd.xlane.f32.xlu0 %v860_v35 }
 0x4dc   : > { %v862_v37 = vpop.xlane.xlu0 %861 }
 0x4dd   : > { %v870_v38 = vadd.f32 %v975_v36, %v862_v37 }
 0x4df   : > { %v871_v39 = vmax.f32 %v870_v38, 0.0 }
 0x4e1   : > { %873 = vst.msk [vmem:[%s383_s29] sm:$0xff] %vm872_vm4, %v871_v39 }
 0x4e2 PF: > { %s23_s19 = sadd.s32 1, %s1076_s19  }
 0x4e3   : > { %p20_p4 = scmp.ge.s32.totalorder %s23_s19, 4  }
 0x4e5   :  { %22 = sbr.rel (!%p20_p4) target bundleno = 3 (0x3), region = 98 }

</bundles_post_ra>
